<compile_context>
chip_gen: v6e
topology: v6e:2x2x1
jax: 0.10.0
libtpu: 0.0.40
codegen_flags: <defaults>
</compile_context>

<pallas_src>
import jax
import jax.numpy as jnp
from jax.experimental import pallas as pl
from jax.experimental.pallas import tpu as pltpu


# ----------------------------------------------------------------------------
# Kernel 1: fused sigma_net + color_net over sample points (transposed layout).
#   xT:   (C_in, N)   bf16, C_in = app_dim + c_pts + c_dirs  (features x points)
#   w0T:  (2H, C_in)  bf16, rows 0:H  -> sigma_net[0] on [fts|pts],
#                           rows H:2H -> color_net[0] dirs-half
#   slab: (6, H, H)   bf16, [w1T, w2T(pad), wc0hT(pad), wc1T, wc2T, wc3T(pad)]
#   out:  (4, N)      f32,  rows = [raw sigma, r, g, b] (lane-dense store)
# ----------------------------------------------------------------------------
def point_mlp_kernel(xT_ref, w0T_ref, wslab_ref, outT_ref):
    f32, bf16 = jnp.float32, jnp.bfloat16
    H = w0T_ref.shape[0] // 2
    xT = xT_ref[...]                                     # (C_in, TN) bf16

    def mm(w, a):
        return jnp.dot(w, a, preferred_element_type=f32)

    # layer 0: one 128-wide MXU matmul feeding both branches
    h_all = mm(w0T_ref[...], xT)                         # (2H, TN) f32
    h = jnp.maximum(h_all[0:H, :], 0.0).astype(bf16)     # sigma-net hidden 0
    dirs_c = h_all[H:2 * H, :]                           # dirs @ wc0d (pre-relu)

    # sigma_net layers 1..2
    h = jnp.maximum(mm(wslab_ref[0], h), 0.0).astype(bf16)
    h2 = mm(wslab_ref[1], h)                             # (H, TN); rows 0:16 = [sigma|geo]^T

    outT_ref[0:1, :] = h2[0:1, :]                        # raw sigma (relu in kernel 2)

    # color_net: wc0hT has a zero first column so the sigma row drops out.
    hc = jnp.maximum(mm(wslab_ref[2], h2.astype(bf16)) + dirs_c, 0.0).astype(bf16)
    hc = jnp.maximum(mm(wslab_ref[3], hc), 0.0).astype(bf16)
    hc = jnp.maximum(mm(wslab_ref[4], hc), 0.0).astype(bf16)
    rgbT = mm(wslab_ref[5], hc)[0:3, :]                  # (3, TN)
    outT_ref[1:4, :] = jax.nn.sigmoid(rgbT)


def _pick_tile_n(n, want):
    if n % 128 != 0 or n <= 128:
        return n
    t = max(128, (min(want, n) // 128) * 128)
    while n % t != 0:
        t -= 128
    return t


def run_point_mlp(xT, w0T, wslab, *, tile_n=2048):
    C, N = xT.shape
    tile_n = _pick_tile_n(N, tile_n)
    return pl.pallas_call(
        point_mlp_kernel,
        grid=(N // tile_n,),
        in_specs=[pl.BlockSpec((C, tile_n), lambda i: (0, i)),
                  pl.BlockSpec(w0T.shape, lambda i: (0, 0)),
                  pl.BlockSpec(wslab.shape, lambda i: (0, 0, 0))],
        out_specs=pl.BlockSpec((4, tile_n), lambda i: (0, i)),
        out_shape=jax.ShapeDtypeStruct((4, N), jnp.float32),
        compiler_params=pltpu.CompilerParams(dimension_semantics=("parallel",)),
    )(xT, w0T, wslab)


# ----------------------------------------------------------------------------
# Kernel 2: raw2outputs, tiled over rays.
#   raw4:  (4, R, S) f32  rows = [sigma, r, g, b]  (free reshape of kernel-1 out)
#   z:     (R, S)    f32
#   dists: (R, S)    f32  (z_next - z) * |rays_d|, last column 0
#   tri:   (S, S)    f32  strict upper-triangular (precomputed constant)
#   outputs: weights (R, S), stats (R, 5) = [r, g, b, depth, acc]
# ----------------------------------------------------------------------------
def raw2outputs_kernel(raw_ref, z_ref, dists_ref, tri_ref, w_ref, stats_ref):
    f32 = jnp.float32
    sigma = raw_ref[0]                      # (TR, S)
    z = z_ref[...]
    dists = dists_ref[...]
    TR, S = z.shape

    density = jnp.maximum(sigma, 0.0)       # sigma activation: relu
    col = jax.lax.broadcasted_iota(jnp.int32, (TR, S), 1)
    # torch: alpha = cat([1 - exp(-density[:, :-1] * dists), ones], -1)
    alpha = jnp.where(col < S - 1, 1.0 - jnp.exp(-density * dists), 1.0)

    # weights = alpha * exclusive_cumprod(1 + 1e-10 - alpha)
    # clamp keeps log() finite when alpha == 1 (torch's cumprod just hits 0).
    logv = jnp.log(jnp.maximum((1.0 + 1e-10) - alpha, 1e-10))
    trans = jnp.exp(jnp.dot(logv, tri_ref[...], preferred_element_type=f32))
    w = alpha * trans
    w_ref[...] = w

    r = jnp.sum(w * raw_ref[1], axis=-1, keepdims=True)
    g = jnp.sum(w * raw_ref[2], axis=-1, keepdims=True)
    b = jnp.sum(w * raw_ref[3], axis=-1, keepdims=True)
    depth = jnp.sum(w * z, axis=-1, keepdims=True)
    acc = jnp.sum(w, axis=-1, keepdims=True)
    # single merged output block (one HBM DMA) instead of five lane-1 arrays
    stats_ref[:, 0:1] = r
    stats_ref[:, 1:2] = g
    stats_ref[:, 2:3] = b
    stats_ref[:, 3:4] = depth
    stats_ref[:, 4:5] = acc


def _pick_tile_r(r, want):
    if r % 8 != 0 or r <= 8:
        return r
    t = max(8, (min(want, r) // 8) * 8)
    while r % t != 0:
        t -= 8
    return t


def run_raw2outputs(raw4, z_vals, dists, tri, *, tile_r=128):
    R, S = z_vals.shape
    tile_r = _pick_tile_r(R, tile_r)
    row = lambda c: pl.BlockSpec((tile_r, c), lambda i: (i, 0))
    return pl.pallas_call(
        raw2outputs_kernel,
        grid=(R // tile_r,),
        in_specs=[pl.BlockSpec((4, tile_r, S), lambda i: (0, i, 0)),
                  row(S), row(S),
                  pl.BlockSpec((S, S), lambda i: (0, 0))],
        out_specs=(row(S), row(5)),
        out_shape=(jax.ShapeDtypeStruct((R, S), jnp.float32),
                   jax.ShapeDtypeStruct((R, 5), jnp.float32)),
        compiler_params=pltpu.CompilerParams(dimension_semantics=("parallel",)),
    )(raw4, z_vals, dists, tri)


# ----------------------------------------------------------------------------
# Glue: embeddings, parameters, weight packing, forward(), plain-JAX reference.
# ----------------------------------------------------------------------------
def posenc(x, num_freqs):
    feats = [x]
    for i in range(num_freqs):
        feats.append(jnp.sin((2.0 ** i) * x))
        feats.append(jnp.cos((2.0 ** i) * x))
    return jnp.concatenate(feats, axis=-1)


def init_params(key, *, app_dim=32, c_pts=27, c_dirs=15, hidden_dim=64,
                geo_feat_dim=15):
    """Bias-free Linear weights (torch-default U(+-1/sqrt(fan_in))), math
    convention y = x @ W with W of shape (in, out)."""
    def uni(k, shape, fan_in):
        b = 1.0 / (fan_in ** 0.5)
        return jax.random.uniform(k, shape, jnp.float32, -b, b)

    ks = iter(jax.random.split(key, 16))
    in0 = app_dim + c_pts
    inc0 = geo_feat_dim + c_dirs
    return dict(
        w0f=uni(next(ks), (app_dim, hidden_dim), in0),        # sigma_net[0], fts rows
        w0p=uni(next(ks), (c_pts, hidden_dim), in0),          # sigma_net[0], pts rows
        w1=uni(next(ks), (hidden_dim, hidden_dim), hidden_dim),
        w2=uni(next(ks), (hidden_dim, 1 + geo_feat_dim), hidden_dim),
        wc0g=uni(next(ks), (geo_feat_dim, hidden_dim), inc0),  # color_net[0], geo rows
        wc0d=uni(next(ks), (c_dirs, hidden_dim), inc0),        # color_net[0], dirs rows
        wc1=uni(next(ks), (hidden_dim, hidden_dim), hidden_dim),
        wc2=uni(next(ks), (hidden_dim, hidden_dim), hidden_dim),
        wc3=uni(next(ks), (hidden_dim, 3), hidden_dim),
    )


def pack_params(p, dtype=jnp.bfloat16):
    """Pack the 9 logical weights into 2 transposed bf16 slabs for the kernel."""
    f32 = jnp.float32
    H = p["w1"].shape[0]
    A, Cp, Cd = p["w0f"].shape[0], p["w0p"].shape[0], p["wc0d"].shape[0]
    Cin = A + Cp + Cd

    # stacked layer 0: x=[fts|emb_pts|emb_dirs] -> [sigma hidden0 | dirs@wc0d]
    w0 = jnp.zeros((Cin, 2 * H), f32)
    w0 = w0.at[0:A, 0:H].set(p["w0f"])
    w0 = w0.at[A:A + Cp, 0:H].set(p["w0p"])
    w0 = w0.at[A + Cp:Cin, H:2 * H].set(p["wc0d"])
    w0T = w0.T.astype(dtype)                                   # (2H, Cin)

    def padT(m):                                               # (in,out) -> (H,H) holding m.T
        z = jnp.zeros((H, H), f32)
        return z.at[:m.shape[1], :m.shape[0]].set(m.T)

    # zero first row of wc0h -> the sigma channel of h2 is ignored by color_net[0]
    wc0h = jnp.concatenate([jnp.zeros((1, H), f32), p["wc0g"]], axis=0)
    slab = jnp.stack([padT(p["w1"]), padT(p["w2"]), padT(wc0h),
                      padT(p["wc1"]), padT(p["wc2"]), padT(p["wc3"])]).astype(dtype)
    return w0T, slab


def nerf_small_voxel_forward(packed_params, pts, viewdirs, fts, pts_embed,
                             dirs_embed, z_vals, rays_d, raw_noise_std=0.0,
                             is_train=True, *, tile_n=2048, tile_r=128):
    w0T, wslab = packed_params
    R, S, _ = pts.shape
    N = R * S
    bf16 = jnp.bfloat16

    # Transposed, lane-dense MLP input (features on sublanes, points on lanes).
    # viewdirs are constant along a ray, so embed at (R,.) and broadcast.
    ftsT = fts.reshape(N, -1).astype(bf16).T                          # (app_dim, N)
    locsT = pts_embed(pts.reshape(N, -1)).astype(bf16).T              # (c_pts, N)
    dembT = dirs_embed(viewdirs).astype(bf16).T                       # (c_dirs, R)
    dirsT = jnp.broadcast_to(dembT[:, :, None],
                             (dembT.shape[0], R, S)).reshape(-1, N)   # (c_dirs, N)
    xT = jnp.concatenate([ftsT, locsT, dirsT], axis=0)                # (C_in, N)
    assert xT.shape[0] == w0T.shape[1], (xT.shape, w0T.shape)

    raw4T = run_point_mlp(xT, w0T, wslab, tile_n=tile_n)              # (4, N)
    raw4 = raw4T.reshape(4, R, S)                                     # free reshape

    # TODO(synk): raw_noise_std > 0 noise injection and the eval-time
    # render_rmnearplane masking are not implemented (module defaults: 0 / train).
    z_next = jnp.concatenate([z_vals[:, 1:], z_vals[:, -1:]], axis=-1)
    dists = (z_next - z_vals) * jnp.linalg.norm(rays_d, axis=-1, keepdims=True)
    tri = (jnp.arange(S)[:, None] < jnp.arange(S)[None, :]).astype(jnp.float32)

    weights, stats = run_raw2outputs(raw4, z_vals, dists, tri, tile_r=tile_r)
    rgb_map = stats[:, 0:3]
    depth_map = stats[:, 3]
    acc_map = stats[:, 4]
    return rgb_map, depth_map, acc_map, weights


def reference_forward(params, pts, viewdirs, fts, pts_embed, dirs_embed,
                      z_vals, rays_d):
    """Plain-JAX replica of NeRFSmall_voxel.forward (matched bf16 casts)."""
    f32, bf16 = jnp.float32, jnp.bfloat16
    R, S, _ = pts.shape
    N = R * S

    locs = pts_embed(pts.reshape(N, 3)).astype(bf16)
    dirs = dirs_embed(jnp.broadcast_to(viewdirs[:, None, :], (R, S, 3)
                                       ).reshape(N, 3)).astype(bf16)
    x_fts = fts.reshape(N, -1).astype(bf16)

    dot = lambda a, b: jnp.dot(a, b.astype(bf16), preferred_element_type=f32)
    h = dot(x_fts, params["w0f"]) + dot(locs, params["w0p"])
    h = jnp.maximum(h, 0.0).astype(bf16)
    h = jnp.maximum(dot(h, params["w1"]), 0.0).astype(bf16)
    h = dot(h, params["w2"])
    sigma = h[:, 0].reshape(R, S)
    geo = h[:, 1:].astype(bf16)

    hc = dot(geo, params["wc0g"]) + dot(dirs, params["wc0d"])
    hc = jnp.maximum(hc, 0.0).astype(bf16)
    hc = jnp.maximum(dot(hc, params["wc1"]), 0.0).astype(bf16)
    hc = jnp.maximum(dot(hc, params["wc2"]), 0.0).astype(bf16)
    color = jax.nn.sigmoid(dot(hc, params["wc3"])).reshape(R, S, 3)

    dists = (z_vals[:, 1:] - z_vals[:, :-1]) * jnp.linalg.norm(
        rays_d, axis=-1, keepdims=True)
    density = jnp.maximum(sigma[:, :-1], 0.0)
    alpha = 1.0 - jnp.exp(-density * dists)
    alpha = jnp.concatenate([alpha, jnp.ones((R, 1), f32)], axis=-1)
    trans = jnp.cumprod(
        jnp.concatenate([jnp.ones((R, 1), f32), 1.0 + 1e-10 - alpha], axis=-1),
        axis=-1)[:, :-1]
    weights = alpha * trans
    rgb_map = jnp.sum(weights[:, :, None] * color, axis=-2)
    depth_map = jnp.sum(weights * z_vals, axis=-1)
    acc_map = jnp.sum(weights, axis=-1)
    return rgb_map, depth_map, acc_map, weights


if __name__ == "__main__":
    key = jax.random.PRNGKey(0)
    R, S = 64, 32                      # rays, samples per ray -> 2048 points
    app_dim = 32                       # voxel appearance feature dim (fts input)
    L_pts, L_dirs = 4, 2
    c_pts = 3 * (1 + 2 * L_pts)        # 27
    c_dirs = 3 * (1 + 2 * L_dirs)      # 15
    hidden_dim, geo_feat_dim = 64, 15

    k1, k2, k3, k4, k5, kp = jax.random.split(key, 6)
    pts = jax.random.uniform(k1, (R, S, 3), jnp.float32, -1.0, 1.0)
    viewdirs = jax.random.normal(k2, (R, 3), jnp.float32)
    viewdirs = viewdirs / jnp.linalg.norm(viewdirs, axis=-1, keepdims=True)
    fts = 0.1 * jax.random.normal(k3, (R, S, app_dim), jnp.float32)
    z_vals = jnp.sort(jax.random.uniform(k4, (R, S), jnp.float32, 2.0, 6.0), axis=-1)
    rays_d = jax.random.normal(k5, (R, 3), jnp.float32)

    params = init_params(kp, app_dim=app_dim, c_pts=c_pts, c_dirs=c_dirs,
                         hidden_dim=hidden_dim, geo_feat_dim=geo_feat_dim)
    packed = pack_params(params)

    pts_embed = lambda x: posenc(x, L_pts)
    dirs_embed = lambda x: posenc(x, L_dirs)

    # tile_n=1024 / tile_r=32 keep both grids length-2 at this tiny test size
    # (feeds both v7x TensorCores); defaults are larger for real workloads.
    outs = nerf_small_voxel_forward(packed, pts, viewdirs, fts, pts_embed,
                                    dirs_embed, z_vals, rays_d,
                                    raw_noise_std=0.0, is_train=True,
                                    tile_n=1024, tile_r=32)
    outs = jax.block_until_ready(outs)

    ref = reference_forward(params, pts, viewdirs, fts, pts_embed, dirs_embed,
                            z_vals, rays_d)
    for name, got, want in zip(("rgb_map", "depth_map", "acc_map", "weights"),
                               outs, ref):
        assert got.shape == want.shape, (name, got.shape, want.shape)
        err = float(jnp.max(jnp.abs(got - want)))
        tol = 5e-2 * (1.0 + float(jnp.max(jnp.abs(want))))
        assert err <= tol, f"{name}: max|diff|={err:.4g} > tol={tol:.4g}"

    print("KERNEL_OK")
</pallas_src>

<mosaic_0001>
module attributes {stable_mosaic.version = 11 : i64} {
  func.func @point_mlp_kernel(%arg0: i32, %arg1: memref<74x1024xbf16, #tpu.memory_space<vmem>>, %arg2: memref<128x74xbf16, #tpu.memory_space<vmem>>, %arg3: memref<6x64x64xbf16, #tpu.memory_space<vmem>>, %arg4: memref<4x1024xf32, #tpu.memory_space<vmem>>) attributes {dimension_semantics = [#tpu.dimension_semantics<parallel>], iteration_bounds = array<i64: 2>, scalar_prefetch = 0 : i64, scratch_operands = 0 : i64, tpu.core_type = #tpu.core_type<tc>, window_params = [{transform_indices = @transform_0, window_bounds = array<i64: 74, 1024>}, {pipeline_mode = #tpu.pipeline_mode<synchronous>, transform_indices = @transform_1, window_bounds = array<i64: 128, 74>}, {pipeline_mode = #tpu.pipeline_mode<synchronous>, transform_indices = @transform_2, window_bounds = array<i64: 6, 64, 64>}, {transform_indices = @transform_3, window_bounds = array<i64: 4, 1024>}]} {
    %c0 = arith.constant 0 : index
    %c0_0 = arith.constant 0 : index
    %0 = vector.load %arg1[%c0, %c0_0] : memref<74x1024xbf16, #tpu.memory_space<vmem>>, vector<74x1024xbf16>
    %c0_1 = arith.constant 0 : index
    %c0_2 = arith.constant 0 : index
    %1 = vector.load %arg2[%c0_1, %c0_2] : memref<128x74xbf16, #tpu.memory_space<vmem>>, vector<128x74xbf16>
    %cst = arith.constant dense<0.000000e+00> : vector<128x1024xf32>
    %2 = tpu.matmul %1, %0, %cst {dimension_numbers = #tpu.dot_dimension_numbers<[1], [0], [0], [1], [0, 0, 1, 1], [], []>} : vector<128x74xbf16>, vector<74x1024xbf16>, vector<128x1024xf32> -> vector<128x1024xf32>
    %3 = vector.extract_strided_slice %2 {offsets = [0, 0], sizes = [64, 1024], strides = [1, 1]} : vector<128x1024xf32> to vector<64x1024xf32>
    %cst_3 = arith.constant 0.000000e+00 : f32
    %4 = vector.broadcast %cst_3 : f32 to vector<64x1024xf32>
    %5 = arith.maximumf %3, %4 : vector<64x1024xf32>
    %6 = arith.truncf %5 : vector<64x1024xf32> to vector<64x1024xbf16>
    %7 = vector.extract_strided_slice %2 {offsets = [64, 0], sizes = [64, 1024], strides = [1, 1]} : vector<128x1024xf32> to vector<64x1024xf32>
    %c0_4 = arith.constant 0 : index
    %c0_5 = arith.constant 0 : index
    %c0_6 = arith.constant 0 : index
    %8 = vector.load %arg3[%c0_4, %c0_5, %c0_6] : memref<6x64x64xbf16, #tpu.memory_space<vmem>>, vector<1x64x64xbf16>
    %9 = vector.shape_cast %8 : vector<1x64x64xbf16> to vector<64x64xbf16>
    %cst_7 = arith.constant dense<0.000000e+00> : vector<64x1024xf32>
    %10 = tpu.matmul %9, %6, %cst_7 {dimension_numbers = #tpu.dot_dimension_numbers<[1], [0], [0], [1], [0, 0, 1, 1], [], []>} : vector<64x64xbf16>, vector<64x1024xbf16>, vector<64x1024xf32> -> vector<64x1024xf32>
    %cst_8 = arith.constant 0.000000e+00 : f32
    %11 = vector.broadcast %cst_8 : f32 to vector<64x1024xf32>
    %12 = arith.maximumf %10, %11 : vector<64x1024xf32>
    %13 = arith.truncf %12 : vector<64x1024xf32> to vector<64x1024xbf16>
    %c1 = arith.constant 1 : index
    %c0_9 = arith.constant 0 : index
    %c0_10 = arith.constant 0 : index
    %14 = vector.load %arg3[%c1, %c0_9, %c0_10] : memref<6x64x64xbf16, #tpu.memory_space<vmem>>, vector<1x64x64xbf16>
    %15 = vector.shape_cast %14 : vector<1x64x64xbf16> to vector<64x64xbf16>
    %cst_11 = arith.constant dense<0.000000e+00> : vector<64x1024xf32>
    %16 = tpu.matmul %15, %13, %cst_11 {dimension_numbers = #tpu.dot_dimension_numbers<[1], [0], [0], [1], [0, 0, 1, 1], [], []>} : vector<64x64xbf16>, vector<64x1024xbf16>, vector<64x1024xf32> -> vector<64x1024xf32>
    %17 = vector.extract_strided_slice %16 {offsets = [0, 0], sizes = [1, 1024], strides = [1, 1]} : vector<64x1024xf32> to vector<1x1024xf32>
    %c0_12 = arith.constant 0 : index
    %c0_13 = arith.constant 0 : index
    %18 = vector.load %arg4[%c0_12, %c0_13] : memref<4x1024xf32, #tpu.memory_space<vmem>>, vector<1x1024xf32>
    tpu.vector_store %arg4[%c0_12, %c0_13], %17 {strides = array<i32>} : memref<4x1024xf32, #tpu.memory_space<vmem>>, vector<1x1024xf32>,
    %c2 = arith.constant 2 : index
    %c0_14 = arith.constant 0 : index
    %c0_15 = arith.constant 0 : index
    %19 = vector.load %arg3[%c2, %c0_14, %c0_15] : memref<6x64x64xbf16, #tpu.memory_space<vmem>>, vector<1x64x64xbf16>
    %20 = vector.shape_cast %19 : vector<1x64x64xbf16> to vector<64x64xbf16>
    %21 = arith.truncf %16 : vector<64x1024xf32> to vector<64x1024xbf16>
    %cst_16 = arith.constant dense<0.000000e+00> : vector<64x1024xf32>
    %22 = tpu.matmul %20, %21, %cst_16 {dimension_numbers = #tpu.dot_dimension_numbers<[1], [0], [0], [1], [0, 0, 1, 1], [], []>} : vector<64x64xbf16>, vector<64x1024xbf16>, vector<64x1024xf32> -> vector<64x1024xf32>
    %23 = arith.addf %22, %7 : vector<64x1024xf32>
    %cst_17 = arith.constant 0.000000e+00 : f32
    %24 = vector.broadcast %cst_17 : f32 to vector<64x1024xf32>
    %25 = arith.maximumf %23, %24 : vector<64x1024xf32>
    %26 = arith.truncf %25 : vector<64x1024xf32> to vector<64x1024xbf16>
    %c3 = arith.constant 3 : index
    %c0_18 = arith.constant 0 : index
    %c0_19 = arith.constant 0 : index
    %27 = vector.load %arg3[%c3, %c0_18, %c0_19] : memref<6x64x64xbf16, #tpu.memory_space<vmem>>, vector<1x64x64xbf16>
    %28 = vector.shape_cast %27 : vector<1x64x64xbf16> to vector<64x64xbf16>
    %cst_20 = arith.constant dense<0.000000e+00> : vector<64x1024xf32>
    %29 = tpu.matmul %28, %26, %cst_20 {dimension_numbers = #tpu.dot_dimension_numbers<[1], [0], [0], [1], [0, 0, 1, 1], [], []>} : vector<64x64xbf16>, vector<64x1024xbf16>, vector<64x1024xf32> -> vector<64x1024xf32>
    %cst_21 = arith.constant 0.000000e+00 : f32
    %30 = vector.broadcast %cst_21 : f32 to vector<64x1024xf32>
    %31 = arith.maximumf %29, %30 : vector<64x1024xf32>
    %32 = arith.truncf %31 : vector<64x1024xf32> to vector<64x1024xbf16>
    %c4 = arith.constant 4 : index
    %c0_22 = arith.constant 0 : index
    %c0_23 = arith.constant 0 : index
    %33 = vector.load %arg3[%c4, %c0_22, %c0_23] : memref<6x64x64xbf16, #tpu.memory_space<vmem>>, vector<1x64x64xbf16>
    %34 = vector.shape_cast %33 : vector<1x64x64xbf16> to vector<64x64xbf16>
    %cst_24 = arith.constant dense<0.000000e+00> : vector<64x1024xf32>
    %35 = tpu.matmul %34, %32, %cst_24 {dimension_numbers = #tpu.dot_dimension_numbers<[1], [0], [0], [1], [0, 0, 1, 1], [], []>} : vector<64x64xbf16>, vector<64x1024xbf16>, vector<64x1024xf32> -> vector<64x1024xf32>
    %cst_25 = arith.constant 0.000000e+00 : f32
    %36 = vector.broadcast %cst_25 : f32 to vector<64x1024xf32>
    %37 = arith.maximumf %35, %36 : vector<64x1024xf32>
    %38 = arith.truncf %37 : vector<64x1024xf32> to vector<64x1024xbf16>
    %c5 = arith.constant 5 : index
    %c0_26 = arith.constant 0 : index
    %c0_27 = arith.constant 0 : index
    %39 = vector.load %arg3[%c5, %c0_26, %c0_27] : memref<6x64x64xbf16, #tpu.memory_space<vmem>>, vector<1x64x64xbf16>
    %40 = vector.shape_cast %39 : vector<1x64x64xbf16> to vector<64x64xbf16>
    %cst_28 = arith.constant dense<0.000000e+00> : vector<64x1024xf32>
    %41 = tpu.matmul %40, %38, %cst_28 {dimension_numbers = #tpu.dot_dimension_numbers<[1], [0], [0], [1], [0, 0, 1, 1], [], []>} : vector<64x64xbf16>, vector<64x1024xbf16>, vector<64x1024xf32> -> vector<64x1024xf32>
    %42 = vector.extract_strided_slice %41 {offsets = [0, 0], sizes = [3, 1024], strides = [1, 1]} : vector<64x1024xf32> to vector<3x1024xf32>
    %43 = arith.negf %42 : vector<3x1024xf32>
    %44 = math.exp %43 : vector<3x1024xf32>
    %cst_29 = arith.constant 1.000000e+00 : f32
    %45 = vector.broadcast %cst_29 : f32 to vector<3x1024xf32>
    %46 = arith.addf %45, %44 : vector<3x1024xf32>
    %47 = arith.divf %45, %46 : vector<3x1024xf32>
    %c1_30 = arith.constant 1 : index
    %c0_31 = arith.constant 0 : index
    %48 = vector.load %arg4[%c1_30, %c0_31] : memref<4x1024xf32, #tpu.memory_space<vmem>>, vector<3x1024xf32>
    tpu.vector_store %arg4[%c1_30, %c0_31], %47 {strides = array<i32>} : memref<4x1024xf32, #tpu.memory_space<vmem>>, vector<3x1024xf32>,
    return
  }
  func.func @transform_0(%arg0: i32) -> (i32, i32) {
    %c0_i32 = arith.constant 0 : i32
    %c0_i32_0 = arith.constant 0 : i32
    return %c0_i32, %arg0 : i32, i32
  }
  func.func @transform_1(%arg0: i32) -> (i32, i32) {
    %c0_i32 = arith.constant 0 : i32
    %c0_i32_0 = arith.constant 0 : i32
    %c0_i32_1 = arith.constant 0 : i32
    return %c0_i32, %c0_i32_0 : i32, i32
  }
  func.func @transform_2(%arg0: i32) -> (i32, i32, i32) {
    %c0_i32 = arith.constant 0 : i32
    %c0_i32_0 = arith.constant 0 : i32
    %c0_i32_1 = arith.constant 0 : i32
    %c0_i32_2 = arith.constant 0 : i32
    return %c0_i32, %c0_i32_0, %c0_i32_1 : i32, i32, i32
  }
  func.func @transform_3(%arg0: i32) -> (i32, i32) {
    %c0_i32 = arith.constant 0 : i32
    %c0_i32_0 = arith.constant 0 : i32
    return %c0_i32, %arg0 : i32, i32
  }
}

</mosaic_0001>

<bundles_post_ra>
// kernel: tpu_custom_call.1
= control target key start
LH: loop header
LB: loop body
LE: loop exit
PB: predicated region body
PF: predicated region fallthrough
CT: control target
= control target key end

     0   :  { %8 = vsyncpa [#allocation3], 0  ;;  %s5521_s0 = inlined_call_operand.hbm [shape: bf16[74,2048], index: 0, kind: input, shape index: {}]   ;;  %s5522_s1 = inlined_call_operand.vmem [shape: bf16[128,74], index: 1, kind: input, shape index: {}]   ;;  %s5523_s2 = inlined_call_operand.hbm [shape: bf16[6,64,64], index: 2, kind: input, shape index: {}]   ;;  %s5524_s3 = inlined_call_operand.hbm [shape: f32[4,2048], index: 3, kind: output, shape index: {}]  }
   0x1   :  { %10 = vsyncpa [#allocation3 + $0x1], 0 }
   0x2   :  { %11 = vsyncpa [#allocation6], 0 }
   0x3   :  { %12 = vsyncpa [#allocation4], 0 }
   0x4   :  { %14 = vsyncpa [#allocation4 + $0x1], 0  ;;  %s4189_s12 = smov 0   ;;  %s4191_s13 = smov 0  }
   0x5   :  { %s4193_s14 = smov 0   ;;  %s4195_s15 = smov 0  }
   0x6 LB: > { %s4210_s16 = sadd.s32 4294967295, %s4157_s15   ;;  %s3677_s17 = sadd.s32 4294967294, %s4157_s15   ;;  %s4157_s15 = sphi %s4195_s15, %s5661_s15   ;;  %s4153_s14 = sphi %s4193_s14, %s5660_s14   ;;  %s4149_s13 = sphi %s4191_s13, %s5659_s13   ;;  %s4145_s12 = sphi %s4189_s12, %s5658_s12  }
   0x7   : > { %s4214_s18 = sadd.s32 1, %s4157_s15   ;;  %s27_s19 = sadd.s32 1, %s4153_s14 }
   0x8   : > { %s24_s20 = ssub.s32 %s4157_s15, %s4214_s18  ;;  %p34_p0 = scmp.ne.s32.totalorder %s4153_s14, %s4149_s13 }
   0x9   : > { %p25_p1 = scmp.eq.s32.totalorder %s24_s20, 0  ;;  %p35_p2 = scmp.eq.s32.totalorder %s4157_s15, 0 }
   0xa   : > { %p40_p3 = scmp.ne.s32.totalorder %s4149_s13, %s4145_s12  ;;  %p5528_p4 = scmp.eq.s32.totalorder %s4210_s16, 0 }
   0xb   : > { %s4226_s21 = scalar_select %p25_p1, %s4153_s14, %s27_s19  }
   0xc   : > { %p4228_p5 = por %p35_p2, %p34_p0  ;;  %p4234_p6 = por %p5528_p4, %p40_p3 }
   0xd   : > { %p106_p7 = scmp.eq.s32.totalorder %s4210_s16, 1  ;;  %p112_p8 = scmp.eq.s32.totalorder %s3677_s17, 1 }
   0xe   : > { %s5532_s23 = scalar_select %p4234_p6, 1, 0 }
   0xf   : > { %p3678_p9 = scmp.ge.s32.totalorder %s4157_s15, 1  ;;  %p119_p10 = scmp.lt.s32.totalorder %s4157_s15, 3 }
  0x10   : > { %p4241_p11 = por %p106_p7, %p34_p0  ;;  %p4245_p12 = por %p112_p8, %p40_p3 }
  0x11   : > { %p4249_p13 = pnand %p3678_p9, %p119_p10  ;;  %s4159_s27 = smov [#allocation5]  }
  0x12   : > { %s5533_s24 = scalar_select %p4241_p11, 1, 0 }
  0x13   : > { %s5534_s25 = scalar_select %p4245_p12, 1, 0 }
  0x14   : > { %s5535_s26 = scalar_select %p4249_p13, 1, 0 }
  0x15   : > { %p3915_p1 = pneg %p4249_p13  ;;  %s134_s28 = sshll.u32 %s4159_s27, 4  ;;  %s135_s28 = int_to_ptr.vmem [resolvable:$true] %s134_s28 }
  0x16   : > { %p3928_p3 = scmp.lt.s32.totalorder %s4157_s15, 2  ;;  %s148_s30 = sand.u32 1, %s4153_s14  }
  0x17   : > { %p4257_p2 = pnand %p3915_p1, %p5528_p4  ;;  %s4046_s4 = scalar_lea.vmem %s135_s28, 3072 }
  0x18   : > { %p4047_p8 = scmp.ne.s32.totalorder %s135_s28, %s4046_s4  ;;  %p4054_p12 = scmp.lt.s32.totalorder %s135_s28, %s135_s28 }
  0x19   : > { %p4037_p7 = pneg %p4257_p2  ;;  %p4055_p11 = scmp.lt.s32.totalorder %s4046_s4, %s4046_s4 }
  0x1b   : > { %p4049_p9 = pnand %p4047_p8, %p4037_p7  ;;  %p4056_p6 = por %p4055_p11, %p4054_p12 }
  0x1d   : > { %p4050_p10 = pneg %p4049_p9 }
  0x1f   : > { %p4057_p13 = pnand %p4056_p6, %p4050_p10 }
  0x21   : > { %4060 = shalt.err (!%p4057_p13)
}
  0x22   : > { %s4160_s5 = smov 64   ;;  %s4161_s6 = smov 4  }
  0x23   : > { %3918 = dma.hbm_to_vmem [thread:$0]  (!%p4257_p2), %s5523_s2, 3072, %s135_s28, [#allocation6], %s4160_s5, %s4160_s5, %s4161_s6  }
  0x24   : > { %p4275_p1 = pnand %p3928_p3, %p4228_p5  ;;  %s3905_s10 = smul.u32 320, %s148_s30 }
  0x25   : > { %s3903_s11 = sshll.u32 %s4157_s15, 9  ;;  %s4287_s22 = scalar_lea.sflag [#allocation3], %s148_s30 }
  0x26   : > { %s4283_s20 = scalar_lea.hbm %s5521_s0, %s3903_s11  ;;  %s152_s27 = scalar_lea.vmem [#allocation2], %s3905_s10 }
  0x27   : > { %s159_s29 = sshll.u32 %s152_s27, 4  ;;  %s4061_s28 = scalar_lea.hbm %s4283_s20, 5120  ;;  %s4285_s29 = int_to_ptr.vmem [resolvable:$true] %s159_s29 }
  0x28   : > { %p4062_p5 = scmp.ne.s32.totalorder %s4283_s20, %s4061_s28  ;;  %p4063_p6 = pneg %p4275_p1 }
  0x29   : > { %s4066_s6 = scalar_lea.hbm %s5521_s0, 10240  ;;  %p4067_p13 = scmp.lt.s32.totalorder %s4283_s20, %s5521_s0 }
  0x2a   : > { %p4064_p11 = pnand %p4063_p6, %p4062_p5  ;;  %p4068_p2 = scmp.lt.s32.totalorder %s4066_s6, %s4061_s28 }
  0x2c   : > { %p4065_p12 = pneg %p4064_p11  ;;  %p4069_p3 = por %p4068_p2, %p4067_p13 }
  0x2e   : > { %p4070_p7 = pnand %p4069_p3, %p4065_p12 }
  0x30   : > { %4073 = shalt.err (!%p4070_p7)
}
  0x31   : > { %s4074_s30 = scalar_lea.vmem %s4285_s29, 5120  ;;  %s4162_s10 = smov [#allocation2]  }
  0x32   : > { %p4075_p8 = scmp.ne.s32.totalorder %s4285_s29, %s4074_s30  ;;  %s4079_s11 = sshll.u32 %s4162_s10, 4  ;;  %s4080_s11 = int_to_ptr.vmem [resolvable:$false] %s4079_s11 }
  0x33   : > { %s4081_s17 = scalar_lea.vmem %s4080_s11, 10240  ;;  %p4082_p5 = scmp.lt.s32.totalorder %s4285_s29, %s4080_s11 }
  0x34   : > { %p4077_p9 = pnand %p4075_p8, %p4063_p6  ;;  %p4083_p11 = scmp.lt.s32.totalorder %s4081_s17, %s4074_s30 }
  0x36   : > { %p4078_p10 = pneg %p4077_p9  ;;  %p4084_p0 = por %p4083_p11, %p4082_p5 }
  0x38   : > { %p4085_p4 = pnand %p4084_p0, %p4078_p10 }
  0x3a   : > { %4088 = shalt.err (!%p4085_p4)
}
  0x3b   : > { %s4163_s19 = smov 1024   ;;  %s4164_s27 = smov 512  }
  0x3c   : > { %s4165_s28 = smov 32   ;;  %p5538_p6 = scmp.ne.s32.totalorder %s5535_s26, 0 }
  0x3d   : > { %3922 = dma.hbm_to_vmem [thread:$0]  (!%p4275_p1), %s4283_s20, 5120, %s4285_s29, %s4287_s22, %s4163_s19, %s4164_s27, %s4165_s28  }
  0x3e   : > { %171 = sbr.rel (%p5538_p6) target bundleno = 1866 (0x74a), region = 32 }
  0x43   : > { %s4311_s4 = sand.u32 1, %s4149_s13   ;;  %p5539_p4 = scmp.ne.s32.totalorder %s5532_s23, 0 }
  0x44   : > { %s3906_s5 = smul.u32 320, %s4311_s4  ;;  %s174_s6 = scalar_lea.sflag [#allocation3], %s4311_s4 }
  0x46   : > { %s4315_s7 = scalar_lea.vmem [#allocation2], %s3906_s5 }
  0x47   : > { %4132 = dma.done.wait (%p5539_p4), %s174_s6, 5120  }
  0x48   : > { %4134 = vsyncadd (%p5539_p4), %s174_s6, 4294962176  ;;  %p5540_p0 = scmp.eq.s32.totalorder %s4210_s16, 0 }
  0x4a   : > { %4136 = dma.done.wait (%p5540_p0), [#allocation6], 3072   ;;  %p5541_p1 = pmov %p5540_p0 }
  0x4b   : > { %v5529_v0 = vmov 0   ;;  %v239_v1 = vld [vmem:[%s4315_s7 + $0x100] sm:$0xff]  ;;  %vm520_vm0 = vcmask 1044480   ;;  %v240_v3 = vld [vmem:[%s4315_s7 + $0x108] sm:$0xff]  ;;  %v241_v38 = vld [vmem:[%s4315_s7 + $0x110] sm:$0xff]  ;;  %vm495_vm1 = vcmask 605184  }
  0x4c   : > { %4138 = vsyncadd (%p5541_p1), [#allocation6], 4294964224  ;;  %577 = vmatprep.mubr.bf16.mxu0 %v5529_v0  ;;  %690 = vmatprep.mubr.bf16.mxu1 %v5529_v0  ;;  %v243_v2 = vld [vmem:[%s4315_s7 + $0x120] sm:$0x11]  ;;  %v244_v5 = vld [vmem:[%s4315_s7 + $0x128] sm:$0x11] }
  0x4d   : > { %v3727_v4 = vcombine.high %v239_v1, %v243_v2  ;;  %v3726_v6 = vcombine.low %v239_v1, %v243_v2  ;;  %v231_v7 = vld [vmem:[%s4315_s7 + $0xc0] sm:$0xff]  ;;  %v3729_v9 = vcombine.high %v240_v3, %v244_v5  ;;  %v3728_v10 = vcombine.low %v240_v3, %v244_v5  ;;  %v232_v12 = vld [vmem:[%s4315_s7 + $0xc8] sm:$0xff]  ;;  %v245_v39 = vld [vmem:[%s4315_s7 + $0x130] sm:$0x11]  ;;  %s3904_s26 = sshll.u32 %s4210_s16, 9  ;;  %s3583_s8 = scalar_lea.sflag [#allocation4], %s4311_s4 }
  0x4e   : > { %v235_v8 = vld [vmem:[%s4315_s7 + $0xe0] sm:$0xff]  ;;  %v236_v13 = vld [vmem:[%s4315_s7 + $0xe8] sm:$0xff]  ;;  %v242_v42 = vld [vmem:[%s4315_s7 + $0x118] sm:$0xff]  ;;  %v3730_v46 = vcombine.low %v241_v38, %v245_v39  ;;  %v3731_v48 = vcombine.high %v241_v38, %v245_v39  ;;  %vm1121_vm2 = vcmask 523264   ;;  %s5482_s22 = scalar_lea.hbm %s5524_s3, %s3904_s26  ;;  %p5655_p13 = scmp.ne.s32.totalorder %s5533_s24, 0 }
  0x4f   : > { %v3719_v11 = vcombine.high %v231_v7, %v235_v8  ;;  %v223_v14 = vld [vmem:[%s4315_s7 + $0x80] sm:$0xff]  ;;  %3734 = vmatprep.subr.msk.bf16.mxu0 %vm520_vm0, %v3727_v4  ;;  %v522_v15 = vsel %vm520_vm0, %v3726_v6, 0  ;;  %v3721_v16 = vcombine.high %v232_v12, %v236_v13  ;;  %v224_v18 = vld [vmem:[%s4315_s7 + $0x88] sm:$0xff]  ;;  %3743 = vmatprep.subr.msk.bf16.mxu1 %vm520_vm0, %v3729_v9  ;;  %v528_v20 = vsel %vm520_vm0, %v3728_v10, 0  ;;  %v246_v43 = vld [vmem:[%s4315_s7 + $0x138] sm:$0x11] }
  0x50   : > { %v227_v17 = vld [vmem:[%s4315_s7 + $0xa0] sm:$0xff]  ;;  %v228_v19 = vld [vmem:[%s4315_s7 + $0xa8] sm:$0xff]  ;;  %552 = vmatpush1.bf16.msra.mxu0 %v522_v15  ;;  %v3718_v21 = vcombine.low %v231_v7, %v235_v8  ;;  %665 = vmatpush1.bf16.msra.mxu1 %v528_v20  ;;  %v3720_v22 = vcombine.low %v232_v12, %v236_v13  ;;  %v3732_v49 = vcombine.low %v242_v42, %v246_v43  ;;  %v233_v52 = vld [vmem:[%s4315_s7 + $0xd0] sm:$0xff]  ;;  %v534_v54 = vsel %vm520_vm0, %v3730_v46, 0  ;;  %s4168_s10 = smov [#allocation7]  }
  0x51   : > { %553 = vmatprep.subr.bf16.mxu0 %v3719_v11  ;;  %v3711_v23 = vcombine.high %v223_v14, %v227_v17  ;;  %v215_v24 = vld [vmem:[%s4315_s7 + $0x40] sm:$0xff]  ;;  %666 = vmatprep.subr.bf16.mxu1 %v3721_v16  ;;  %v3713_v25 = vcombine.high %v224_v18, %v228_v19  ;;  %v216_v27 = vld [vmem:[%s4315_s7 + $0x48] sm:$0xff]  ;;  %v3710_v29 = vcombine.low %v223_v14, %v227_v17  ;;  %v237_v53 = vld [vmem:[%s4315_s7 + $0xf0] sm:$0xff]  ;;  %s4093_s16 = sshll.u32 %s4168_s10, 4  ;;  %s4094_s16 = int_to_ptr.vmem [resolvable:$false] %s4093_s16 }
  0x52   : > { %v219_v26 = vld [vmem:[%s4315_s7 + $0x60] sm:$0xff]  ;;  %v220_v28 = vld [vmem:[%s4315_s7 + $0x68] sm:$0xff]  ;;  %v3712_v30 = vcombine.low %v224_v18, %v228_v19  ;;  %v3733_v51 = vcombine.high %v242_v42, %v246_v43  ;;  %v234_v55 = vld [vmem:[%s4315_s7 + $0xd8] sm:$0xff]  ;;  %v540_v57 = vsel %vm520_vm0, %v3732_v49, 0  ;;  %v3723_v60 = vcombine.high %v233_v52, %v237_v53  ;;  %s4095_s11 = scalar_lea.vmem %s4094_s16, 1024 }
  0x53   : > { %v3703_v31 = vcombine.high %v215_v24, %v219_v26  ;;  %v3705_v32 = vcombine.high %v216_v27, %v220_v28  ;;  %v207_v33 = vld [vmem:[%s4315_s7] sm:$0xff]  ;;  %v208_v35 = vld [vmem:[%s4315_s7 + $0x8] sm:$0xff]  ;;  %v3702_v37 = vcombine.low %v215_v24, %v219_v26  ;;  %v3704_v40 = vcombine.low %v216_v27, %v220_v28  ;;  %v238_v56 = vld [vmem:[%s4315_s7 + $0xf8] sm:$0xff] }
  0x54   : > { %554 = vmatpush1.bf16.msra.mxu0 %v3718_v21  ;;  %667 = vmatpush1.bf16.msra.mxu1 %v3720_v22  ;;  %v211_v34 = vld [vmem:[%s4315_s7 + $0x20] sm:$0xff]  ;;  %v212_v36 = vld [vmem:[%s4315_s7 + $0x28] sm:$0xff]  ;;  %v225_v58 = vld [vmem:[%s4315_s7 + $0x90] sm:$0xff]  ;;  %v3725_v63 = vcombine.high %v234_v55, %v238_v56  ;;  %v3722_v2 = vcombine.low %v233_v52, %v237_v53  ;;  %v3724_v5 = vcombine.low %v234_v55, %v238_v56 }
  0x55   : > { %555 = vmatprep.subr.bf16.mxu0 %v3711_v23  ;;  %668 = vmatprep.subr.bf16.mxu1 %v3713_v25  ;;  %v3695_v41 = vcombine.high %v207_v33, %v211_v34  ;;  %v3697_v44 = vcombine.high %v208_v35, %v212_v36  ;;  %v3694_v45 = vcombine.low %v207_v33, %v211_v34  ;;  %v4358_v50 = vld [vmem:[%s5522_s1] sm:$0xff]   ;;  %v229_v59 = vld [vmem:[%s4315_s7 + $0xb0] sm:$0xff]  ;;  %v226_v61 = vld [vmem:[%s4315_s7 + $0x98] sm:$0xff] }
  0x56   : > { %v3696_v47 = vcombine.low %v208_v35, %v212_v36  ;;  %v230_v62 = vld [vmem:[%s4315_s7 + $0xb8] sm:$0xff]  ;;  %v4381_v1 = vld [vmem:[%s5522_s1 + $0x8] sm:$0xff]   ;;  %v217_v3 = vld [vmem:[%s4315_s7 + $0x50] sm:$0xff]  ;;  %v3715_v6 = vcombine.high %v225_v58, %v229_v59  ;;  %v3714_v10 = vcombine.low %v225_v58, %v229_v59 }
  0x57   : > { %v221_v4 = vld [vmem:[%s4315_s7 + $0x70] sm:$0xff]  ;;  %v218_v7 = vld [vmem:[%s4315_s7 + $0x58] sm:$0xff]  ;;  %v3717_v9 = vcombine.high %v226_v61, %v230_v62  ;;  %v3716_v13 = vcombine.low %v226_v61, %v230_v62  ;;  %v3975_v26 = vld [vmem:[%s5522_s1 + $0x20] sm:$0xff]  }
  0x58   : > { %556 = vmatpush1.bf16.msra.mxu0 %v3710_v29  ;;  %669 = vmatpush1.bf16.msra.mxu1 %v3712_v30  ;;  %v222_v8 = vld [vmem:[%s4315_s7 + $0x78] sm:$0xff]  ;;  %v209_v11 = vld [vmem:[%s4315_s7 + $0x10] sm:$0xff]  ;;  %v3707_v14 = vcombine.high %v217_v3, %v221_v4  ;;  %v3706_v19 = vcombine.low %v217_v3, %v221_v4  ;;  %v3976_v27 = vld [vmem:[%s5522_s1 + $0x28] sm:$0xff]  }
  0x59   : > { %557 = vmatprep.subr.bf16.mxu0 %v3703_v31  ;;  %670 = vmatprep.subr.bf16.mxu1 %v3705_v32  ;;  %v213_v12 = vld [vmem:[%s4315_s7 + $0x30] sm:$0xff]  ;;  %v210_v15 = vld [vmem:[%s4315_s7 + $0x18] sm:$0xff]  ;;  %v3709_v17 = vcombine.high %v218_v7, %v222_v8  ;;  %v3708_v20 = vcombine.low %v218_v7, %v222_v8 }
  0x5a   : > { %v214_v16 = vld [vmem:[%s4315_s7 + $0x38] sm:$0xff]  ;;  %v3973_v18 = vld [vmem:[%s5522_s1 + $0x10] sm:$0xff]   ;;  %v3699_v21 = vcombine.high %v209_v11, %v213_v12  ;;  %v3698_v23 = vcombine.low %v209_v11, %v213_v12  ;;  %s3685_s7 = sshll.u32 %s4311_s4, 5 }
  0x5b   : > { %v3701_v22 = vcombine.high %v210_v15, %v214_v16  ;;  %v3700_v24 = vcombine.low %v210_v15, %v214_v16  ;;  %v3974_v25 = vld [vmem:[%s5522_s1 + $0x18] sm:$0xff]   ;;  %v3977_v28 = vld [vmem:[%s5522_s1 + $0x30] sm:$0xff]   ;;  %s4958_s23 = scalar_lea.vmem [#allocation7], %s3685_s7 }
  0x5c   : > { %558 = vmatpush1.bf16.msra.mxu0 %v3702_v37  ;;  %671 = vmatpush1.bf16.msra.mxu1 %v3704_v40  ;;  %v3978_v29 = vld [vmem:[%s5522_s1 + $0x38] sm:$0xff]   ;;  %s3597_s9 = sshll.u32 %s4958_s23, 4  ;;  %s3598_s9 = int_to_ptr.vmem [resolvable:$true] %s3597_s9 }
  0x5d   : > { %559 = vmatprep.subr.bf16.mxu0 %v3695_v41  ;;  %672 = vmatprep.subr.bf16.mxu1 %v3697_v44  ;;  %s4089_s30 = scalar_lea.vmem %s3598_s9, 512  ;;  %p4096_p7 = scmp.lt.s32.totalorder %s3598_s9, %s4094_s16 }
  0x5e   : > { %p4090_p12 = scmp.ne.s32.totalorder %s3598_s9, %s4089_s30  ;;  %p4097_p8 = scmp.lt.s32.totalorder %s4095_s11, %s4089_s30 }
  0x60   : > { %560 = vmatpush1.bf16.msra.mxu0 %v3694_v45  ;;  %673 = vmatpush1.bf16.msra.mxu1 %v3696_v47  ;;  %p4091_p2 = pnand %p4090_p12, %p5655_p13  ;;  %p4098_p9 = por %p4097_p8, %p4096_p7 }
  0x61   : > { %3752 = vmatprep.subr.msk.bf16.mxu0 %vm520_vm0, %v3731_v48  ;;  %3761 = vmatprep.subr.msk.bf16.mxu1 %vm520_vm0, %v3733_v51 }
  0x62   : > { %p4092_p3 = pneg %p4091_p2 }
  0x63   : > { %3735 = vmatmul.mubr.msk.bf16.vlgmr.msra.gmra.mxu0 %vm495_vm1, %v4358_v50  ;;  %3744 = vmatmul.mubr.msk.bf16.vlgmr.msra.gmra.mxu1 %vm495_vm1, %v4358_v50 }
  0x64   : > { %587 = vmatprep.mubr.bf16.mxu0 %v5529_v0  ;;  %700 = vmatprep.mubr.bf16.mxu1 %v5529_v0  ;;  %p4099_p10 = pnand %p4098_p9, %p4092_p3 }
  0x65   : > { %778 = vmatpush1.bf16.msra.mxu0 %v534_v54  ;;  %891 = vmatpush1.bf16.msra.mxu1 %v540_v57 }
  0x66   : > { %779 = vmatprep.subr.bf16.mxu0 %v3723_v60  ;;  %892 = vmatprep.subr.bf16.mxu1 %v3725_v63 }
  0x69   : > { %780 = vmatpush1.bf16.msra.mxu0 %v3722_v2  ;;  %893 = vmatpush1.bf16.msra.mxu1 %v3724_v5 }
  0x6a   : > { %781 = vmatprep.subr.bf16.mxu0 %v3715_v6  ;;  %894 = vmatprep.subr.bf16.mxu1 %v3717_v9 }
  0x6b   : > { %3736 = vmatmul.mubr.msk.bf16.gmra.mxu0 %vm495_vm1, %v4381_v1  ;;  %3745 = vmatmul.mubr.msk.bf16.gmra.mxu1 %vm495_vm1, %v4381_v1 }
  0x6c   : > { %597 = vmatprep.mubr.bf16.mxu0 %v5529_v0  ;;  %710 = vmatprep.mubr.bf16.mxu1 %v5529_v0 }
  0x6d   : > { %782 = vmatpush1.bf16.msra.mxu0 %v3714_v10  ;;  %895 = vmatpush1.bf16.msra.mxu1 %v3716_v13 }
  0x6e   : > { %783 = vmatprep.subr.bf16.mxu0 %v3707_v14  ;;  %896 = vmatprep.subr.bf16.mxu1 %v3709_v17 }
  0x71   : > { %784 = vmatpush1.bf16.msra.mxu0 %v3706_v19  ;;  %897 = vmatpush1.bf16.msra.mxu1 %v3708_v20 }
  0x72   : > { %785 = vmatprep.subr.bf16.mxu0 %v3699_v21  ;;  %898 = vmatprep.subr.bf16.mxu1 %v3701_v22 }
  0x73   : > { %3737 = vmatmul.mubr.msk.bf16.gmra.mxu0 %vm495_vm1, %v3973_v18  ;;  %3746 = vmatmul.mubr.msk.bf16.gmra.mxu1 %vm495_vm1, %v3973_v18 }
  0x74   : > { %607 = vmatprep.mubr.bf16.mxu0 %v5529_v0  ;;  %720 = vmatprep.mubr.bf16.mxu1 %v5529_v0 }
  0x75   : > { %786 = vmatpush1.bf16.msra.mxu0 %v3698_v23  ;;  %899 = vmatpush1.bf16.msra.mxu1 %v3700_v24 }
  0x7b   : > { %3738 = vmatmul.mubr.msk.bf16.gmra.mxu0 %vm495_vm1, %v3974_v25  ;;  %3747 = vmatmul.mubr.msk.bf16.gmra.mxu1 %vm495_vm1, %v3974_v25 }
  0x7c   : > { %617 = vmatprep.mubr.bf16.mxu0 %v5529_v0  ;;  %730 = vmatprep.mubr.bf16.mxu1 %v5529_v0 }
  0x83   : > { %3739 = vmatmul.mubr.msk.bf16.gmra.mxu0 %vm495_vm1, %v3975_v26  ;;  %3748 = vmatmul.mubr.msk.bf16.gmra.mxu1 %vm495_vm1, %v3975_v26 }
  0x84   : > { %627 = vmatprep.mubr.bf16.mxu0 %v5529_v0  ;;  %740 = vmatprep.mubr.bf16.mxu1 %v5529_v0 }
  0x8b   : > { %3740 = vmatmul.mubr.msk.bf16.gmra.mxu0 %vm495_vm1, %v3976_v27  ;;  %3749 = vmatmul.mubr.msk.bf16.gmra.mxu1 %vm495_vm1, %v3976_v27 }
  0x8c   : > { %637 = vmatprep.mubr.bf16.mxu0 %v5529_v0  ;;  %750 = vmatprep.mubr.bf16.mxu1 %v5529_v0 }
  0x93   : > { %3741 = vmatmul.mubr.msk.bf16.gmra.mxu0 %vm495_vm1, %v3977_v28  ;;  %3750 = vmatmul.mubr.msk.bf16.gmra.mxu1 %vm495_vm1, %v3977_v28 }
  0x94   : > { %647 = vmatprep.mubr.bf16.mxu0 %v5529_v0  ;;  %760 = vmatprep.mubr.bf16.mxu1 %v5529_v0 }
  0x9b   : > { %3742 = vmatmul.mubr.msk.bf16.gmra.mxu0 %vm495_vm1, %v3978_v29  ;;  %3751 = vmatmul.mubr.msk.bf16.gmra.mxu1 %vm495_vm1, %v3978_v29 }
  0x9c   : > { %803 = vmatprep.mubr.bf16.mxu0 %v5529_v0  ;;  %916 = vmatprep.mubr.bf16.mxu1 %v5529_v0 }
  0xa3   : > { %3753 = vmatmul.mubr.msk.bf16.vlgmr.msra.gmra.mxu0 %vm495_vm1, %v4358_v50  ;;  %3762 = vmatmul.mubr.msk.bf16.vlgmr.msra.gmra.mxu1 %vm495_vm1, %v4358_v50 }
  0xa4   : > { %813 = vmatprep.mubr.bf16.mxu0 %v5529_v0  ;;  %926 = vmatprep.mubr.bf16.mxu1 %v5529_v0 }
  0xab   : > { %3754 = vmatmul.mubr.msk.bf16.gmra.mxu0 %vm495_vm1, %v4381_v1  ;;  %3763 = vmatmul.mubr.msk.bf16.gmra.mxu1 %vm495_vm1, %v4381_v1 }
  0xac   : > { %823 = vmatprep.mubr.bf16.mxu0 %v5529_v0  ;;  %936 = vmatprep.mubr.bf16.mxu1 %v5529_v0 }
  0xb3   : > { %3755 = vmatmul.mubr.msk.bf16.gmra.mxu0 %vm495_vm1, %v3973_v18  ;;  %3764 = vmatmul.mubr.msk.bf16.gmra.mxu1 %vm495_vm1, %v3973_v18 }
  0xb4   : > { %833 = vmatprep.mubr.bf16.mxu0 %v5529_v0  ;;  %946 = vmatprep.mubr.bf16.mxu1 %v5529_v0 }
  0xbb   : > { %3756 = vmatmul.mubr.msk.bf16.gmra.mxu0 %vm495_vm1, %v3974_v25  ;;  %3765 = vmatmul.mubr.msk.bf16.gmra.mxu1 %vm495_vm1, %v3974_v25 }
  0xbc   : > { %843 = vmatprep.mubr.bf16.mxu0 %v5529_v0  ;;  %956 = vmatprep.mubr.bf16.mxu1 %v5529_v0 }
  0xc3   : > { %3757 = vmatmul.mubr.msk.bf16.gmra.mxu0 %vm495_vm1, %v3975_v26  ;;  %3766 = vmatmul.mubr.msk.bf16.gmra.mxu1 %vm495_vm1, %v3975_v26 }
  0xc4   : > { %853 = vmatprep.mubr.bf16.mxu0 %v5529_v0  ;;  %966 = vmatprep.mubr.bf16.mxu1 %v5529_v0 }
  0xcb   : > { %3758 = vmatmul.mubr.msk.bf16.gmra.mxu0 %vm495_vm1, %v3976_v27  ;;  %3767 = vmatmul.mubr.msk.bf16.gmra.mxu1 %vm495_vm1, %v3976_v27 }
  0xcc   : > { %863 = vmatprep.mubr.bf16.mxu0 %v5529_v0  ;;  %976 = vmatprep.mubr.bf16.mxu1 %v5529_v0 }
  0xd3   : > { %3759 = vmatmul.mubr.msk.bf16.gmra.mxu0 %vm495_vm1, %v3977_v28  ;;  %3768 = vmatmul.mubr.msk.bf16.gmra.mxu1 %vm495_vm1, %v3977_v28 }
  0xd4   : > { %873 = vmatprep.mubr.bf16.mxu0 %v5529_v0  ;;  %986 = vmatprep.mubr.bf16.mxu1 %v5529_v0 }
  0xdb   : > { %3760 = vmatmul.mubr.msk.bf16.gmra.mxu0 %vm495_vm1, %v3978_v29  ;;  %3769 = vmatmul.mubr.msk.bf16.gmra.mxu1 %vm495_vm1, %v3978_v29 }
  0xdc   : > { %1166 = vmatprep.mubr.bf16.mxu0 %v5529_v0  ;;  %1239 = vmatprep.mubr.bf16.mxu1 %v5529_v0 }
 0x123   : > { %v4475_v30 = vpop.f32.mrf.mxu0  ;;  %v4477_v31 = vpop.f32.mrf.mxu1 }
 0x125   : > { %v4479_v32 = vpop.f32.mrf.mxu0  ;;  %v4481_v33 = vpop.f32.mrf.mxu1 }
 0x127   : > { %v4483_v34 = vpop.f32.mrf.mxu0  ;;  %v4485_v35 = vpop.f32.mrf.mxu1 }
 0x129   : > { %v4487_v36 = vpop.f32.mrf.mxu0  ;;  %v4489_v37 = vpop.f32.mrf.mxu1 }
 0x12b   : > { %v4491_v38 = vpop.f32.mrf.mxu0  ;;  %v4493_v39 = vpop.f32.mrf.mxu1 }
 0x12d   : > { %v4495_v40 = vpop.f32.mrf.mxu0  ;;  %v4497_v41 = vpop.f32.mrf.mxu1 }
 0x12e   : > { %v1014_v27 = vmax.f32 %v4495_v40, 0.0 }
 0x12f   : > { %v4499_v42 = vpop.f32.mrf.mxu0  ;;  %v4501_v43 = vpop.f32.mrf.mxu1 }
 0x131   : > { %v595_v44 = vpop.f32.mrf.mxu0  ;;  %v4503_v45 = vpop.f32.mrf.mxu1 }
 0x132   : > { %v1022_v18 = vmax.f32 %v595_v44, 0.0  ;;  %v1024_v23 = vmax.f32 %v4503_v45, 0.0  ;;  %v1016_v44 = vmax.f32 %v4497_v41, 0.0 }
 0x133   : > { %v599_v46 = vpop.f32.mrf.mxu0  ;;  %v712_v47 = vpop.f32.mrf.mxu1 }
 0x134   : > { %v1029_v24 = vmax.f32 %v599_v46, 0.0  ;;  %v1031_v28 = vmax.f32 %v712_v47, 0.0  ;;  %v1006_v46 = vmax.f32 %v4487_v36, 0.0  ;;  %v1008_v47 = vmax.f32 %v4489_v37, 0.0 }
 0x135   : > { %v601_v48 = vpop.f32.mrf.mxu0  ;;  %v714_v49 = vpop.f32.mrf.mxu1  ;;  %v1000_v36 = vmax.f32 %v4481_v33, 0.0  ;;  %v999_v33 = vmax.f32 %v4477_v31, 0.0 }
 0x136   : > { %v1030_v9 = vmax.f32 %v601_v48, 0.0  ;;  %v1032_v13 = vmax.f32 %v714_v49, 0.0  ;;  %v1021_v48 = vmax.f32 %v4499_v42, 0.0  ;;  %v998_v42 = vmax.f32 %v4479_v32, 0.0 }
 0x137   : > { %v603_v50 = vpop.f32.mrf.mxu0  ;;  %v716_v51 = vpop.f32.mrf.mxu1  ;;  %v997_v32 = vmax.f32 %v4475_v30, 0.0 }
 0x138   : > { %v1037_v14 = vmax.f32 %v603_v50, 0.0  ;;  %v1039_v19 = vmax.f32 %v716_v51, 0.0  ;;  %v1023_v50 = vmax.f32 %v4501_v43, 0.0  ;;  %v1070_v51 = vpack.c.bf16 %v1022_v18, %v1014_v27 }
 0x139   : > { %v605_v52 = vpop.f32.mrf.mxu0  ;;  %v718_v53 = vpop.f32.mrf.mxu1  ;;  %v1005_v43 = vmax.f32 %v4483_v34, 0.0 }
 0x13a   : > { %v1038_v62 = vmax.f32 %v605_v52, 0.0  ;;  %v1040_v4 = vmax.f32 %v718_v53, 0.0  ;;  %v1077_v49 = vpack.c.bf16 %v1037_v14, %v1029_v24  ;;  %v1079_v52 = vpack.c.bf16 %v1039_v19, %v1031_v28 }
 0x13b   : > { %v609_v54 = vpop.f32.mrf.mxu0  ;;  %v722_v55 = vpop.f32.mrf.mxu1  ;;  %v1013_v53 = vmax.f32 %v4491_v38, 0.0  ;;  %v1007_v38 = vmax.f32 %v4485_v35, 0.0  ;;  %v1061_v34 = vpack.c.bf16 %v1005_v43, %v997_v32 }
 0x13c   : > { %v1045_v5 = vmax.f32 %v609_v54, 0.0  ;;  %v1047_v10 = vmax.f32 %v722_v55, 0.0  ;;  %v1078_v20 = vpack.c.bf16 %v1038_v62, %v1030_v9  ;;  %v1080_v25 = vpack.c.bf16 %v1040_v4, %v1032_v13 }
 0x13d   : > { %v611_v56 = vpop.f32.mrf.mxu0  ;;  %v724_v57 = vpop.f32.mrf.mxu1  ;;  %v1072_v54 = vpack.c.bf16 %v1024_v23, %v1016_v44  ;;  %v1015_v55 = vmax.f32 %v4493_v39, 0.0  ;;  %v1064_v39 = vpack.c.bf16 %v1008_v47, %v1000_v36  ;;  %v1063_v35 = vpack.c.bf16 %v1007_v38, %v999_v33 }
 0x13e   : > { %v1046_v63 = vmax.f32 %v611_v56, 0.0  ;;  %v1048_v6 = vmax.f32 %v724_v57, 0.0  ;;  %v1069_v57 = vpack.c.bf16 %v1021_v48, %v1013_v53 }
 0x13f   : > { %v613_v58 = vpop.f32.mrf.mxu0  ;;  %v726_v59 = vpop.f32.mrf.mxu1 }
 0x140   : > { %v1053_v60 = vmax.f32 %v613_v58, 0.0  ;;  %v1055_v1 = vmax.f32 %v726_v59, 0.0  ;;  %v1062_v58 = vpack.c.bf16 %v1006_v46, %v998_v42  ;;  %v1071_v59 = vpack.c.bf16 %v1023_v50, %v1015_v55  ;;  %v4624_v46 = vld [vmem:[#allocation5 + $0x18] sm:$0xff]  }
 0x141   : > { %v615_v61 = vpop.f32.mrf.mxu0  ;;  %v728_v3 = vpop.f32.mrf.mxu1 }
 0x142   : > { %v1054_v2 = vmax.f32 %v615_v61, 0.0  ;;  %v1056_v7 = vmax.f32 %v728_v3, 0.0  ;;  %v1085_v15 = vpack.c.bf16 %v1053_v60, %v1045_v5  ;;  %v1087_v21 = vpack.c.bf16 %v1055_v1, %v1047_v10  ;;  %v4576_v10 = vld [vmem:[#allocation5 + $0x8] sm:$0xff]  }
 0x143   : > { %v4505_v8 = vpop.f32.mrf.mxu0  ;;  %v4507_v12 = vpop.f32.mrf.mxu1 }
 0x144   : > { %5542 = vst [vmem:[#allocation11_spill] sm:$0xff] %v4505_v8  ;;  %v1086_v11 = vpack.c.bf16 %v1054_v2, %v1046_v63  ;;  %5543 = vst [vmem:[#allocation12_spill] sm:$0xff] %v4507_v12  ;;  %v1088_v16 = vpack.c.bf16 %v1056_v7, %v1048_v6  ;;  %v4552_v2 = vld [vmem:[#allocation5] sm:$0xff]  }
 0x145   : > { %v4509_v17 = vpop.f32.mrf.mxu0  ;;  %v4511_v22 = vpop.f32.mrf.mxu1 }
 0x146   : > { %1142 = vmatprep.subr.bf16.mxu0 %v1086_v11  ;;  %1215 = vmatprep.subr.bf16.mxu1 %v1088_v16 }
 0x147   : > { %v4514_v26 = vpop.f32.mrf.mxu0  ;;  %1143 = vmatpush1.bf16.msra.mxu0 %v1085_v15  ;;  %v4517_v29 = vpop.f32.mrf.mxu1  ;;  %1216 = vmatpush1.bf16.msra.mxu1 %v1087_v21  ;;  %v4600_v21 = vld [vmem:[#allocation5 + $0x10] sm:$0xff]  }
 0x148   : > { %5544 = vst [vmem:[#allocation13_spill] sm:$0xff] %v4514_v26  ;;  %5545 = vst [vmem:[#allocation14_spill] sm:$0xff] %v4517_v29  ;;  %1144 = vmatprep.subr.bf16.mxu0 %v1078_v20  ;;  %1217 = vmatprep.subr.bf16.mxu1 %v1080_v25 }
 0x149   : > { %v4521_v45 = vpop.f32.mrf.mxu0  ;;  %v4525_v40 = vpop.f32.mrf.mxu1 }
 0x14b   : > { %v4529_v41 = vpop.f32.mrf.mxu0  ;;  %1145 = vmatpush1.bf16.msra.mxu0 %v1077_v49  ;;  %v4533_v56 = vpop.f32.mrf.mxu1  ;;  %1218 = vmatpush1.bf16.msra.mxu1 %v1079_v52 }
 0x14c   : > { %5546 = vst [vmem:[#allocation15_spill] sm:$0xff] %v4529_v41  ;;  %5547 = vst [vmem:[#allocation16_spill] sm:$0xff] %v4533_v56  ;;  %1146 = vmatprep.subr.bf16.mxu0 %v1070_v51  ;;  %1219 = vmatprep.subr.bf16.mxu1 %v1072_v54 }
 0x14d   : > { %v4537_v37 = vpop.f32.mrf.mxu0  ;;  %v4540_v60 = vpop.f32.mrf.mxu1 }
 0x14f   : > { %v4543_v61 = vpop.f32.mrf.mxu0  ;;  %1147 = vmatpush1.bf16.msra.mxu0 %v1069_v57  ;;  %v4546_v62 = vpop.f32.mrf.mxu1  ;;  %1220 = vmatpush1.bf16.msra.mxu1 %v1071_v59 }
 0x150   : > { %1148 = vmatprep.subr.bf16.mxu0 %v1062_v58  ;;  %1221 = vmatprep.subr.bf16.mxu1 %v1064_v39 }
 0x151   : > { %v4548_v63 = vpop.f32.mrf.mxu0  ;;  %v4550_v1 = vpop.f32.mrf.mxu1 }
 0x152   : > { %5548 = vst [vmem:[#allocation17_spill] sm:$0xff] %v4548_v63  ;;  %5549 = vst [vmem:[#allocation18_spill] sm:$0xff] %v4550_v1 }
 0x153   : > { %v4554_v30 = vpop.f32.mrf.mxu0  ;;  %1149 = vmatpush1.bf16.msra.mxu0 %v1061_v34  ;;  %v4556_v3 = vpop.f32.mrf.mxu1  ;;  %1222 = vmatpush1.bf16.msra.mxu1 %v1063_v35 }
 0x154   : > { %5550 = vst [vmem:[#allocation19_spill] sm:$0xff] %v4554_v30  ;;  %5551 = vst [vmem:[#allocation20_spill] sm:$0xff] %v4556_v3 }
 0x155   : > { %v4558_v31 = vpop.f32.mrf.mxu0  ;;  %v4560_v4 = vpop.f32.mrf.mxu1 }
 0x156   : > { %5552 = vst [vmem:[#allocation21_spill] sm:$0xff] %v4558_v31  ;;  %5553 = vst [vmem:[#allocation22_spill] sm:$0xff] %v4560_v4  ;;  %3774 = vmatmul.mubr.msk.bf16.vlgmr.msra.gmra.mxu0 %vm1121_vm2, %v4552_v2  ;;  %3778 = vmatmul.mubr.msk.bf16.vlgmr.msra.gmra.mxu1 %vm1121_vm2, %v4552_v2 }
 0x157   : > { %v4566_v5 = vpop.f32.mrf.mxu0  ;;  %1176 = vmatprep.mubr.bf16.mxu0 %v5529_v0  ;;  %v4569_v6 = vpop.f32.mrf.mxu1  ;;  %1249 = vmatprep.mubr.bf16.mxu1 %v5529_v0 }
 0x158   : > { %5554 = vst [vmem:[#allocation23_spill] sm:$0xff] %v4566_v5  ;;  %5555 = vst [vmem:[#allocation24_spill] sm:$0xff] %v4569_v6 }
 0x159   : > { %v4572_v7 = vpop.f32.mrf.mxu0  ;;  %v4574_v9 = vpop.f32.mrf.mxu1 }
 0x15a   : > { %5556 = vst [vmem:[#allocation25_spill] sm:$0xff] %v4572_v7  ;;  %5557 = vst [vmem:[#allocation26_spill] sm:$0xff] %v4574_v9 }
 0x15b   : > { %v4578_v11 = vpop.f32.mrf.mxu0  ;;  %v4580_v13 = vpop.f32.mrf.mxu1 }
 0x15c   : > { %5558 = vst [vmem:[#allocation27_spill] sm:$0xff] %v4578_v11  ;;  %5559 = vst [vmem:[#allocation28_spill] sm:$0xff] %v4580_v13 }
 0x15d   : > { %v4582_v14 = vpop.f32.mrf.mxu0  ;;  %v4584_v15 = vpop.f32.mrf.mxu1 }
 0x15e   : > { %5560 = vst [vmem:[#allocation29_spill] sm:$0xff] %v4582_v14  ;;  %5561 = vst [vmem:[#allocation30_spill] sm:$0xff] %v4584_v15  ;;  %3775 = vmatmul.mubr.msk.bf16.gmra.mxu0 %vm1121_vm2, %v4576_v10  ;;  %3779 = vmatmul.mubr.msk.bf16.gmra.mxu1 %vm1121_vm2, %v4576_v10 }
 0x15f   : > { %v4590_v16 = vpop.f32.mrf.mxu0  ;;  %1186 = vmatprep.mubr.bf16.mxu0 %v5529_v0  ;;  %v4593_v18 = vpop.f32.mrf.mxu1  ;;  %1259 = vmatprep.mubr.bf16.mxu1 %v5529_v0 }
 0x160   : > { %5562 = vst [vmem:[#allocation31_spill] sm:$0xff] %v4590_v16  ;;  %5563 = vst [vmem:[#allocation32_spill] sm:$0xff] %v4593_v18 }
 0x161   : > { %v4596_v19 = vpop.f32.mrf.mxu0  ;;  %v4598_v20 = vpop.f32.mrf.mxu1 }
 0x162   : > { %5564 = vst [vmem:[#allocation33_spill] sm:$0xff] %v4596_v19  ;;  %5565 = vst [vmem:[#allocation34_spill] sm:$0xff] %v4598_v20 }
 0x163   : > { %v4602_v23 = vpop.f32.mrf.mxu0  ;;  %v4604_v24 = vpop.f32.mrf.mxu1 }
 0x165   : > { %v4606_v25 = vpop.f32.mrf.mxu0  ;;  %v4608_v27 = vpop.f32.mrf.mxu1 }
 0x166   : > { %3776 = vmatmul.mubr.msk.bf16.gmra.mxu0 %vm1121_vm2, %v4600_v21  ;;  %3780 = vmatmul.mubr.msk.bf16.gmra.mxu1 %vm1121_vm2, %v4600_v21 }
 0x167   : > { %v4614_v28 = vpop.f32.mrf.mxu0  ;;  %1196 = vmatprep.mubr.bf16.mxu0 %v5529_v0  ;;  %v4617_v44 = vpop.f32.mrf.mxu1  ;;  %1269 = vmatprep.mubr.bf16.mxu1 %v5529_v0 }
 0x169   : > { %v4620_v48 = vpop.f32.mrf.mxu0  ;;  %v4622_v49 = vpop.f32.mrf.mxu1 }
 0x16b   : > { %v4626_v50 = vpop.f32.mrf.mxu0  ;;  %v4628_v51 = vpop.f32.mrf.mxu1 }
 0x16d   : > { %v4630_v52 = vpop.f32.mrf.mxu0  ;;  %v4632_v47 = vpop.f32.mrf.mxu1 }
 0x16e   : > { %3777 = vmatmul.mubr.msk.bf16.gmra.mxu0 %vm1121_vm2, %v4624_v46  ;;  %3781 = vmatmul.mubr.msk.bf16.gmra.mxu1 %vm1121_vm2, %v4624_v46 }
 0x16f   : > { %v4638_v53 = vpop.f32.mrf.mxu0  ;;  %1312 = vmatprep.mubr.bf16.mxu0 %v5529_v0  ;;  %v4641_v54 = vpop.f32.mrf.mxu1  ;;  %1385 = vmatprep.mubr.bf16.mxu1 %v5529_v0 }
 0x171   : > { %v821_v42 = vpop.f32.mrf.mxu0  ;;  %v934_v55 = vpop.f32.mrf.mxu1 }
 0x172   : > { %v1026_v7 = vmax.f32 %v821_v42, 0.0 }
 0x173   : > { %v825_v36 = vpop.f32.mrf.mxu0  ;;  %v938_v43 = vpop.f32.mrf.mxu1 }
 0x175   : > { %v827_v57 = vpop.f32.mrf.mxu0  ;;  %v940_v38 = vpop.f32.mrf.mxu1 }
 0x176   : > { %v1034_v31 = vmax.f32 %v827_v57, 0.0  ;;  %v1036_v11 = vmax.f32 %v940_v38, 0.0 }
 0x177   : > { %v829_v58 = vpop.f32.mrf.mxu0  ;;  %v942_v59 = vpop.f32.mrf.mxu1 }
 0x178   : > { %v1041_v9 = vmax.f32 %v829_v58, 0.0  ;;  %v1043_v30 = vmax.f32 %v942_v59, 0.0 }
 0x179   : > { %v831_v32 = vpop.f32.mrf.mxu0  ;;  %v944_v39 = vpop.f32.mrf.mxu1 }
 0x17a   : > { %v1042_v41 = vmax.f32 %v831_v32, 0.0  ;;  %v1044_v5 = vmax.f32 %v944_v39, 0.0  ;;  %v1028_v32 = vmax.f32 %v934_v55, 0.0 }
 0x17b   : > { %v835_v33 = vpop.f32.mrf.mxu0  ;;  %v948_v34 = vpop.f32.mrf.mxu1 }
 0x17c   : > { %v1049_v19 = vmax.f32 %v835_v33, 0.0  ;;  %v1051_v18 = vmax.f32 %v948_v34, 0.0 }
 0x17d   : > { %v837_v35 = vpop.f32.mrf.mxu0  ;;  %v950_v12 = vpop.f32.mrf.mxu1 }
 0x17e   : > { %v1050_v0 = vmax.f32 %v837_v35, 0.0  ;;  %v1052_v13 = vmax.f32 %v950_v12, 0.0  ;;  %v1018_v12 = vmax.f32 %v4630_v52, 0.0 }
 0x17f   : > { %v839_v8 = vpop.f32.mrf.mxu0  ;;  %v952_v29 = vpop.f32.mrf.mxu1 }
 0x180   : > { %v1057_v56 = vmax.f32 %v839_v8, 0.0  ;;  %v1059_v3 = vmax.f32 %v952_v29, 0.0  ;;  %v1082_v8 = vpack.c.bf16 %v1042_v41, %v1034_v31  ;;  %v1033_v29 = vmax.f32 %v825_v36, 0.0 }
 0x181   : > { %v841_v26 = vpop.f32.mrf.mxu0  ;;  %v954_v6 = vpop.f32.mrf.mxu1  ;;  %v1010_v41 = vmax.f32 %v4620_v48, 0.0  ;;  %v1074_v31 = vpack.c.bf16 %v1026_v7, %v1018_v12 }
 0x182   : > { %v1058_v20 = vmax.f32 %v841_v26, 0.0  ;;  %v1060_v4 = vmax.f32 %v954_v6, 0.0  ;;  %v1089_v16 = vpack.c.bf16 %v1057_v56, %v1049_v19  ;;  %v1091_v1 = vpack.c.bf16 %v1059_v3, %v1051_v18 }
 0x183   : > { %v1084_v26 = vpack.c.bf16 %v1044_v5, %v1036_v11  ;;  %v1035_v6 = vmax.f32 %v938_v43, 0.0  ;;  %v1025_v56 = vmax.f32 %v4638_v53, 0.0  ;;  %v1027_v3 = vmax.f32 %v4641_v54, 0.0 }
 0x184   : > { %v1090_v15 = vpack.c.bf16 %v1058_v20, %v1050_v0  ;;  %v1092_v14 = vpack.c.bf16 %v1060_v4, %v1052_v13  ;;  %v1020_v0 = vmax.f32 %v4632_v47, 0.0  ;;  %v1081_v4 = vpack.c.bf16 %v1041_v9, %v1033_v29 }
 0x185   : > { %v1083_v13 = vpack.c.bf16 %v1043_v30, %v1035_v6  ;;  %v1012_v5 = vmax.f32 %v4622_v49, 0.0  ;;  %v1017_v11 = vmax.f32 %v4626_v50, 0.0  ;;  %v1004_v9 = vmax.f32 %v4608_v27, 0.0 }
 0x186   : > { %1288 = vmatprep.subr.bf16.mxu0 %v1090_v15  ;;  %1361 = vmatprep.subr.bf16.mxu1 %v1092_v14  ;;  %v1076_v14 = vpack.c.bf16 %v1028_v32, %v1020_v0  ;;  %v1019_v15 = vmax.f32 %v4628_v51, 0.0  ;;  %v1011_v30 = vmax.f32 %v4617_v44, 0.0  ;;  %v1001_v20 = vmax.f32 %v4602_v23, 0.0 }
 0x187   : > { %1289 = vmatpush1.bf16.msra.mxu0 %v1089_v16  ;;  %1362 = vmatpush1.bf16.msra.mxu1 %v1091_v1  ;;  %v1002_v1 = vmax.f32 %v4606_v25, 0.0  ;;  %v1009_v16 = vmax.f32 %v4614_v28, 0.0  ;;  %v1073_v18 = vpack.c.bf16 %v1025_v56, %v1017_v11  ;;  %v1068_v48 = vpack.c.bf16 %v1012_v5, %v1004_v9 }
 0x188   : > { %1290 = vmatprep.subr.bf16.mxu0 %v1082_v8  ;;  %1363 = vmatprep.subr.bf16.mxu1 %v1084_v26  ;;  %v1075_v19 = vpack.c.bf16 %v1027_v3, %v1019_v15  ;;  %v1003_v25 = vmax.f32 %v4604_v24, 0.0  ;;  %v5566_v27 = vmov 0  }
 0x189   : > { %v1066_v7 = vpack.c.bf16 %v1010_v41, %v1002_v1  ;;  %v1065_v49 = vpack.c.bf16 %v1009_v16, %v1001_v20 }
 0x18a   : > { %v1067_v50 = vpack.c.bf16 %v1011_v30, %v1003_v25 }
 0x18b   : > { %1291 = vmatpush1.bf16.msra.mxu0 %v1081_v4  ;;  %1364 = vmatpush1.bf16.msra.mxu1 %v1083_v13 }
 0x18c   : > { %1292 = vmatprep.subr.bf16.mxu0 %v1074_v31  ;;  %1365 = vmatprep.subr.bf16.mxu1 %v1076_v14 }
 0x18f   : > { %1293 = vmatpush1.bf16.msra.mxu0 %v1073_v18  ;;  %1366 = vmatpush1.bf16.msra.mxu1 %v1075_v19 }
 0x190   : > { %1294 = vmatprep.subr.bf16.mxu0 %v1066_v7  ;;  %1367 = vmatprep.subr.bf16.mxu1 %v1068_v48 }
 0x193   : > { %1295 = vmatpush1.bf16.msra.mxu0 %v1065_v49  ;;  %1368 = vmatpush1.bf16.msra.mxu1 %v1067_v50 }
 0x196   : > { %3782 = vmatmul.mubr.msk.bf16.vlgmr.msra.gmra.mxu0 %vm1121_vm2, %v4552_v2  ;;  %3786 = vmatmul.mubr.msk.bf16.vlgmr.msra.gmra.mxu1 %vm1121_vm2, %v4552_v2  ;;  %v4682_v2 = vpop.f32.mrf.mxu0 }
 0x197   : > { %1322 = vmatprep.mubr.bf16.mxu0 %v5566_v27  ;;  %1395 = vmatprep.mubr.bf16.mxu1 %v5566_v27  ;;  %5567 = vst [vmem:[#allocation35_spill] sm:$0xff] %v4682_v2 }
 0x198   : > { %v4686_v23 = vpop.f32.mrf.mxu0 }
 0x199   : > { %5569 = vst [vmem:[#allocation37_spill] sm:$0xff] %v4686_v23 }
 0x19a   : > { %v4690_v24 = vpop.f32.mrf.mxu0 }
 0x19b   : > { %5571 = vst [vmem:[#allocation39_spill] sm:$0xff] %v4690_v24 }
 0x19c   : > { %v4694_v44 = vpop.f32.mrf.mxu0 }
 0x19d   : > { %5573 = vst [vmem:[#allocation41_spill] sm:$0xff] %v4694_v44 }
 0x19e   : > { %3783 = vmatmul.mubr.msk.bf16.gmra.mxu0 %vm1121_vm2, %v4576_v10  ;;  %3787 = vmatmul.mubr.msk.bf16.gmra.mxu1 %vm1121_vm2, %v4576_v10  ;;  %v4684_v10 = vpop.f32.mrf.mxu1 }
 0x19f   : > { %1332 = vmatprep.mubr.bf16.mxu0 %v5566_v27  ;;  %1405 = vmatprep.mubr.bf16.mxu1 %v5566_v27  ;;  %5568 = vst [vmem:[#allocation36_spill] sm:$0xff] %v4684_v10 }
 0x1a6   : > { %3784 = vmatmul.mubr.msk.bf16.gmra.mxu0 %vm1121_vm2, %v4600_v21  ;;  %3788 = vmatmul.mubr.msk.bf16.gmra.mxu1 %vm1121_vm2, %v4600_v21  ;;  %v4688_v21 = vpop.f32.mrf.mxu1 }
 0x1a7   : > { %1342 = vmatprep.mubr.bf16.mxu0 %v5566_v27  ;;  %1415 = vmatprep.mubr.bf16.mxu1 %v5566_v27  ;;  %5570 = vst [vmem:[#allocation38_spill] sm:$0xff] %v4688_v21 }
 0x1a8   : > { %v4692_v28 = vpop.f32.mrf.mxu1 }
 0x1a9   : > { %5572 = vst [vmem:[#allocation40_spill] sm:$0xff] %v4692_v28 }
 0x1aa   : > { %v4696_v51 = vpop.f32.mrf.mxu1 }
 0x1ab   : > { %5574 = vst [vmem:[#allocation42_spill] sm:$0xff] %v4696_v51 }
 0x1ac   : > { %v4700_v52 = vpop.f32.mrf.mxu1 }
 0x1ad   : > { %5576 = vst [vmem:[#allocation44_spill] sm:$0xff] %v4700_v52 }
 0x1ae   : > { %3785 = vmatmul.mubr.msk.bf16.gmra.mxu0 %vm1121_vm2, %v4624_v46  ;;  %3789 = vmatmul.mubr.msk.bf16.gmra.mxu1 %vm1121_vm2, %v4624_v46  ;;  %v4698_v46 = vpop.f32.mrf.mxu0  ;;  %v4704_v53 = vpop.f32.mrf.mxu1 }
 0x1af   : > { %1595 = vmatprep.mubr.bf16.mxu0 %v5566_v27  ;;  %1668 = vmatprep.mubr.bf16.mxu1 %v5566_v27  ;;  %5575 = vst [vmem:[#allocation43_spill] sm:$0xff] %v4698_v46  ;;  %5578 = vst [vmem:[#allocation46_spill] sm:$0xff] %v4704_v53 }
 0x1b0   : > { %v4702_v47 = vpop.f32.mrf.mxu0  ;;  %v4708_v42 = vpop.f32.mrf.mxu1 }
 0x1b1   : > { %5577 = vst [vmem:[#allocation45_spill] sm:$0xff] %v4702_v47  ;;  %5580 = vst [vmem:[#allocation48_spill] sm:$0xff] %v4708_v42 }
 0x1b2   : > { %v4706_v54 = vpop.f32.mrf.mxu0  ;;  %v4712_v36 = vpop.f32.mrf.mxu1 }
 0x1b3   : > { %5579 = vst [vmem:[#allocation47_spill] sm:$0xff] %v4706_v54  ;;  %5582 = vst [vmem:[#allocation50_spill] sm:$0xff] %v4712_v36 }
 0x1b4   : > { %v4710_v55 = vpop.f32.mrf.mxu0  ;;  %v4716_v57 = vpop.f32.mrf.mxu1 }
 0x1b5   : > { %5581 = vst [vmem:[#allocation49_spill] sm:$0xff] %v4710_v55  ;;  %5584 = vst [vmem:[#allocation52_spill] sm:$0xff] %v4716_v57 }
 0x1b6   : > { %v4714_v43 = vpop.f32.mrf.mxu0  ;;  %v4720_v58 = vpop.f32.mrf.mxu1 }
 0x1b7   : > { %5583 = vst [vmem:[#allocation51_spill] sm:$0xff] %v4714_v43  ;;  %5586 = vst [vmem:[#allocation54_spill] sm:$0xff] %v4720_v58 }
 0x1b8   : > { %v4718_v38 = vpop.f32.mrf.mxu0  ;;  %v4724_v39 = vpop.f32.mrf.mxu1 }
 0x1b9   : > { %5585 = vst [vmem:[#allocation53_spill] sm:$0xff] %v4718_v38  ;;  %5588 = vst [vmem:[#allocation56_spill] sm:$0xff] %v4724_v39 }
 0x1ba   : > { %v4722_v59 = vpop.f32.mrf.mxu0  ;;  %v4728_v34 = vpop.f32.mrf.mxu1 }
 0x1bb   : > { %5587 = vst [vmem:[#allocation55_spill] sm:$0xff] %v4722_v59  ;;  %5590 = vst [vmem:[#allocation58_spill] sm:$0xff] %v4728_v34 }
 0x1bc   : > { %v4726_v33 = vpop.f32.mrf.mxu0  ;;  %v4732_v8 = vpop.f32.mrf.mxu1 }
 0x1bd   : > { %5589 = vst [vmem:[#allocation57_spill] sm:$0xff] %v4726_v33  ;;  %5592 = vst [vmem:[#allocation60_spill] sm:$0xff] %v4732_v8 }
 0x1be   : > { %v4730_v35 = vpop.f32.mrf.mxu0  ;;  %v4736_v29 = vpop.f32.mrf.mxu1 }
 0x1bf   : > { %5591 = vst [vmem:[#allocation59_spill] sm:$0xff] %v4730_v35  ;;  %5594 = vst [vmem:[#allocation62_spill] sm:$0xff] %v4736_v29 }
 0x1c0   : > { %v4734_v32 = vpop.f32.mrf.mxu0  ;;  %v4740_v12 = vpop.f32.mrf.mxu1 }
 0x1c1   : > { %5593 = vst [vmem:[#allocation61_spill] sm:$0xff] %v4734_v32  ;;  %5596 = vst [vmem:[#allocation64_spill] sm:$0xff] %v4740_v12 }
 0x1c2   : > { %v4738_v26 = vpop.f32.mrf.mxu0  ;;  %v4744_v0 = vpop.f32.mrf.mxu1 }
 0x1c3   : > { %5595 = vst [vmem:[#allocation63_spill] sm:$0xff] %v4738_v26  ;;  %5598 = vst [vmem:[#allocation66_spill] sm:$0xff] %v4744_v0 }
 0x1c4   : > { %v4742_v6 = vpop.f32.mrf.mxu0 }
 0x1c5   : > { %5597 = vst [vmem:[#allocation65_spill] sm:$0xff] %v4742_v6 }
 0x216   : > { %v4746_v56 = vpop.f32.mrf.mxu0  ;;  %v4748_v4 = vpop.f32.mrf.mxu1 }
 0x218   : > { %v4750_v41 = vpop.f32.mrf.mxu0  ;;  %v4752_v3 = vpop.f32.mrf.mxu1 }
 0x21a   : > { %v4754_v31 = vpop.f32.mrf.mxu0  ;;  %v4756_v13 = vpop.f32.mrf.mxu1 }
 0x21c   : > { %v4758_v5 = vpop.f32.mrf.mxu0  ;;  %v4760_v11 = vpop.f32.mrf.mxu1 }
 0x21e   : > { %v4762_v14 = vpop.f32.mrf.mxu0  ;;  %v4764_v1 = vpop.f32.mrf.mxu1 }
 0x220   : > { %v1180_v15 = vpop.f32.mrf.mxu0  ;;  %v1253_v9 = vpop.f32.mrf.mxu1 }
 0x221   : > { %v1443_v32 = vmax.f32 %v1180_v15, 0.0 }
 0x222   : > { %v4766_v16 = vpop.f32.mrf.mxu0  ;;  %v4768_v18 = vpop.f32.mrf.mxu1 }
 0x224   : > { %v1184_v30 = vpop.f32.mrf.mxu0  ;;  %v1257_v7 = vpop.f32.mrf.mxu1 }
 0x225   : > { %v1451_v33 = vmax.f32 %v1184_v30, 0.0  ;;  %v1453_v47 = vmax.f32 %v1257_v7, 0.0 }
 0x226   : > { %v1188_v19 = vpop.f32.mrf.mxu0  ;;  %v1261_v20 = vpop.f32.mrf.mxu1 }
 0x227   : > { %v1458_v43 = vmax.f32 %v1188_v19, 0.0  ;;  %v1460_v42 = vmax.f32 %v1261_v20, 0.0 }
 0x228   : > { %v1190_v48 = vpop.f32.mrf.mxu0  ;;  %v1263_v25 = vpop.f32.mrf.mxu1 }
 0x229   : > { %v1459_v57 = vmax.f32 %v1190_v48, 0.0  ;;  %v1461_v12 = vmax.f32 %v1263_v25, 0.0 }
 0x22a   : > { %v1192_v49 = vpop.f32.mrf.mxu0  ;;  %v1265_v50 = vpop.f32.mrf.mxu1 }
 0x22b   : > { %v1466_v54 = vmax.f32 %v1192_v49, 0.0  ;;  %v1468_v53 = vmax.f32 %v1265_v50, 0.0 }
 0x22c   : > { %v1194_v10 = vpop.f32.mrf.mxu0  ;;  %v1267_v2 = vpop.f32.mrf.mxu1 }
 0x22d   : > { %v1467_v59 = vmax.f32 %v1194_v10, 0.0  ;;  %v1469_v29 = vmax.f32 %v1267_v2, 0.0  ;;  %v1506_v15 = vpack.c.bf16 %v1466_v54, %v1458_v43  ;;  %v1437_v54 = vmax.f32 %v4760_v11, 0.0 }
 0x22e   : > { %v1198_v28 = vpop.f32.mrf.mxu0  ;;  %v1271_v52 = vpop.f32.mrf.mxu1 }
 0x22f   : > { %v1474_v0 = vmax.f32 %v1198_v28, 0.0  ;;  %v1476_v6 = vmax.f32 %v1271_v52, 0.0  ;;  %v1507_v10 = vpack.c.bf16 %v1467_v59, %v1459_v57  ;;  %v1509_v25 = vpack.c.bf16 %v1469_v29, %v1461_v12 }
 0x230   : > { %v1200_v24 = vpop.f32.mrf.mxu0  ;;  %v1273_v46 = vpop.f32.mrf.mxu1  ;;  %v1508_v57 = vpack.c.bf16 %v1468_v53, %v1460_v42  ;;  %v1427_v59 = vmax.f32 %v4750_v41, 0.0  ;;  %v1434_v53 = vmax.f32 %v4754_v31, 0.0  ;;  %v1436_v42 = vmax.f32 %v4756_v13, 0.0 }
 0x231   : > { %v1475_v8 = vmax.f32 %v1200_v24, 0.0  ;;  %v1477_v35 = vmax.f32 %v1273_v46, 0.0  ;;  %v1442_v46 = vmax.f32 %v4762_v14, 0.0 }
 0x232   : > { %v1202_v39 = vpop.f32.mrf.mxu0  ;;  %v1275_v38 = vpop.f32.mrf.mxu1 }
 0x233   : > { %v1482_v58 = vmax.f32 %v1202_v39, 0.0  ;;  %v1484_v34 = vmax.f32 %v1275_v38, 0.0  ;;  %v1445_v39 = vmax.f32 %v1253_v9, 0.0  ;;  %v1450_v38 = vmax.f32 %v4766_v16, 0.0  ;;  %v4822_v9 = vld [vmem:[#allocation5 + $0x38] sm:$0xff]  }
 0x234   : > { %v1204_v26 = vpop.f32.mrf.mxu0  ;;  %v1277_v55 = vpop.f32.mrf.mxu1 }
 0x235   : > { %v1483_v36 = vmax.f32 %v1204_v26, 0.0  ;;  %v1514_v48 = vpack.c.bf16 %v1482_v58, %v1474_v0  ;;  %v1485_v28 = vmax.f32 %v1277_v55, 0.0  ;;  %v1516_v52 = vpack.c.bf16 %v1484_v34, %v1476_v6  ;;  %v4782_v0 = vld [vmem:[#allocation5 + $0x20] sm:$0xff]  }
 0x236   : > { %v1444_v26 = vmax.f32 %v4764_v1, 0.0  ;;  %v1452_v55 = vmax.f32 %v4768_v18, 0.0  ;;  %v1499_v58 = vpack.c.bf16 %v1451_v33, %v1443_v32  ;;  %v1435_v34 = vmax.f32 %v4758_v5, 0.0 }
 0x237   : > { %v1515_v24 = vpack.c.bf16 %v1483_v36, %v1475_v8  ;;  %v1517_v2 = vpack.c.bf16 %v1485_v28, %v1477_v35  ;;  %v1501_v36 = vpack.c.bf16 %v1453_v47, %v1445_v39  ;;  %v1429_v35 = vmax.f32 %v4752_v3, 0.0 }
 0x238   : > { %v1498_v43 = vpack.c.bf16 %v1450_v38, %v1442_v46  ;;  %v1500_v8 = vpack.c.bf16 %v1452_v55, %v1444_v26  ;;  %v1426_v33 = vmax.f32 %v4746_v56, 0.0  ;;  %v1428_v47 = vmax.f32 %v4748_v4, 0.0  ;;  %v4790_v56 = vld [vmem:[#allocation5 + $0x28] sm:$0xff]   ;;  %v4798_v4 = vld [vmem:[#allocation5 + $0x30] sm:$0xff]  }
 0x239   : > { %1571 = vmatprep.subr.bf16.mxu0 %v1515_v24  ;;  %1644 = vmatprep.subr.bf16.mxu1 %v1517_v2  ;;  %v1491_v32 = vpack.c.bf16 %v1435_v34, %v1427_v59  ;;  %v1493_v29 = vpack.c.bf16 %v1437_v54, %v1429_v35 }
 0x23a   : > { %1572 = vmatpush1.bf16.msra.mxu0 %v1514_v48  ;;  %1645 = vmatpush1.bf16.msra.mxu1 %v1516_v52  ;;  %v1490_v12 = vpack.c.bf16 %v1434_v53, %v1426_v33  ;;  %v1492_v6 = vpack.c.bf16 %v1436_v42, %v1428_v47 }
 0x23b   : > { %1573 = vmatprep.subr.bf16.mxu0 %v1507_v10  ;;  %1646 = vmatprep.subr.bf16.mxu1 %v1509_v25 }
 0x23e   : > { %1574 = vmatpush1.bf16.msra.mxu0 %v1506_v15  ;;  %1647 = vmatpush1.bf16.msra.mxu1 %v1508_v57 }
 0x23f   : > { %1575 = vmatprep.subr.bf16.mxu0 %v1499_v58  ;;  %1648 = vmatprep.subr.bf16.mxu1 %v1501_v36 }
 0x242   : > { %1576 = vmatpush1.bf16.msra.mxu0 %v1498_v43  ;;  %1649 = vmatpush1.bf16.msra.mxu1 %v1500_v8 }
 0x243   : > { %1577 = vmatprep.subr.bf16.mxu0 %v1491_v32  ;;  %1650 = vmatprep.subr.bf16.mxu1 %v1493_v29 }
 0x246   : > { %1578 = vmatpush1.bf16.msra.mxu0 %v1490_v12  ;;  %1651 = vmatpush1.bf16.msra.mxu1 %v1492_v6 }
 0x249   : > { %3794 = vmatmul.mubr.msk.bf16.vlgmr.msra.gmra.mxu0 %vm1121_vm2, %v4782_v0  ;;  %3798 = vmatmul.mubr.msk.bf16.vlgmr.msra.gmra.mxu1 %vm1121_vm2, %v4782_v0 }
 0x24a   : > { %1605 = vmatprep.mubr.bf16.mxu0 %v5566_v27  ;;  %1678 = vmatprep.mubr.bf16.mxu1 %v5566_v27 }
 0x251   : > { %3795 = vmatmul.mubr.msk.bf16.gmra.mxu0 %vm1121_vm2, %v4790_v56  ;;  %3799 = vmatmul.mubr.msk.bf16.gmra.mxu1 %vm1121_vm2, %v4790_v56 }
 0x252   : > { %1615 = vmatprep.mubr.bf16.mxu0 %v5566_v27  ;;  %1688 = vmatprep.mubr.bf16.mxu1 %v5566_v27 }
 0x256   : > { %v4800_v41 = vpop.f32.mrf.mxu0  ;;  %v4802_v3 = vpop.f32.mrf.mxu1 }
 0x258   : > { %v4804_v31 = vpop.f32.mrf.mxu0  ;;  %v4806_v13 = vpop.f32.mrf.mxu1 }
 0x259   : > { %3796 = vmatmul.mubr.msk.bf16.gmra.mxu0 %vm1121_vm2, %v4798_v4  ;;  %3800 = vmatmul.mubr.msk.bf16.gmra.mxu1 %vm1121_vm2, %v4798_v4 }
 0x25a   : > { %v4812_v5 = vpop.f32.mrf.mxu0  ;;  %1625 = vmatprep.mubr.bf16.mxu0 %v5566_v27  ;;  %v4815_v11 = vpop.f32.mrf.mxu1  ;;  %1698 = vmatprep.mubr.bf16.mxu1 %v5566_v27 }
 0x25c   : > { %v4818_v14 = vpop.f32.mrf.mxu0  ;;  %v4820_v1 = vpop.f32.mrf.mxu1 }
 0x25e   : > { %v4824_v16 = vpop.f32.mrf.mxu0  ;;  %v4826_v18 = vpop.f32.mrf.mxu1 }
 0x260   : > { %v4828_v30 = vpop.f32.mrf.mxu0  ;;  %v4830_v7 = vpop.f32.mrf.mxu1 }
 0x261   : > { %3797 = vmatmul.mubr.msk.bf16.gmra.mxu0 %vm1121_vm2, %v4822_v9  ;;  %3801 = vmatmul.mubr.msk.bf16.gmra.mxu1 %vm1121_vm2, %v4822_v9 }
 0x262   : > { %v4836_v19 = vpop.f32.mrf.mxu0  ;;  %1741 = vmatprep.mubr.bf16.mxu0 %v5566_v27  ;;  %v4839_v20 = vpop.f32.mrf.mxu1  ;;  %1814 = vmatprep.mubr.bf16.mxu1 %v5566_v27 }
 0x264   : > { %v1330_v49 = vpop.f32.mrf.mxu0  ;;  %v1403_v50 = vpop.f32.mrf.mxu1 }
 0x265   : > { %v1455_v21 = vmax.f32 %v1330_v49, 0.0  ;;  %v1439_v49 = vmax.f32 %v4818_v14, 0.0  ;;  %v1438_v14 = vmax.f32 %v4812_v5, 0.0 }
 0x266   : > { %v1334_v48 = vpop.f32.mrf.mxu0  ;;  %v1407_v28 = vpop.f32.mrf.mxu1 }
 0x268   : > { %v1336_v10 = vpop.f32.mrf.mxu0  ;;  %v1409_v52 = vpop.f32.mrf.mxu1 }
 0x269   : > { %v1463_v42 = vmax.f32 %v1336_v10, 0.0  ;;  %v1465_v12 = vmax.f32 %v1409_v52, 0.0  ;;  %v1449_v10 = vmax.f32 %v4830_v7, 0.0  ;;  %v1454_v52 = vmax.f32 %v4836_v19, 0.0 }
 0x26a   : > { %v1338_v24 = vpop.f32.mrf.mxu0  ;;  %v1411_v39 = vpop.f32.mrf.mxu1  ;;  %v1448_v7 = vmax.f32 %v4826_v18, 0.0  ;;  %v1433_v19 = vmax.f32 %v4806_v13, 0.0 }
 0x26b   : > { %v1470_v6 = vmax.f32 %v1338_v24, 0.0  ;;  %v1472_v23 = vmax.f32 %v1411_v39, 0.0  ;;  %v1456_v39 = vmax.f32 %v4839_v20, 0.0 }
 0x26c   : > { %v1340_v25 = vpop.f32.mrf.mxu0  ;;  %v1413_v2 = vpop.f32.mrf.mxu1 }
 0x26d   : > { %v1471_v59 = vmax.f32 %v1340_v25, 0.0  ;;  %v1473_v8 = vmax.f32 %v1413_v2, 0.0  ;;  %v1457_v25 = vmax.f32 %v1403_v50, 0.0  ;;  %v1447_v2 = vmax.f32 %v4828_v30, 0.0 }
 0x26e   : > { %v1344_v46 = vpop.f32.mrf.mxu0  ;;  %v1417_v38 = vpop.f32.mrf.mxu1 }
 0x26f   : > { %v1478_v33 = vmax.f32 %v1344_v46, 0.0  ;;  %v1480_v32 = vmax.f32 %v1417_v38, 0.0  ;;  %v1464_v46 = vmax.f32 %v1407_v28, 0.0  ;;  %v1503_v50 = vpack.c.bf16 %v1455_v21, %v1447_v2 }
 0x270   : > { %v1346_v15 = vpop.f32.mrf.mxu0  ;;  %v1419_v26 = vpop.f32.mrf.mxu1  ;;  %v1505_v30 = vpack.c.bf16 %v1457_v25, %v1449_v10 }
 0x271   : > { %v1479_v34 = vmax.f32 %v1346_v15, 0.0  ;;  %v1481_v53 = vmax.f32 %v1419_v26, 0.0  ;;  %v1462_v15 = vmax.f32 %v1334_v48, 0.0  ;;  %v1512_v48 = vpack.c.bf16 %v1472_v23, %v1464_v46 }
 0x272   : > { %v1348_v55 = vpop.f32.mrf.mxu0  ;;  %v1421_v58 = vpop.f32.mrf.mxu1  ;;  %v1440_v23 = vmax.f32 %v4815_v11, 0.0 }
 0x273   : > { %v1486_v57 = vmax.f32 %v1348_v55, 0.0  ;;  %v1488_v35 = vmax.f32 %v1421_v58, 0.0  ;;  %v1511_v55 = vpack.c.bf16 %v1471_v59, %v1463_v42  ;;  %v1513_v58 = vpack.c.bf16 %v1473_v8, %v1465_v12 }
 0x274   : > { %v1350_v36 = vpop.f32.mrf.mxu0  ;;  %v1423_v43 = vpop.f32.mrf.mxu1  ;;  %v1510_v24 = vpack.c.bf16 %v1470_v6, %v1462_v15 }
 0x275   : > { %v1487_v54 = vmax.f32 %v1350_v36, 0.0  ;;  %v1489_v47 = vmax.f32 %v1423_v43, 0.0  ;;  %v1518_v51 = vpack.c.bf16 %v1486_v57, %v1478_v33  ;;  %v1520_v63 = vpack.c.bf16 %v1488_v35, %v1480_v32 }
 0x277   : > { %v1519_v29 = vpack.c.bf16 %v1487_v54, %v1479_v34  ;;  %v1521_v44 = vpack.c.bf16 %v1489_v47, %v1481_v53 }
 0x279   : > { %1717 = vmatprep.subr.bf16.mxu0 %v1519_v29  ;;  %1790 = vmatprep.subr.bf16.mxu1 %v1521_v44  ;;  %v1441_v44 = vmax.f32 %v4820_v1, 0.0  ;;  %v1504_v1 = vpack.c.bf16 %v1456_v39, %v1448_v7 }
 0x27a   : > { %1718 = vmatpush1.bf16.msra.mxu0 %v1518_v51  ;;  %1791 = vmatpush1.bf16.msra.mxu1 %v1520_v63  ;;  %v1446_v51 = vmax.f32 %v4824_v16, 0.0  ;;  %v1431_v63 = vmax.f32 %v4804_v31, 0.0  ;;  %v1430_v16 = vmax.f32 %v4800_v41, 0.0  ;;  %v1432_v31 = vmax.f32 %v4802_v3, 0.0 }
 0x27b   : > { %1719 = vmatprep.subr.bf16.mxu0 %v1511_v55  ;;  %1792 = vmatprep.subr.bf16.mxu1 %v1513_v58  ;;  %v1497_v20 = vpack.c.bf16 %v1441_v44, %v1433_v19  ;;  %v1870_v41 = vlaneseq }
 0x27c   : > { %v1502_v28 = vpack.c.bf16 %v1454_v52, %v1446_v51  ;;  %v1495_v21 = vpack.c.bf16 %v1439_v49, %v1431_v63  ;;  %v1494_v18 = vpack.c.bf16 %v1438_v14, %v1430_v16  ;;  %v1496_v38 = vpack.c.bf16 %v1440_v23, %v1432_v31 }
 0x27d   : > { %v1871_v13 = vshrl.u32 %v1870_v41, 7 }
 0x27e   : > { %1720 = vmatpush1.bf16.msra.mxu0 %v1510_v24  ;;  %1793 = vmatpush1.bf16.msra.mxu1 %v1512_v48 }
 0x27f   : > { %1721 = vmatprep.subr.bf16.mxu0 %v1503_v50  ;;  %1794 = vmatprep.subr.bf16.mxu1 %v1505_v30 }
 0x282   : > { %1722 = vmatpush1.bf16.msra.mxu0 %v1502_v28  ;;  %1795 = vmatpush1.bf16.msra.mxu1 %v1504_v1 }
 0x283   : > { %1723 = vmatprep.subr.bf16.mxu0 %v1495_v21  ;;  %1796 = vmatprep.subr.bf16.mxu1 %v1497_v20 }
 0x286   : > { %1724 = vmatpush1.bf16.msra.mxu0 %v1494_v18  ;;  %1797 = vmatpush1.bf16.msra.mxu1 %v1496_v38 }
 0x289   : > { %3802 = vmatmul.mubr.msk.bf16.vlgmr.msra.gmra.mxu0 %vm1121_vm2, %v4782_v0  ;;  %3806 = vmatmul.mubr.msk.bf16.vlgmr.msra.gmra.mxu1 %vm1121_vm2, %v4782_v0  ;;  %v4167_v0 = vmov 1966171168  }
 0x28a   : > { %1751 = vmatprep.mubr.bf16.mxu0 %v5566_v27  ;;  %1824 = vmatprep.mubr.bf16.mxu1 %v5566_v27 }
 0x291   : > { %3803 = vmatmul.mubr.msk.bf16.gmra.mxu0 %vm1121_vm2, %v4790_v56  ;;  %3807 = vmatmul.mubr.msk.bf16.gmra.mxu1 %vm1121_vm2, %v4790_v56  ;;  %v1868_v56 = vunpack.c.l.s4 %v4167_v0 }
 0x292   : > { %1761 = vmatprep.mubr.bf16.mxu0 %v5566_v27  ;;  %1834 = vmatprep.mubr.bf16.mxu1 %v5566_v27 }
 0x293   : > { %v1869_v3 = vunpack.c.0.s8 %v1868_v56 }
 0x295   : > { %v4884_v11 = vsub.s32 %v1869_v3, %v1871_v13  ;;  %v4898_v13 = vld [vmem:[#allocation5 + $0x40] sm:$0xff]  }
 0x299   : > { %3804 = vmatmul.mubr.msk.bf16.gmra.mxu0 %vm1121_vm2, %v4798_v4  ;;  %3808 = vmatmul.mubr.msk.bf16.gmra.mxu1 %vm1121_vm2, %v4798_v4 }
 0x29a   : > { %1771 = vmatprep.mubr.bf16.mxu0 %v5566_v27  ;;  %1844 = vmatprep.mubr.bf16.mxu1 %v5566_v27 }
 0x2a1   : > { %3805 = vmatmul.mubr.msk.bf16.gmra.mxu0 %vm1121_vm2, %v4822_v9  ;;  %3809 = vmatmul.mubr.msk.bf16.gmra.mxu1 %vm1121_vm2, %v4822_v9 }
 0x2a2   : > { %2019 = vmatprep.mubr.bf16.mxu0 %v5566_v27  ;;  %2092 = vmatprep.mubr.bf16.mxu1 %v5566_v27 }
 0x309   : > { %v4880_v4 = vpop.f32.mrf.mxu0  ;;  %v4882_v5 = vpop.f32.mrf.mxu1 }
 0x30b   : > { %v1599_v26 = vpop.f32.mrf.mxu0  ;;  %v1672_v36 = vpop.f32.mrf.mxu1 }
 0x30c   : > { %v1863_v57 = vcombine.low %v4880_v4, %v1599_v26  ;;  %v1864_v9 = vcombine.low %v4882_v5, %v1672_v36 }
 0x30d   : > { %v1601_v59 = vpop.f32.mrf.mxu0  ;;  %v1674_v35 = vpop.f32.mrf.mxu1 }
 0x30e   : > { %v4889_v34 = vrot.slane %v1863_v57, %v4884_v11  ;;  %v4892_v54 = vrot.slane %v1864_v9, %v4884_v11  ;;  %v1923_v41 = vpack.c.bf16 %v1601_v59, %v4880_v4  ;;  %v1925_v3 = vpack.c.bf16 %v1674_v35, %v4882_v5  ;;  %v4914_v4 = vld [vmem:[#allocation5 + $0x50] sm:$0xff]  }
 0x30f   : > { %v1603_v43 = vpop.f32.mrf.mxu0  ;;  %v1676_v8 = vpop.f32.mrf.mxu1 }
 0x310   : > { %v1895_v33 = vcombine.low %v4889_v34, %v4892_v54  ;;  %v1924_v0 = vpack.c.bf16 %v1603_v43, %v1599_v26  ;;  %v1926_v56 = vpack.c.bf16 %v1676_v8, %v1672_v36  ;;  %v4906_v26 = vld [vmem:[#allocation5 + $0x48] sm:$0xff]  }
 0x311   : > { %v1607_v53 = vpop.f32.mrf.mxu0  ;;  %v1680_v47 = vpop.f32.mrf.mxu1 }
 0x313   : > { %v1609_v42 = vpop.f32.mrf.mxu0  ;;  %v1682_v32 = vpop.f32.mrf.mxu1 }
 0x315   : > { %v1611_v29 = vpop.f32.mrf.mxu0  ;;  %v1684_v12 = vpop.f32.mrf.mxu1 }
 0x316   : > { %v1931_v18 = vpack.c.bf16 %v1611_v29, %v1607_v53  ;;  %v1933_v38 = vpack.c.bf16 %v1684_v12, %v1680_v47  ;;  %v4939_v47 = vld [vmem:[#allocation5 + $0x58] sm:$0xff]  }
 0x317   : > { %v1613_v6 = vpop.f32.mrf.mxu0  ;;  %v1686_v55 = vpop.f32.mrf.mxu1 }
 0x318   : > { %v1932_v16 = vpack.c.bf16 %v1613_v6, %v1609_v42  ;;  %v1934_v31 = vpack.c.bf16 %v1686_v55, %v1682_v32 }
 0x319   : > { %v1617_v25 = vpop.f32.mrf.mxu0  ;;  %v1690_v15 = vpop.f32.mrf.mxu1 }
 0x31b   : > { %v1619_v58 = vpop.f32.mrf.mxu0  ;;  %v1692_v2 = vpop.f32.mrf.mxu1 }
 0x31d   : > { %v1621_v46 = vpop.f32.mrf.mxu0  ;;  %v1694_v10 = vpop.f32.mrf.mxu1 }
 0x31e   : > { %v1939_v1 = vpack.c.bf16 %v1621_v46, %v1617_v25  ;;  %v1941_v20 = vpack.c.bf16 %v1694_v10, %v1690_v15  ;;  %v1903_v25 = vrot.slane %v1895_v33, %v4884_v11 }
 0x31f   : > { %v1623_v52 = vpop.f32.mrf.mxu0  ;;  %v1696_v24 = vpop.f32.mrf.mxu1 }
 0x320   : > { %v1940_v7 = vpack.c.bf16 %v1623_v52, %v1619_v58  ;;  %v1942_v23 = vpack.c.bf16 %v1696_v24, %v1692_v2 }
 0x321   : > { %v1627_v49 = vpop.f32.mrf.mxu0  ;;  %v1700_v39 = vpop.f32.mrf.mxu1 }
 0x323   : > { %v1629_v50 = vpop.f32.mrf.mxu0  ;;  %v1702_v48 = vpop.f32.mrf.mxu1 }
 0x325   : > { %v1631_v44 = vpop.f32.mrf.mxu0  ;;  %v1704_v51 = vpop.f32.mrf.mxu1 }
 0x326   : > { %v1947_v30 = vpack.c.bf16 %v1631_v44, %v1627_v49  ;;  %v1949_v19 = vpack.c.bf16 %v1704_v51, %v1700_v39 }
 0x327   : > { %v1633_v63 = vpop.f32.mrf.mxu0  ;;  %v1706_v28 = vpop.f32.mrf.mxu1 }
 0x328   : > { %v1948_v14 = vpack.c.bf16 %v1633_v63, %v1629_v50  ;;  %v1950_v21 = vpack.c.bf16 %v1706_v28, %v1702_v48 }
 0x32a   : > { %1995 = vmatprep.subr.bf16.mxu0 %v1948_v14  ;;  %2068 = vmatprep.subr.bf16.mxu1 %v1950_v21 }
 0x32b   : > { %1996 = vmatpush1.bf16.msra.mxu0 %v1947_v30  ;;  %2069 = vmatpush1.bf16.msra.mxu1 %v1949_v19 }
 0x32c   : > { %1997 = vmatprep.subr.bf16.mxu0 %v1940_v7  ;;  %2070 = vmatprep.subr.bf16.mxu1 %v1942_v23 }
 0x32f   : > { %1998 = vmatpush1.bf16.msra.mxu0 %v1939_v1  ;;  %2071 = vmatpush1.bf16.msra.mxu1 %v1941_v20 }
 0x330   : > { %1999 = vmatprep.subr.bf16.mxu0 %v1932_v16  ;;  %2072 = vmatprep.subr.bf16.mxu1 %v1934_v31 }
 0x333   : > { %2000 = vmatpush1.bf16.msra.mxu0 %v1931_v18  ;;  %2073 = vmatpush1.bf16.msra.mxu1 %v1933_v38 }
 0x334   : > { %2001 = vmatprep.subr.bf16.mxu0 %v1924_v0  ;;  %2074 = vmatprep.subr.bf16.mxu1 %v1926_v56 }
 0x337   : > { %2002 = vmatpush1.bf16.msra.mxu0 %v1923_v41  ;;  %2075 = vmatpush1.bf16.msra.mxu1 %v1925_v3 }
 0x33a   : > { %3814 = vmatmul.mubr.msk.bf16.vlgmr.msra.gmra.mxu0 %vm1121_vm2, %v4898_v13  ;;  %3818 = vmatmul.mubr.msk.bf16.vlgmr.msra.gmra.mxu1 %vm1121_vm2, %v4898_v13 }
 0x33b   : > { %2029 = vmatprep.mubr.bf16.mxu0 %v5566_v27  ;;  %2102 = vmatprep.mubr.bf16.mxu1 %v5566_v27 }
 0x342   : > { %3815 = vmatmul.mubr.msk.bf16.gmra.mxu0 %vm1121_vm2, %v4906_v26  ;;  %3819 = vmatmul.mubr.msk.bf16.gmra.mxu1 %vm1121_vm2, %v4906_v26 }
 0x343   : > { %2039 = vmatprep.mubr.bf16.mxu0 %v5566_v27  ;;  %2112 = vmatprep.mubr.bf16.mxu1 %v5566_v27 }
 0x349   : > { %v4916_v5 = vpop.f32.mrf.mxu0  ;;  %v4918_v57 = vpop.f32.mrf.mxu1 }
 0x34a   : > { %3816 = vmatmul.mubr.msk.bf16.gmra.mxu0 %vm1121_vm2, %v4914_v4  ;;  %3820 = vmatmul.mubr.msk.bf16.gmra.mxu1 %vm1121_vm2, %v4914_v4 }
 0x34b   : > { %v4924_v36 = vpop.f32.mrf.mxu0  ;;  %2049 = vmatprep.mubr.bf16.mxu0 %v5566_v27  ;;  %v4929_v59 = vpop.f32.mrf.mxu1  ;;  %2122 = vmatprep.mubr.bf16.mxu1 %v5566_v27 }
 0x34c   : > { %v1865_v9 = vcombine.low %v4916_v5, %v4924_v36  ;;  %v1866_v35 = vcombine.low %v4918_v57, %v4929_v59 }
 0x34d   : > { %v4934_v43 = vpop.f32.mrf.mxu0  ;;  %v4937_v53 = vpop.f32.mrf.mxu1 }
 0x34e   : > { %v1887_v8 = vrot.slane %v1865_v9, %v4884_v11  ;;  %v1894_v42 = vrot.slane %v1866_v35, %v4884_v11 }
 0x34f   : > { %v4942_v32 = vpop.f32.mrf.mxu0  ;;  %v4944_v29 = vpop.f32.mrf.mxu1 }
 0x350   : > { %v1896_v12 = vcombine.low %v1887_v8, %v1894_v42  ;;  %v1928_v9 = vpack.c.bf16 %v4942_v32, %v4924_v36  ;;  %v1930_v8 = vpack.c.bf16 %v4944_v29, %v4929_v59  ;;  %v1927_v42 = vpack.c.bf16 %v4934_v43, %v4916_v5 }
 0x351   : > { %v1753_v6 = vpop.f32.mrf.mxu0  ;;  %v1826_v55 = vpop.f32.mrf.mxu1 }
 0x352   : > { %3817 = vmatmul.mubr.msk.bf16.gmra.mxu0 %vm1121_vm2, %v4939_v47  ;;  %v1910_v15 = vrot.slane %v1896_v12, %v4884_v11  ;;  %3821 = vmatmul.mubr.msk.bf16.gmra.mxu1 %vm1121_vm2, %v4939_v47  ;;  %v1929_v12 = vpack.c.bf16 %v4937_v53, %v4918_v57 }
 0x353   : > { %v1755_v58 = vpop.f32.mrf.mxu0  ;;  %2165 = vmatprep.mubr.bf16.mxu0 %v5566_v27  ;;  %v1828_v2 = vpop.f32.mrf.mxu1  ;;  %2238 = vmatprep.mubr.bf16.mxu1 %v5566_v27 }
 0x354   : > { %v1911_v46 = vcombine.low %v1903_v25, %v1910_v15 }
 0x355   : > { %v1757_v10 = vpop.f32.mrf.mxu0  ;;  %v1830_v52 = vpop.f32.mrf.mxu1 }
 0x356   : > { %1913 = vst [vmem:[%s4958_s23] ss:$4 sm:$0xff] %v1911_v46  ;;  %v1935_v3 = vpack.c.bf16 %v1757_v10, %v1753_v6  ;;  %v1937_v35 = vpack.c.bf16 %v1830_v52, %v1826_v55 }
 0x357   : > { %v1759_v34 = vpop.f32.mrf.mxu0  ;;  %v1832_v54 = vpop.f32.mrf.mxu1 }
 0x358   : > { %v1936_v0 = vpack.c.bf16 %v1759_v34, %v1755_v58  ;;  %v1938_v41 = vpack.c.bf16 %v1832_v54, %v1828_v2 }
 0x359   : > { %v1763_v33 = vpop.f32.mrf.mxu0  ;;  %v1836_v11 = vpop.f32.mrf.mxu1 }
 0x35b   : > { %v1765_v24 = vpop.f32.mrf.mxu0  ;;  %v1838_v49 = vpop.f32.mrf.mxu1 }
 0x35d   : > { %v1767_v39 = vpop.f32.mrf.mxu0  ;;  %v1840_v50 = vpop.f32.mrf.mxu1 }
 0x35e   : > { %v1943_v38 = vpack.c.bf16 %v1767_v39, %v1763_v33  ;;  %v1945_v56 = vpack.c.bf16 %v1840_v50, %v1836_v11 }
 0x35f   : > { %v1769_v48 = vpop.f32.mrf.mxu0  ;;  %v1842_v44 = vpop.f32.mrf.mxu1 }
 0x360   : > { %v1944_v20 = vpack.c.bf16 %v1769_v48, %v1765_v24  ;;  %v1946_v18 = vpack.c.bf16 %v1842_v44, %v1838_v49 }
 0x361   : > { %v1773_v51 = vpop.f32.mrf.mxu0  ;;  %v1846_v30 = vpop.f32.mrf.mxu1 }
 0x363   : > { %v1775_v63 = vpop.f32.mrf.mxu0  ;;  %v1848_v7 = vpop.f32.mrf.mxu1 }
 0x365   : > { %v1777_v19 = vpop.f32.mrf.mxu0  ;;  %v1850_v14 = vpop.f32.mrf.mxu1 }
 0x366   : > { %v1951_v1 = vpack.c.bf16 %v1777_v19, %v1773_v51  ;;  %v1953_v31 = vpack.c.bf16 %v1850_v14, %v1846_v30 }
 0x367   : > { %v1779_v28 = vpop.f32.mrf.mxu0  ;;  %v1852_v21 = vpop.f32.mrf.mxu1 }
 0x368   : > { %v1952_v23 = vpack.c.bf16 %v1779_v28, %v1775_v63  ;;  %v1954_v16 = vpack.c.bf16 %v1852_v21, %v1848_v7  ;;  %v5599_v7 = vld [vmem:[#allocation17_spill] sm:$0xff]  ;;  %v5601_v28 = vld [vmem:[#allocation19_spill] sm:$0xff] }
 0x36a   : > { %2141 = vmatprep.subr.bf16.mxu0 %v1952_v23  ;;  %2214 = vmatprep.subr.bf16.mxu1 %v1954_v16  ;;  %v5602_v23 = vld [vmem:[#allocation25_spill] sm:$0xff]  ;;  %v5604_v16 = vld [vmem:[#allocation31_spill] sm:$0xff] }
 0x36b   : > { %2142 = vmatpush1.bf16.msra.mxu0 %v1951_v1  ;;  %2215 = vmatpush1.bf16.msra.mxu1 %v1953_v31  ;;  %v5605_v31 = vld [vmem:[#allocation26_spill] sm:$0xff] }
 0x36c   : > { %2143 = vmatprep.subr.bf16.mxu0 %v1944_v20  ;;  %2216 = vmatprep.subr.bf16.mxu1 %v1946_v18 }
 0x36f   : > { %2144 = vmatpush1.bf16.msra.mxu0 %v1943_v38  ;;  %2217 = vmatpush1.bf16.msra.mxu1 %v1945_v56 }
 0x370   : > { %2145 = vmatprep.subr.bf16.mxu0 %v1936_v0  ;;  %2218 = vmatprep.subr.bf16.mxu1 %v1938_v41  ;;  %v5607_v0 = vld [vmem:[#allocation30_spill] sm:$0xff]  ;;  %v5608_v41 = vld [vmem:[#allocation32_spill] sm:$0xff] }
 0x373   : > { %2146 = vmatpush1.bf16.msra.mxu0 %v1935_v3  ;;  %2219 = vmatpush1.bf16.msra.mxu1 %v1937_v35  ;;  %v5609_v35 = vld [vmem:[#allocation21_spill] sm:$0xff] }
 0x374   : > { %2147 = vmatprep.subr.bf16.mxu0 %v1928_v9  ;;  %2220 = vmatprep.subr.bf16.mxu1 %v1930_v8 }
 0x377   : > { %2148 = vmatpush1.bf16.msra.mxu0 %v1927_v42  ;;  %2221 = vmatpush1.bf16.msra.mxu1 %v1929_v12  ;;  %v5610_v42 = vld [vmem:[#allocation22_spill] sm:$0xff] }
 0x37a   : > { %3822 = vmatmul.mubr.msk.bf16.vlgmr.msra.gmra.mxu0 %vm1121_vm2, %v4898_v13  ;;  %3826 = vmatmul.mubr.msk.bf16.vlgmr.msra.gmra.mxu1 %vm1121_vm2, %v4898_v13 }
 0x37b   : > { %2175 = vmatprep.mubr.bf16.mxu0 %v5566_v27  ;;  %2248 = vmatprep.mubr.bf16.mxu1 %v5566_v27 }
 0x382   : > { %3823 = vmatmul.mubr.msk.bf16.gmra.mxu0 %vm1121_vm2, %v4906_v26  ;;  %3827 = vmatmul.mubr.msk.bf16.gmra.mxu1 %vm1121_vm2, %v4906_v26 }
 0x383   : > { %2185 = vmatprep.mubr.bf16.mxu0 %v5566_v27  ;;  %2258 = vmatprep.mubr.bf16.mxu1 %v5566_v27 }
 0x38a   : > { %3824 = vmatmul.mubr.msk.bf16.gmra.mxu0 %vm1121_vm2, %v4914_v4  ;;  %3828 = vmatmul.mubr.msk.bf16.gmra.mxu1 %vm1121_vm2, %v4914_v4 }
 0x38b   : > { %2195 = vmatprep.mubr.bf16.mxu0 %v5566_v27  ;;  %2268 = vmatprep.mubr.bf16.mxu1 %v5566_v27 }
 0x392   : > { %3825 = vmatmul.mubr.msk.bf16.gmra.mxu0 %vm1121_vm2, %v4939_v47  ;;  %3829 = vmatmul.mubr.msk.bf16.gmra.mxu1 %vm1121_vm2, %v4939_v47 }
 0x393   : > { %2448 = vmatprep.mubr.bf16.mxu0 %v5566_v27  ;;  %2521 = vmatprep.mubr.bf16.mxu1 %v5566_v27 }
 0x3fa   : > { %v4993_v13 = vpop.f32.mrf.mxu0  ;;  %v4995_v26 = vpop.f32.mrf.mxu1 }
 0x3fc   : > { %v2023_v5 = vpop.f32.mrf.mxu0  ;;  %v2096_v4 = vpop.f32.mrf.mxu1 }
 0x3fd   : > { %v5006_v49 = vadd.f32 %v2023_v5, %v4509_v17  ;;  %v5009_v39 = vadd.f32 %v2096_v4, %v4511_v22  ;;  %v5611_v5 = vld [vmem:[#allocation28_spill] sm:$0xff] }
 0x3fe   : > { %v4997_v57 = vpop.f32.mrf.mxu0  ;;  %v4999_v36 = vpop.f32.mrf.mxu1 }
 0x400   : > { %v2027_v59 = vpop.f32.mrf.mxu0  ;;  %v2100_v43 = vpop.f32.mrf.mxu1 }
 0x401   : > { %v5012_v48 = vadd.f32 %v2027_v59, %v4521_v45  ;;  %v5015_v44 = vadd.f32 %v2100_v43, %v4525_v40  ;;  %v5600_v45 = vld [vmem:[#allocation18_spill] sm:$0xff]  ;;  %v5612_v59 = vld [vmem:[#allocation33_spill] sm:$0xff] }
 0x402   : > { %v5001_v53 = vpop.f32.mrf.mxu0  ;;  %v5003_v32 = vpop.f32.mrf.mxu1 }
 0x404   : > { %v2033_v47 = vpop.f32.mrf.mxu0  ;;  %v2106_v29 = vpop.f32.mrf.mxu1 }
 0x405   : > { %v5018_v51 = vadd.f32 %v2033_v47, %v4537_v37  ;;  %v5021_v30 = vadd.f32 %v2106_v29, %v4540_v60  ;;  %v5603_v60 = vld [vmem:[#allocation29_spill] sm:$0xff]  ;;  %v5613_v29 = vld [vmem:[#allocation23_spill] sm:$0xff] }
 0x406   : > { %v2035_v6 = vpop.f32.mrf.mxu0  ;;  %v2108_v55 = vpop.f32.mrf.mxu1 }
 0x407   : > { %v5024_v17 = vadd.f32 %v2035_v6, %v4543_v61  ;;  %v5027_v22 = vadd.f32 %v2108_v55, %v4546_v62  ;;  %v5606_v62 = vld [vmem:[#allocation27_spill] sm:$0xff]  ;;  %v5614_v55 = vld [vmem:[#allocation24_spill] sm:$0xff] }
 0x408   : > { %v2037_v25 = vpop.f32.mrf.mxu0  ;;  %v2110_v15 = vpop.f32.mrf.mxu1 }
 0x409   : > { %v5030_v19 = vadd.f32 %v2037_v25, %v5599_v7  ;;  %v5033_v14 = vadd.f32 %v2110_v15, %v5600_v45 }
 0x40a   : > { %v2041_v58 = vpop.f32.mrf.mxu0  ;;  %v2114_v2 = vpop.f32.mrf.mxu1 }
 0x40b   : > { %v2042_v37 = vadd.f32 %v2041_v58, %v5601_v28  ;;  %v5615_v58 = vld [vmem:[#allocation34_spill] sm:$0xff] }
 0x40c   : > { %v2043_v46 = vpop.f32.mrf.mxu0  ;;  %v2116_v10 = vpop.f32.mrf.mxu1 }
 0x40d   : > { %v2044_v8 = vadd.f32 %v2043_v46, %v5609_v35  ;;  %v2117_v12 = vadd.f32 %v2116_v10, %v5610_v42 }
 0x40e   : > { %v2045_v52 = vpop.f32.mrf.mxu0  ;;  %v2118_v34 = vpop.f32.mrf.mxu1 }
 0x40f   : > { %v2046_v6 = vadd.f32 %v2045_v52, %v5613_v29  ;;  %v2119_v25 = vadd.f32 %v2118_v34, %v5614_v55  ;;  %v2312_v28 = vmax.f32 %v2044_v8, 0.0  ;;  %v5620_v8 = vld [vmem:[#allocation14_spill] sm:$0xff] }
 0x410   : > { %v2047_v54 = vpop.f32.mrf.mxu0  ;;  %v2120_v33 = vpop.f32.mrf.mxu1 }
 0x411   : > { %v2048_v21 = vadd.f32 %v2047_v54, %v5602_v23  ;;  %v2121_v18 = vadd.f32 %v2120_v33, %v5605_v31  ;;  %v2319_v52 = vmax.f32 %v2046_v6, 0.0  ;;  %v2321_v31 = vmax.f32 %v2119_v25, 0.0 }
 0x412   : > { %v2051_v11 = vpop.f32.mrf.mxu0  ;;  %v2124_v24 = vpop.f32.mrf.mxu1 }
 0x413   : > { %v2052_v38 = vadd.f32 %v2051_v11, %v5606_v62  ;;  %v2125_v4 = vadd.f32 %v2124_v24, %v5611_v5  ;;  %v2320_v33 = vmax.f32 %v2048_v21, 0.0  ;;  %v2322_v7 = vmax.f32 %v2121_v18, 0.0  ;;  %v5617_v62 = vld [vmem:[#allocation15_spill] sm:$0xff] }
 0x414   : > { %v2053_v50 = vpop.f32.mrf.mxu0  ;;  %v2126_v63 = vpop.f32.mrf.mxu1  ;;  %v2032_v18 = vadd.f32 %v5001_v53, %v5617_v62  ;;  %v2099_v53 = vadd.f32 %v4999_v36, %v5620_v8 }
 0x415   : > { %v2054_v1 = vadd.f32 %v2053_v50, %v5603_v60  ;;  %v2127_v56 = vadd.f32 %v2126_v63, %v5607_v0  ;;  %v2327_v46 = vmax.f32 %v2052_v38, 0.0  ;;  %v2329_v23 = vmax.f32 %v2125_v4, 0.0  ;;  %v5621_v4 = vld [vmem:[#allocation11_spill] sm:$0xff] }
 0x416   : > { %v2055_v40 = vpop.f32.mrf.mxu0  ;;  %v2128_v61 = vpop.f32.mrf.mxu1  ;;  %v2306_v38 = vmax.f32 %v5033_v14, 0.0  ;;  %v2311_v0 = vmax.f32 %v2042_v37, 0.0  ;;  %v2298_v14 = vmax.f32 %v5021_v30, 0.0  ;;  %v2303_v37 = vmax.f32 %v5024_v17, 0.0 }
 0x417   : > { %v2056_v20 = vadd.f32 %v2055_v40, %v5604_v16  ;;  %v2129_v3 = vadd.f32 %v2128_v61, %v5608_v41  ;;  %v2328_v11 = vmax.f32 %v2054_v1, 0.0  ;;  %v2330_v45 = vmax.f32 %v2127_v56, 0.0  ;;  %v5616_v40 = vld [vmem:[#allocation20_spill] sm:$0xff]  ;;  %v5618_v56 = vld [vmem:[#allocation13_spill] sm:$0xff] }
 0x418   : > { %v2057_v9 = vpop.f32.mrf.mxu0  ;;  %v2130_v47 = vpop.f32.mrf.mxu1  ;;  %v2115_v24 = vadd.f32 %v2114_v2, %v5616_v40  ;;  %v2314_v16 = vmax.f32 %v2117_v12, 0.0  ;;  %v2360_v1 = vpack.c.bf16 %v2320_v33, %v2312_v28  ;;  %v2026_v41 = vadd.f32 %v4997_v57, %v5618_v56 }
 0x419   : > { %v2058_v43 = vadd.f32 %v2057_v9, %v5612_v59  ;;  %v2335_v15 = vmax.f32 %v2056_v20, 0.0  ;;  %v2131_v54 = vadd.f32 %v2130_v47, %v5615_v58  ;;  %v2337_v50 = vmax.f32 %v2129_v3, 0.0  ;;  %v5619_v3 = vld [vmem:[#allocation16_spill] sm:$0xff] }
 0x41a   : > { %v2304_v20 = vmax.f32 %v5030_v19, 0.0  ;;  %v2362_v2 = vpack.c.bf16 %v2322_v7, %v2314_v16  ;;  %v2105_v9 = vadd.f32 %v5003_v32, %v5619_v3  ;;  %v2296_v19 = vmax.f32 %v5018_v51, 0.0  ;;  %v5622_v47 = vld [vmem:[#allocation12_spill] sm:$0xff]  ;;  %v5623_v3 = vld [vmem:[#allocation37_spill] sm:$0xff] }
 0x41b   : > { %v2336_v63 = vmax.f32 %v2058_v43, 0.0  ;;  %v2338_v10 = vmax.f32 %v2131_v54, 0.0  ;;  %v2367_v61 = vpack.c.bf16 %v2335_v15, %v2327_v46  ;;  %v2369_v21 = vpack.c.bf16 %v2337_v50, %v2329_v23  ;;  %v5073_v54 = vld [vmem:[#allocation5 + $0x60] sm:$0xff]   ;;  %v5093_v50 = vld [vmem:[#allocation5 + $0x70] sm:$0xff]   ;;  %v5109_v23 = vld [vmem:[#allocation5 + $0x78] sm:$0xff]  }
 0x41c   : > { %v2313_v35 = vmax.f32 %v2115_v24, 0.0  ;;  %v2359_v42 = vpack.c.bf16 %v2319_v52, %v2311_v0  ;;  %v2288_v12 = vmax.f32 %v5012_v48, 0.0  ;;  %v2305_v57 = vmax.f32 %v5027_v22, 0.0 }
 0x41d   : > { %v2368_v60 = vpack.c.bf16 %v2336_v63, %v2328_v11  ;;  %v2370_v34 = vpack.c.bf16 %v2338_v10, %v2330_v45  ;;  %v2352_v32 = vpack.c.bf16 %v2304_v20, %v2296_v19  ;;  %v2022_v51 = vadd.f32 %v4993_v13, %v5621_v4  ;;  %v5624_v19 = vld [vmem:[#allocation38_spill] sm:$0xff] }
 0x41e   : > { %v2361_v5 = vpack.c.bf16 %v2321_v31, %v2313_v35  ;;  %v2290_v59 = vmax.f32 %v5015_v44, 0.0  ;;  %v2295_v43 = vmax.f32 %v2032_v18, 0.0  ;;  %v2354_v36 = vpack.c.bf16 %v2306_v38, %v2298_v14 }
 0x41f   : > { %2424 = vmatprep.subr.bf16.mxu0 %v2368_v60  ;;  %2497 = vmatprep.subr.bf16.mxu1 %v2370_v34  ;;  %v2095_v30 = vadd.f32 %v4995_v26, %v5622_v47  ;;  %v2280_v17 = vmax.f32 %v5006_v49, 0.0  ;;  %v2297_v29 = vmax.f32 %v2105_v9, 0.0  ;;  %v2282_v48 = vmax.f32 %v5009_v39, 0.0  ;;  %v5081_v39 = vld [vmem:[#allocation5 + $0x68] sm:$0xff]   ;;  %v5631_v47 = vld [vmem:[#allocation49_spill] sm:$0xff] }
 0x420   : > { %2425 = vmatpush1.bf16.msra.mxu0 %v2367_v61  ;;  %2498 = vmatpush1.bf16.msra.mxu1 %v2369_v21  ;;  %v2287_v22 = vmax.f32 %v2026_v41, 0.0  ;;  %v2351_v6 = vpack.c.bf16 %v2303_v37, %v2295_v43  ;;  %v2289_v55 = vmax.f32 %v2099_v53, 0.0  ;;  %v2279_v44 = vmax.f32 %v2022_v51, 0.0  ;;  %v5625_v53 = vld [vmem:[#allocation41_spill] sm:$0xff]  ;;  %v5626_v37 = vld [vmem:[#allocation42_spill] sm:$0xff]  ;;  %v5629_v51 = vld [vmem:[#allocation47_spill] sm:$0xff] }
 0x421   : > { %2426 = vmatprep.subr.bf16.mxu0 %v2360_v1  ;;  %2499 = vmatprep.subr.bf16.mxu1 %v2362_v2  ;;  %v2353_v13 = vpack.c.bf16 %v2305_v57, %v2297_v29  ;;  %v2344_v25 = vpack.c.bf16 %v2288_v12, %v2280_v17  ;;  %v2346_v15 = vpack.c.bf16 %v2290_v59, %v2282_v48  ;;  %v2281_v58 = vmax.f32 %v2095_v30, 0.0  ;;  %v5627_v12 = vld [vmem:[#allocation45_spill] sm:$0xff]  ;;  %v5630_v43 = vld [vmem:[#allocation48_spill] sm:$0xff]  ;;  %v5632_v17 = vld [vmem:[#allocation50_spill] sm:$0xff] }
 0x422   : > { %v2343_v26 = vpack.c.bf16 %v2287_v22, %v2279_v44  ;;  %v5633_v22 = vld [vmem:[#allocation51_spill] sm:$0xff] }
 0x423   : > { %v2345_v49 = vpack.c.bf16 %v2289_v55, %v2281_v58  ;;  %v5634_v55 = vld [vmem:[#allocation57_spill] sm:$0xff] }
 0x424   : > { %2427 = vmatpush1.bf16.msra.mxu0 %v2359_v42  ;;  %2500 = vmatpush1.bf16.msra.mxu1 %v2361_v5  ;;  %v5628_v5 = vld [vmem:[#allocation46_spill] sm:$0xff] }
 0x425   : > { %2428 = vmatprep.subr.bf16.mxu0 %v2352_v32  ;;  %2501 = vmatprep.subr.bf16.mxu1 %v2354_v36 }
 0x428   : > { %2429 = vmatpush1.bf16.msra.mxu0 %v2351_v6  ;;  %2502 = vmatpush1.bf16.msra.mxu1 %v2353_v13 }
 0x429   : > { %2430 = vmatprep.subr.bf16.mxu0 %v2344_v25  ;;  %2503 = vmatprep.subr.bf16.mxu1 %v2346_v15  ;;  %v5635_v25 = vld [vmem:[#allocation61_spill] sm:$0xff]  ;;  %v5636_v15 = vld [vmem:[#allocation63_spill] sm:$0xff] }
 0x42c   : > { %2431 = vmatpush1.bf16.msra.mxu0 %v2343_v26  ;;  %2504 = vmatpush1.bf16.msra.mxu1 %v2345_v49  ;;  %v5637_v49 = vld [vmem:[#allocation58_spill] sm:$0xff] }
 0x42f   : > { %3834 = vmatmul.mubr.msk.bf16.vlgmr.msra.gmra.mxu0 %vm1121_vm2, %v5073_v54  ;;  %3838 = vmatmul.mubr.msk.bf16.vlgmr.msra.gmra.mxu1 %vm1121_vm2, %v5073_v54 }
 0x430   : > { %2458 = vmatprep.mubr.bf16.mxu0 %v5566_v27  ;;  %2531 = vmatprep.mubr.bf16.mxu1 %v5566_v27 }
 0x437   : > { %3835 = vmatmul.mubr.msk.bf16.gmra.mxu0 %vm1121_vm2, %v5081_v39  ;;  %3839 = vmatmul.mubr.msk.bf16.gmra.mxu1 %vm1121_vm2, %v5081_v39 }
 0x438   : > { %2468 = vmatprep.mubr.bf16.mxu0 %v5566_v27  ;;  %2541 = vmatprep.mubr.bf16.mxu1 %v5566_v27 }
 0x43a   : > { %v5089_v33 = vpop.f32.mrf.mxu0  ;;  %v5091_v11 = vpop.f32.mrf.mxu1 }
 0x43c   : > { %v2169_v63 = vpop.f32.mrf.mxu0  ;;  %v2242_v7 = vpop.f32.mrf.mxu1 }
 0x43d   : > { %v5118_v9 = vadd.f32 %v2169_v63, %v5623_v3  ;;  %v5121_v35 = vadd.f32 %v2242_v7, %v5624_v19  ;;  %v5638_v7 = vld [vmem:[#allocation59_spill] sm:$0xff]  ;;  %v5642_v3 = vld [vmem:[#allocation54_spill] sm:$0xff]  ;;  %v5643_v19 = vld [vmem:[#allocation60_spill] sm:$0xff] }
 0x43e   : > { %v5095_v46 = vpop.f32.mrf.mxu0  ;;  %v5097_v45 = vpop.f32.mrf.mxu1 }
 0x43f   : > { %3836 = vmatmul.mubr.msk.bf16.gmra.mxu0 %vm1121_vm2, %v5093_v50  ;;  %3840 = vmatmul.mubr.msk.bf16.gmra.mxu1 %vm1121_vm2, %v5093_v50 }
 0x440   : > { %v2173_v10 = vpop.f32.mrf.mxu0  ;;  %2478 = vmatprep.mubr.bf16.mxu0 %v5566_v27  ;;  %v2246_v40 = vpop.f32.mrf.mxu1  ;;  %2551 = vmatprep.mubr.bf16.mxu1 %v5566_v27 }
 0x441   : > { %v5124_v14 = vadd.f32 %v2173_v10, %v5625_v53  ;;  %v5127_v42 = vadd.f32 %v2246_v40, %v5626_v37  ;;  %v5639_v40 = vld [vmem:[#allocation62_spill] sm:$0xff]  ;;  %v5644_v53 = vld [vmem:[#allocation65_spill] sm:$0xff] }
 0x442   : > { %v5105_v24 = vpop.f32.mrf.mxu0  ;;  %v5107_v28 = vpop.f32.mrf.mxu1 }
 0x444   : > { %v2179_v60 = vpop.f32.mrf.mxu0  ;;  %v2252_v16 = vpop.f32.mrf.mxu1 }
 0x445   : > { %v5130_v57 = vadd.f32 %v2179_v60, %v5627_v12  ;;  %v5133_v32 = vadd.f32 %v2252_v16, %v5628_v5  ;;  %v5640_v16 = vld [vmem:[#allocation64_spill] sm:$0xff]  ;;  %v5645_v12 = vld [vmem:[#allocation55_spill] sm:$0xff] }
 0x446   : > { %v2181_v52 = vpop.f32.mrf.mxu0  ;;  %v2254_v61 = vpop.f32.mrf.mxu1 }
 0x447   : > { %3837 = vmatmul.mubr.msk.bf16.gmra.mxu0 %vm1121_vm2, %v5109_v23  ;;  %3841 = vmatmul.mubr.msk.bf16.gmra.mxu1 %vm1121_vm2, %v5109_v23  ;;  %v5136_v59 = vadd.f32 %v2181_v52, %v5629_v51  ;;  %v5139_v36 = vadd.f32 %v2254_v61, %v5630_v43  ;;  %v5646_v51 = vld [vmem:[#allocation56_spill] sm:$0xff] }
 0x448   : > { %v2183_v34 = vpop.f32.mrf.mxu0  ;;  %2594 = vmatprep.mubr.bf16.mxu0 %v5566_v27  ;;  %v2256_v20 = vpop.f32.mrf.mxu1  ;;  %2667 = vmatprep.mubr.bf16.mxu1 %v5566_v27 }
 0x449   : > { %v5142_v30 = vadd.f32 %v2183_v34, %v5631_v47  ;;  %v5145_v29 = vadd.f32 %v2256_v20, %v5632_v17  ;;  %v5641_v34 = vld [vmem:[#allocation53_spill] sm:$0xff] }
 0x44a   : > { %v2187_v31 = vpop.f32.mrf.mxu0  ;;  %v2260_v21 = vpop.f32.mrf.mxu1 }
 0x44b   : > { %v2188_v6 = vadd.f32 %v2187_v31, %v5633_v22 }
 0x44c   : > { %v2189_v1 = vpop.f32.mrf.mxu0  ;;  %v2262_v62 = vpop.f32.mrf.mxu1 }
 0x44d   : > { %v2190_v20 = vadd.f32 %v2189_v1, %v5641_v34  ;;  %v2263_v31 = vadd.f32 %v2262_v62, %v5642_v3  ;;  %v5650_v34 = vld [vmem:[#allocation39_spill] sm:$0xff]  ;;  %v5651_v3 = vld [vmem:[#allocation44_spill] sm:$0xff] }
 0x44e   : > { %v2191_v18 = vpop.f32.mrf.mxu0  ;;  %v2264_v38 = vpop.f32.mrf.mxu1 }
 0x44f   : > { %v2192_v5 = vadd.f32 %v2191_v18, %v5645_v12  ;;  %v5653_v12 = vld [vmem:[#allocation35_spill] sm:$0xff] }
 0x450   : > { %v2193_v0 = vpop.f32.mrf.mxu0  ;;  %v2266_v2 = vpop.f32.mrf.mxu1 }
 0x451   : > { %v2194_v13 = vadd.f32 %v2193_v0, %v5634_v55  ;;  %v2267_v63 = vadd.f32 %v2266_v2, %v5637_v49  ;;  %v2265_v2 = vadd.f32 %v2264_v38, %v5646_v51  ;;  %v2323_v18 = vmax.f32 %v2192_v5, 0.0 }
 0x452   : > { %v2197_v56 = vpop.f32.mrf.mxu0  ;;  %v2270_v41 = vpop.f32.mrf.mxu1  ;;  %v2294_v5 = vmax.f32 %v5127_v42, 0.0 }
 0x453   : > { %v2198_v10 = vadd.f32 %v2197_v56, %v5638_v7  ;;  %v2271_v0 = vadd.f32 %v2270_v41, %v5643_v19  ;;  %v5647_v56 = vld [vmem:[#allocation66_spill] sm:$0xff]  ;;  %v2326_v55 = vmax.f32 %v2267_v63, 0.0 }
 0x454   : > { %v2199_v8 = vpop.f32.mrf.mxu0  ;;  %v2272_v4 = vpop.f32.mrf.mxu1 }
 0x455   : > { %v2200_v44 = vadd.f32 %v2199_v8, %v5635_v25  ;;  %v2273_v60 = vadd.f32 %v2272_v4, %v5639_v40  ;;  %v2324_v4 = vmax.f32 %v2194_v13, 0.0  ;;  %v2331_v1 = vmax.f32 %v2198_v10, 0.0 }
 0x456   : > { %v2201_v48 = vpop.f32.mrf.mxu0  ;;  %v2274_v26 = vpop.f32.mrf.mxu1  ;;  %v2333_v49 = vmax.f32 %v2271_v0, 0.0  ;;  %v2318_v40 = vmax.f32 %v2263_v31, 0.0  ;;  %v2310_v10 = vmax.f32 %v5145_v29, 0.0  ;;  %v2251_v31 = vadd.f32 %v5107_v28, %v5651_v3  ;;  %v5652_v0 = vld [vmem:[#allocation40_spill] sm:$0xff] }
 0x457   : > { %v2202_v58 = vadd.f32 %v2201_v48, %v5636_v15  ;;  %v2275_v52 = vadd.f32 %v2274_v26, %v5640_v16  ;;  %v2332_v17 = vmax.f32 %v2200_v44, 0.0  ;;  %v2334_v25 = vmax.f32 %v2273_v60, 0.0  ;;  %v5648_v15 = vld [vmem:[#allocation52_spill] sm:$0xff] }
 0x458   : > { %v2203_v61 = vpop.f32.mrf.mxu0  ;;  %v2276_v37 = vpop.f32.mrf.mxu1  ;;  %v2261_v41 = vadd.f32 %v2260_v21, %v5648_v15  ;;  %v2316_v26 = vmax.f32 %v2190_v20, 0.0  ;;  %v2315_v60 = vmax.f32 %v2188_v6, 0.0  ;;  %v2366_v21 = vpack.c.bf16 %v2326_v55, %v2318_v40 }
 0x459   : > { %v2204_v8 = vadd.f32 %v2203_v61, %v5644_v53  ;;  %v2339_v43 = vmax.f32 %v2202_v58, 0.0  ;;  %v2277_v47 = vadd.f32 %v2276_v37, %v5647_v56  ;;  %v2341_v48 = vmax.f32 %v2275_v52, 0.0  ;;  %v5649_v52 = vld [vmem:[#allocation43_spill] sm:$0xff] }
 0x45a   : > { %v2308_v58 = vmax.f32 %v5142_v30, 0.0  ;;  %v2325_v61 = vmax.f32 %v2265_v2, 0.0  ;;  %v2364_v13 = vpack.c.bf16 %v2324_v4, %v2316_v26  ;;  %v2178_v63 = vadd.f32 %v5105_v24, %v5649_v52 }
 0x45b   : > { %v2340_v22 = vmax.f32 %v2204_v8, 0.0  ;;  %v2342_v62 = vmax.f32 %v2277_v47, 0.0  ;;  %v2371_v16 = vpack.c.bf16 %v2339_v43, %v2331_v1  ;;  %v2373_v44 = vpack.c.bf16 %v2341_v48, %v2333_v49 }
 0x45c   : > { %v2172_v20 = vadd.f32 %v5095_v46, %v5650_v34  ;;  %v2300_v30 = vmax.f32 %v5130_v57, 0.0  ;;  %v2317_v19 = vmax.f32 %v2261_v41, 0.0  ;;  %v2245_v24 = vadd.f32 %v5097_v45, %v5652_v0  ;;  %v5654_v45 = vld [vmem:[#allocation36_spill] sm:$0xff] }
 0x45d   : > { %v2372_v7 = vpack.c.bf16 %v2340_v22, %v2332_v17  ;;  %v2374_v38 = vpack.c.bf16 %v2342_v62, %v2334_v25  ;;  %v2302_v29 = vmax.f32 %v5133_v32, 0.0  ;;  %v2307_v6 = vmax.f32 %v5136_v59, 0.0 }
 0x45e   : > { %v2363_v53 = vpack.c.bf16 %v2323_v18, %v2315_v60  ;;  %v2292_v8 = vmax.f32 %v5124_v14, 0.0  ;;  %v2309_v46 = vmax.f32 %v5139_v36, 0.0  ;;  %v2356_v37 = vpack.c.bf16 %v2308_v58, %v2300_v30 }
 0x45f   : > { %2570 = vmatprep.subr.bf16.mxu0 %v2372_v7  ;;  %2643 = vmatprep.subr.bf16.mxu1 %v2374_v38  ;;  %v2365_v28 = vpack.c.bf16 %v2325_v61, %v2317_v19  ;;  %v2168_v57 = vadd.f32 %v5089_v33, %v5653_v12  ;;  %v2299_v51 = vmax.f32 %v2178_v63, 0.0  ;;  %v2358_v2 = vpack.c.bf16 %v2310_v10, %v2302_v29 }
 0x460   : > { %2571 = vmatpush1.bf16.msra.mxu0 %v2371_v16  ;;  %2644 = vmatpush1.bf16.msra.mxu1 %v2373_v44  ;;  %v2241_v32 = vadd.f32 %v5091_v11, %v5654_v45  ;;  %v2284_v59 = vmax.f32 %v5118_v9, 0.0  ;;  %v2301_v43 = vmax.f32 %v2251_v31, 0.0  ;;  %v2286_v14 = vmax.f32 %v5121_v35, 0.0 }
 0x461   : > { %2572 = vmatprep.subr.bf16.mxu0 %v2364_v13  ;;  %2645 = vmatprep.subr.bf16.mxu1 %v2366_v21  ;;  %v2291_v36 = vmax.f32 %v2172_v20, 0.0  ;;  %v2355_v56 = vpack.c.bf16 %v2307_v6, %v2299_v51  ;;  %v2293_v47 = vmax.f32 %v2245_v24, 0.0  ;;  %v2283_v42 = vmax.f32 %v2168_v57, 0.0 }
 0x462   : > { %v2348_v33 = vpack.c.bf16 %v2292_v8, %v2284_v59  ;;  %v2357_v4 = vpack.c.bf16 %v2309_v46, %v2301_v43  ;;  %v2350_v17 = vpack.c.bf16 %v2294_v5, %v2286_v14  ;;  %v2285_v48 = vmax.f32 %v2241_v32, 0.0 }
 0x463   : > { %v2347_v11 = vpack.c.bf16 %v2291_v36, %v2283_v42 }
 0x464   : > { %2573 = vmatpush1.bf16.msra.mxu0 %v2363_v53  ;;  %2646 = vmatpush1.bf16.msra.mxu1 %v2365_v28  ;;  %v2349_v9 = vpack.c.bf16 %v2293_v47, %v2285_v48 }
 0x465   : > { %2574 = vmatprep.subr.bf16.mxu0 %v2356_v37  ;;  %2647 = vmatprep.subr.bf16.mxu1 %v2358_v2 }
 0x468   : > { %2575 = vmatpush1.bf16.msra.mxu0 %v2355_v56  ;;  %2648 = vmatpush1.bf16.msra.mxu1 %v2357_v4 }
 0x469   : > { %2576 = vmatprep.subr.bf16.mxu0 %v2348_v33  ;;  %2649 = vmatprep.subr.bf16.mxu1 %v2350_v17 }
 0x46c   : > { %2577 = vmatpush1.bf16.msra.mxu0 %v2347_v11  ;;  %2650 = vmatpush1.bf16.msra.mxu1 %v2349_v9 }
 0x46f   : > { %3842 = vmatmul.mubr.msk.bf16.vlgmr.msra.gmra.mxu0 %vm1121_vm2, %v5073_v54  ;;  %3846 = vmatmul.mubr.msk.bf16.vlgmr.msra.gmra.mxu1 %vm1121_vm2, %v5073_v54 }
 0x470   : > { %2604 = vmatprep.mubr.bf16.mxu0 %v5566_v27  ;;  %2677 = vmatprep.mubr.bf16.mxu1 %v5566_v27 }
 0x477   : > { %3843 = vmatmul.mubr.msk.bf16.gmra.mxu0 %vm1121_vm2, %v5081_v39  ;;  %3847 = vmatmul.mubr.msk.bf16.gmra.mxu1 %vm1121_vm2, %v5081_v39 }
 0x478   : > { %2614 = vmatprep.mubr.bf16.mxu0 %v5566_v27  ;;  %2687 = vmatprep.mubr.bf16.mxu1 %v5566_v27 }
 0x47f   : > { %3844 = vmatmul.mubr.msk.bf16.gmra.mxu0 %vm1121_vm2, %v5093_v50  ;;  %3848 = vmatmul.mubr.msk.bf16.gmra.mxu1 %vm1121_vm2, %v5093_v50 }
 0x480   : > { %2624 = vmatprep.mubr.bf16.mxu0 %v5566_v27  ;;  %2697 = vmatprep.mubr.bf16.mxu1 %v5566_v27 }
 0x487   : > { %3845 = vmatmul.mubr.msk.bf16.gmra.mxu0 %vm1121_vm2, %v5109_v23  ;;  %3849 = vmatmul.mubr.msk.bf16.gmra.mxu1 %vm1121_vm2, %v5109_v23 }
 0x488   : > { %2877 = vmatprep.mubr.bf16.mxu0 %v5566_v27  ;;  %2950 = vmatprep.mubr.bf16.mxu1 %v5566_v27 }
 0x4ef   : > { %v5209_v54 = vpop.f32.mrf.mxu0  ;;  %v5211_v39 = vpop.f32.mrf.mxu1 }
 0x4f1   : > { %v5213_v35 = vpop.f32.mrf.mxu0  ;;  %v5215_v50 = vpop.f32.mrf.mxu1 }
 0x4f3   : > { %v5217_v22 = vpop.f32.mrf.mxu0  ;;  %v5219_v55 = vpop.f32.mrf.mxu1 }
 0x4f5   : > { %v5221_v1 = vpop.f32.mrf.mxu0  ;;  %v5223_v25 = vpop.f32.mrf.mxu1 }
 0x4f7   : > { %v5225_v23 = vpop.f32.mrf.mxu0  ;;  %v5227_v62 = vpop.f32.mrf.mxu1 }
 0x4f8   : > { %v2724_v42 = vmax.f32 %v5225_v23, 0.0  ;;  %v2726_v11 = vmax.f32 %v5227_v62, 0.0  ;;  %v2711_v23 = vmax.f32 %v5215_v50, 0.0  ;;  %v2708_v62 = vmax.f32 %v5209_v54, 0.0  ;;  %v5253_v54 = vld [vmem:[#allocation5 + $0x88] sm:$0xff]  }
 0x4f9   : > { %v2462_v15 = vpop.f32.mrf.mxu0  ;;  %v2535_v41 = vpop.f32.mrf.mxu1 }
 0x4fa   : > { %v2725_v37 = vmax.f32 %v2462_v15, 0.0  ;;  %v2727_v56 = vmax.f32 %v2535_v41, 0.0 }
 0x4fb   : > { %v5229_v26 = vpop.f32.mrf.mxu0  ;;  %v5231_v49 = vpop.f32.mrf.mxu1 }
 0x4fc   : > { %v2732_v17 = vmax.f32 %v5229_v26, 0.0  ;;  %v2734_v9 = vmax.f32 %v5231_v49, 0.0  ;;  %v2719_v26 = vmax.f32 %v5223_v25, 0.0  ;;  %v2716_v49 = vmax.f32 %v5217_v22, 0.0 }
 0x4fd   : > { %v2466_v7 = vpop.f32.mrf.mxu0  ;;  %v2539_v40 = vpop.f32.mrf.mxu1 }
 0x4fe   : > { %v2733_v28 = vmax.f32 %v2466_v7, 0.0  ;;  %v2735_v47 = vmax.f32 %v2539_v40, 0.0  ;;  %v2709_v40 = vmax.f32 %v5213_v35, 0.0  ;;  %v2718_v35 = vmax.f32 %v5219_v55, 0.0 }
 0x4ff   : > { %v2470_v18 = vpop.f32.mrf.mxu0  ;;  %v2543_v16 = vpop.f32.mrf.mxu1  ;;  %v2772_v50 = vpack.c.bf16 %v2716_v49, %v2708_v62 }
 0x500   : > { %v2740_v12 = vmax.f32 %v2470_v18, 0.0  ;;  %v2742_v51 = vmax.f32 %v2543_v16, 0.0  ;;  %v2781_v15 = vpack.c.bf16 %v2733_v28, %v2725_v37  ;;  %v2783_v41 = vpack.c.bf16 %v2735_v47, %v2727_v56 }
 0x501   : > { %v2472_v38 = vpop.f32.mrf.mxu0  ;;  %v2545_v58 = vpop.f32.mrf.mxu1  ;;  %v2717_v18 = vmax.f32 %v5221_v1, 0.0  ;;  %v2780_v16 = vpack.c.bf16 %v2732_v17, %v2724_v42  ;;  %v2775_v1 = vpack.c.bf16 %v2719_v26, %v2711_v23 }
 0x502   : > { %v2741_v34 = vmax.f32 %v2472_v38, 0.0  ;;  %v2743_v29 = vmax.f32 %v2545_v58, 0.0  ;;  %v2782_v38 = vpack.c.bf16 %v2734_v9, %v2726_v11  ;;  %v2710_v58 = vmax.f32 %v5211_v39, 0.0  ;;  %v5261_v39 = vld [vmem:[#allocation5 + $0x90] sm:$0xff]  }
 0x503   : > { %v2474_v61 = vpop.f32.mrf.mxu0  ;;  %v2547_v13 = vpop.f32.mrf.mxu1 }
 0x504   : > { %v2748_v2 = vmax.f32 %v2474_v61, 0.0  ;;  %v2750_v59 = vmax.f32 %v2547_v13, 0.0  ;;  %v2773_v61 = vpack.c.bf16 %v2717_v18, %v2709_v40  ;;  %v2774_v25 = vpack.c.bf16 %v2718_v35, %v2710_v58  ;;  %v5245_v13 = vld [vmem:[#allocation5 + $0x80] sm:$0xff]  }
 0x505   : > { %v2476_v44 = vpop.f32.mrf.mxu0  ;;  %v2549_v52 = vpop.f32.mrf.mxu1 }
 0x506   : > { %v2749_v31 = vmax.f32 %v2476_v44, 0.0  ;;  %v2751_v6 = vmax.f32 %v2549_v52, 0.0  ;;  %v2788_v48 = vpack.c.bf16 %v2748_v2, %v2740_v12  ;;  %v2790_v7 = vpack.c.bf16 %v2750_v59, %v2742_v51 }
 0x507   : > { %v2480_v63 = vpop.f32.mrf.mxu0  ;;  %v2553_v10 = vpop.f32.mrf.mxu1 }
 0x508   : > { %v2756_v20 = vmax.f32 %v2480_v63, 0.0  ;;  %v2758_v30 = vmax.f32 %v2553_v10, 0.0  ;;  %v2789_v43 = vpack.c.bf16 %v2749_v31, %v2741_v34  ;;  %v2791_v33 = vpack.c.bf16 %v2751_v6, %v2743_v29  ;;  %v5285_v34 = vld [vmem:[#allocation5 + $0x98] sm:$0xff]  }
 0x509   : > { %v2482_v60 = vpop.f32.mrf.mxu0  ;;  %v2555_v21 = vpop.f32.mrf.mxu1 }
 0x50a   : > { %v2757_v19 = vmax.f32 %v2482_v60, 0.0  ;;  %v2759_v53 = vmax.f32 %v2555_v21, 0.0 }
 0x50b   : > { %v2484_v3 = vpop.f32.mrf.mxu0  ;;  %v2557_v24 = vpop.f32.mrf.mxu1 }
 0x50c   : > { %v2764_v0 = vmax.f32 %v2484_v3, 0.0  ;;  %v2766_v8 = vmax.f32 %v2557_v24, 0.0 }
 0x50d   : > { %v2486_v46 = vpop.f32.mrf.mxu0  ;;  %v2559_v5 = vpop.f32.mrf.mxu1 }
 0x50e   : > { %v2765_v57 = vmax.f32 %v2486_v46, 0.0  ;;  %v2796_v45 = vpack.c.bf16 %v2764_v0, %v2756_v20  ;;  %v2767_v32 = vmax.f32 %v2559_v5, 0.0  ;;  %v2798_v14 = vpack.c.bf16 %v2766_v8, %v2758_v30 }
 0x510   : > { %v2797_v36 = vpack.c.bf16 %v2765_v57, %v2757_v19  ;;  %v2799_v4 = vpack.c.bf16 %v2767_v32, %v2759_v53 }
 0x512   : > { %2853 = vmatprep.subr.bf16.mxu0 %v2797_v36  ;;  %2926 = vmatprep.subr.bf16.mxu1 %v2799_v4 }
 0x513   : > { %2854 = vmatpush1.bf16.msra.mxu0 %v2796_v45  ;;  %2927 = vmatpush1.bf16.msra.mxu1 %v2798_v14 }
 0x514   : > { %2855 = vmatprep.subr.bf16.mxu0 %v2789_v43  ;;  %2928 = vmatprep.subr.bf16.mxu1 %v2791_v33 }
 0x517   : > { %2856 = vmatpush1.bf16.msra.mxu0 %v2788_v48  ;;  %2929 = vmatpush1.bf16.msra.mxu1 %v2790_v7 }
 0x518   : > { %2857 = vmatprep.subr.bf16.mxu0 %v2781_v15  ;;  %2930 = vmatprep.subr.bf16.mxu1 %v2783_v41 }
 0x51b   : > { %2858 = vmatpush1.bf16.msra.mxu0 %v2780_v16  ;;  %2931 = vmatpush1.bf16.msra.mxu1 %v2782_v38 }
 0x51c   : > { %2859 = vmatprep.subr.bf16.mxu0 %v2773_v61  ;;  %2932 = vmatprep.subr.bf16.mxu1 %v2775_v1 }
 0x51f   : > { %2860 = vmatpush1.bf16.msra.mxu0 %v2772_v50  ;;  %2933 = vmatpush1.bf16.msra.mxu1 %v2774_v25 }
 0x522   : > { %3854 = vmatmul.mubr.msk.bf16.vlgmr.msra.gmra.mxu0 %vm1121_vm2, %v5245_v13  ;;  %3858 = vmatmul.mubr.msk.bf16.vlgmr.msra.gmra.mxu1 %vm1121_vm2, %v5245_v13 }
 0x523   : > { %2887 = vmatprep.mubr.bf16.mxu0 %v5566_v27  ;;  %2960 = vmatprep.mubr.bf16.mxu1 %v5566_v27 }
 0x52a   : > { %3855 = vmatmul.mubr.msk.bf16.gmra.mxu0 %vm1121_vm2, %v5253_v54  ;;  %3859 = vmatmul.mubr.msk.bf16.gmra.mxu1 %vm1121_vm2, %v5253_v54 }
 0x52b   : > { %2897 = vmatprep.mubr.bf16.mxu0 %v5566_v27  ;;  %2970 = vmatprep.mubr.bf16.mxu1 %v5566_v27 }
 0x52f   : > { %v5263_v22 = vpop.f32.mrf.mxu0  ;;  %v5265_v55 = vpop.f32.mrf.mxu1 }
 0x531   : > { %v5267_v44 = vpop.f32.mrf.mxu0  ;;  %v5269_v52 = vpop.f32.mrf.mxu1 }
 0x532   : > { %3856 = vmatmul.mubr.msk.bf16.gmra.mxu0 %vm1121_vm2, %v5261_v39  ;;  %3860 = vmatmul.mubr.msk.bf16.gmra.mxu1 %vm1121_vm2, %v5261_v39 }
 0x533   : > { %v5275_v63 = vpop.f32.mrf.mxu0  ;;  %2907 = vmatprep.mubr.bf16.mxu0 %v5566_v27  ;;  %v5278_v10 = vpop.f32.mrf.mxu1  ;;  %2980 = vmatprep.mubr.bf16.mxu1 %v5566_v27 }
 0x535   : > { %v5281_v60 = vpop.f32.mrf.mxu0  ;;  %v5283_v21 = vpop.f32.mrf.mxu1 }
 0x537   : > { %v5287_v20 = vpop.f32.mrf.mxu0  ;;  %v5289_v3 = vpop.f32.mrf.mxu1 }
 0x539   : > { %v5291_v31 = vpop.f32.mrf.mxu0  ;;  %v5293_v30 = vpop.f32.mrf.mxu1 }
 0x53a   : > { %3857 = vmatmul.mubr.msk.bf16.gmra.mxu0 %vm1121_vm2, %v5285_v34  ;;  %3861 = vmatmul.mubr.msk.bf16.gmra.mxu1 %vm1121_vm2, %v5285_v34  ;;  %v2729_v61 = vmax.f32 %v5291_v31, 0.0  ;;  %v2731_v50 = vmax.f32 %v5293_v30, 0.0  ;;  %v2730_v30 = vmax.f32 %v5289_v3, 0.0 }
 0x53b   : > { %v5299_v19 = vpop.f32.mrf.mxu0  ;;  %3023 = vmatprep.mubr.bf16.mxu0 %v5566_v27  ;;  %v5302_v0 = vpop.f32.mrf.mxu1  ;;  %3096 = vmatprep.mubr.bf16.mxu1 %v5566_v27 }
 0x53c   : > { %v2736_v25 = vmax.f32 %v5299_v19, 0.0  ;;  %v2715_v19 = vmax.f32 %v5269_v52, 0.0 }
 0x53d   : > { %v2612_v24 = vpop.f32.mrf.mxu0  ;;  %v2685_v29 = vpop.f32.mrf.mxu1 }
 0x53e   : > { %v2737_v26 = vmax.f32 %v2612_v24, 0.0  ;;  %v2739_v49 = vmax.f32 %v2685_v29, 0.0  ;;  %v2721_v24 = vmax.f32 %v5281_v60, 0.0  ;;  %v2720_v60 = vmax.f32 %v5275_v63, 0.0 }
 0x53f   : > { %v2616_v6 = vpop.f32.mrf.mxu0  ;;  %v2689_v53 = vpop.f32.mrf.mxu1 }
 0x540   : > { %v2744_v58 = vmax.f32 %v2616_v6, 0.0  ;;  %v2746_v1 = vmax.f32 %v2689_v53, 0.0  ;;  %v2785_v29 = vpack.c.bf16 %v2737_v26, %v2729_v61  ;;  %v2787_v31 = vpack.c.bf16 %v2739_v49, %v2731_v50 }
 0x541   : > { %v2618_v8 = vpop.f32.mrf.mxu0  ;;  %v2691_v46 = vpop.f32.mrf.mxu1  ;;  %v2713_v53 = vmax.f32 %v5267_v44, 0.0  ;;  %v2714_v44 = vmax.f32 %v5265_v55, 0.0 }
 0x542   : > { %v2745_v9 = vmax.f32 %v2618_v8, 0.0  ;;  %v2747_v41 = vmax.f32 %v2691_v46, 0.0  ;;  %v2738_v46 = vmax.f32 %v5302_v0, 0.0  ;;  %v2722_v0 = vmax.f32 %v5278_v10, 0.0 }
 0x543   : > { %v2620_v37 = vpop.f32.mrf.mxu0  ;;  %v2693_v28 = vpop.f32.mrf.mxu1 }
 0x544   : > { %v2752_v40 = vmax.f32 %v2620_v37, 0.0  ;;  %v2754_v16 = vmax.f32 %v2693_v28, 0.0  ;;  %v2723_v37 = vmax.f32 %v5283_v21, 0.0  ;;  %v2728_v28 = vmax.f32 %v5287_v20, 0.0 }
 0x545   : > { %v2622_v12 = vpop.f32.mrf.mxu0  ;;  %v2695_v57 = vpop.f32.mrf.mxu1  ;;  %v2786_v21 = vpack.c.bf16 %v2738_v46, %v2730_v30  ;;  %v2712_v20 = vmax.f32 %v5263_v22, 0.0 }
 0x546   : > { %v2753_v36 = vmax.f32 %v2622_v12, 0.0  ;;  %v2755_v42 = vmax.f32 %v2695_v57, 0.0  ;;  %v2792_v8 = vpack.c.bf16 %v2752_v40, %v2744_v58  ;;  %v2794_v6 = vpack.c.bf16 %v2754_v16, %v2746_v1 }
 0x547   : > { %v2626_v5 = vpop.f32.mrf.mxu0  ;;  %v2699_v51 = vpop.f32.mrf.mxu1  ;;  %v2784_v12 = vpack.c.bf16 %v2736_v25, %v2728_v28  ;;  %v2777_v57 = vpack.c.bf16 %v2721_v24, %v2713_v53  ;;  %v2776_v3 = vpack.c.bf16 %v2720_v60, %v2712_v20 }
 0x548   : > { %v2760_v17 = vmax.f32 %v2626_v5, 0.0  ;;  %v2762_v15 = vmax.f32 %v2699_v51, 0.0  ;;  %v2793_v38 = vpack.c.bf16 %v2753_v36, %v2745_v9  ;;  %v2795_v35 = vpack.c.bf16 %v2755_v42, %v2747_v41 }
 0x549   : > { %v2628_v2 = vpop.f32.mrf.mxu0  ;;  %v2701_v45 = vpop.f32.mrf.mxu1  ;;  %v2779_v5 = vpack.c.bf16 %v2723_v37, %v2715_v19  ;;  %v2778_v51 = vpack.c.bf16 %v2722_v0, %v2714_v44 }
 0x54a   : > { %v2761_v56 = vmax.f32 %v2628_v2, 0.0  ;;  %v2763_v48 = vmax.f32 %v2701_v45, 0.0 }
 0x54b   : > { %v2630_v32 = vpop.f32.mrf.mxu0  ;;  %v2703_v59 = vpop.f32.mrf.mxu1 }
 0x54c   : > { %v2768_v43 = vmax.f32 %v2630_v32, 0.0  ;;  %v2770_v47 = vmax.f32 %v2703_v59, 0.0 }
 0x54d   : > { %v2632_v14 = vpop.f32.mrf.mxu0  ;;  %v2705_v4 = vpop.f32.mrf.mxu1 }
 0x54e   : > { %v2769_v33 = vmax.f32 %v2632_v14, 0.0  ;;  %v2771_v11 = vmax.f32 %v2705_v4, 0.0  ;;  %v2800_v18 = vpack.c.bf16 %v2768_v43, %v2760_v17  ;;  %v2802_v62 = vpack.c.bf16 %v2770_v47, %v2762_v15 }
 0x550   : > { %v2801_v7 = vpack.c.bf16 %v2769_v33, %v2761_v56  ;;  %v2803_v23 = vpack.c.bf16 %v2771_v11, %v2763_v48 }
 0x552   : > { %2999 = vmatprep.subr.bf16.mxu0 %v2801_v7  ;;  %3072 = vmatprep.subr.bf16.mxu1 %v2803_v23 }
 0x553   : > { %3000 = vmatpush1.bf16.msra.mxu0 %v2800_v18  ;;  %3073 = vmatpush1.bf16.msra.mxu1 %v2802_v62 }
 0x554   : > { %3001 = vmatprep.subr.bf16.mxu0 %v2793_v38  ;;  %3074 = vmatprep.subr.bf16.mxu1 %v2795_v35 }
 0x557   : > { %3002 = vmatpush1.bf16.msra.mxu0 %v2792_v8  ;;  %3075 = vmatpush1.bf16.msra.mxu1 %v2794_v6 }
 0x558   : > { %3003 = vmatprep.subr.bf16.mxu0 %v2785_v29  ;;  %3076 = vmatprep.subr.bf16.mxu1 %v2787_v31 }
 0x55b   : > { %3004 = vmatpush1.bf16.msra.mxu0 %v2784_v12  ;;  %3077 = vmatpush1.bf16.msra.mxu1 %v2786_v21 }
 0x55c   : > { %3005 = vmatprep.subr.bf16.mxu0 %v2777_v57  ;;  %3078 = vmatprep.subr.bf16.mxu1 %v2779_v5 }
 0x55f   : > { %3006 = vmatpush1.bf16.msra.mxu0 %v2776_v3  ;;  %3079 = vmatpush1.bf16.msra.mxu1 %v2778_v51 }
 0x562   : > { %3862 = vmatmul.mubr.msk.bf16.vlgmr.msra.gmra.mxu0 %vm1121_vm2, %v5245_v13  ;;  %3866 = vmatmul.mubr.msk.bf16.vlgmr.msra.gmra.mxu1 %vm1121_vm2, %v5245_v13 }
 0x563   : > { %3033 = vmatprep.mubr.bf16.mxu0 %v5566_v27  ;;  %3106 = vmatprep.mubr.bf16.mxu1 %v5566_v27 }
 0x56a   : > { %3863 = vmatmul.mubr.msk.bf16.gmra.mxu0 %vm1121_vm2, %v5253_v54  ;;  %3867 = vmatmul.mubr.msk.bf16.gmra.mxu1 %vm1121_vm2, %v5253_v54 }
 0x56b   : > { %3043 = vmatprep.mubr.bf16.mxu0 %v5566_v27  ;;  %3116 = vmatprep.mubr.bf16.mxu1 %v5566_v27 }
 0x572   : > { %3864 = vmatmul.mubr.msk.bf16.gmra.mxu0 %vm1121_vm2, %v5261_v39  ;;  %3868 = vmatmul.mubr.msk.bf16.gmra.mxu1 %vm1121_vm2, %v5261_v39 }
 0x573   : > { %3053 = vmatprep.mubr.bf16.mxu0 %v5566_v27  ;;  %3126 = vmatprep.mubr.bf16.mxu1 %v5566_v27 }
 0x57a   : > { %3865 = vmatmul.mubr.msk.bf16.gmra.mxu0 %vm1121_vm2, %v5285_v34  ;;  %3869 = vmatmul.mubr.msk.bf16.gmra.mxu1 %vm1121_vm2, %v5285_v34 }
 0x57b   : > { %3306 = vmatprep.mubr.bf16.mxu0 %v5566_v27  ;;  %3365 = vmatprep.mubr.bf16.mxu1 %v5566_v27 }
 0x5e2   : > { %v5343_v13 = vpop.f32.mrf.mxu0  ;;  %v5345_v54 = vpop.f32.mrf.mxu1 }
 0x5e4   : > { %v5347_v22 = vpop.f32.mrf.mxu0  ;;  %v5349_v39 = vpop.f32.mrf.mxu1 }
 0x5e6   : > { %v5351_v55 = vpop.f32.mrf.mxu0  ;;  %v5353_v52 = vpop.f32.mrf.mxu1 }
 0x5e8   : > { %v5355_v63 = vpop.f32.mrf.mxu0  ;;  %v5357_v10 = vpop.f32.mrf.mxu1 }
 0x5ea   : > { %v5359_v34 = vpop.f32.mrf.mxu0  ;;  %v5361_v2 = vpop.f32.mrf.mxu1 }
 0x5eb   : > { %v3153_v20 = vmax.f32 %v5359_v34, 0.0  ;;  %v3155_v3 = vmax.f32 %v5361_v2, 0.0  ;;  %v3140_v34 = vmax.f32 %v5349_v39, 0.0  ;;  %v3137_v2 = vmax.f32 %v5343_v13, 0.0  ;;  %v5387_v13 = vld [vmem:[#allocation5 + $0xa8] sm:$0xff]  }
 0x5ec   : > { %v2891_v45 = vpop.f32.mrf.mxu0  ;;  %v2964_v32 = vpop.f32.mrf.mxu1 }
 0x5ed   : > { %v3154_v25 = vmax.f32 %v2891_v45, 0.0  ;;  %v3156_v12 = vmax.f32 %v2964_v32, 0.0 }
 0x5ee   : > { %v5363_v59 = vpop.f32.mrf.mxu0  ;;  %v5365_v43 = vpop.f32.mrf.mxu1 }
 0x5ef   : > { %v3161_v5 = vmax.f32 %v5363_v59, 0.0  ;;  %v3163_v51 = vmax.f32 %v5365_v43, 0.0  ;;  %v3148_v59 = vmax.f32 %v5357_v10, 0.0  ;;  %v3145_v43 = vmax.f32 %v5351_v55, 0.0 }
 0x5f0   : > { %v2895_v14 = vpop.f32.mrf.mxu0  ;;  %v2968_v36 = vpop.f32.mrf.mxu1 }
 0x5f1   : > { %v3162_v8 = vmax.f32 %v2895_v14, 0.0  ;;  %v3164_v0 = vmax.f32 %v2968_v36, 0.0  ;;  %v3138_v36 = vmax.f32 %v5347_v22, 0.0  ;;  %v3147_v22 = vmax.f32 %v5353_v52, 0.0 }
 0x5f2   : > { %v2899_v56 = vpop.f32.mrf.mxu0  ;;  %v2972_v47 = vpop.f32.mrf.mxu1  ;;  %v3201_v39 = vpack.c.bf16 %v3145_v43, %v3137_v2 }
 0x5f3   : > { %v3169_v24 = vmax.f32 %v2899_v56, 0.0  ;;  %v3171_v6 = vmax.f32 %v2972_v47, 0.0  ;;  %v3210_v45 = vpack.c.bf16 %v3162_v8, %v3154_v25  ;;  %v3212_v32 = vpack.c.bf16 %v3164_v0, %v3156_v12 }
 0x5f4   : > { %v2901_v33 = vpop.f32.mrf.mxu0  ;;  %v2974_v4 = vpop.f32.mrf.mxu1  ;;  %v3146_v56 = vmax.f32 %v5355_v63, 0.0  ;;  %v3209_v47 = vpack.c.bf16 %v3161_v5, %v3153_v20  ;;  %v3204_v63 = vpack.c.bf16 %v3148_v59, %v3140_v34 }
 0x5f5   : > { %v3170_v40 = vmax.f32 %v2901_v33, 0.0  ;;  %v3172_v58 = vmax.f32 %v2974_v4, 0.0  ;;  %v3211_v33 = vpack.c.bf16 %v3163_v51, %v3155_v3  ;;  %v3139_v4 = vmax.f32 %v5345_v54, 0.0  ;;  %v5395_v54 = vld [vmem:[#allocation5 + $0xb0] sm:$0xff]  }
 0x5f6   : > { %v2903_v42 = vpop.f32.mrf.mxu0  ;;  %v2976_v17 = vpop.f32.mrf.mxu1 }
 0x5f7   : > { %v3177_v37 = vmax.f32 %v2903_v42, 0.0  ;;  %v3179_v53 = vmax.f32 %v2976_v17, 0.0  ;;  %v3202_v42 = vpack.c.bf16 %v3146_v56, %v3138_v36  ;;  %v3203_v10 = vpack.c.bf16 %v3147_v22, %v3139_v4  ;;  %v5379_v17 = vld [vmem:[#allocation5 + $0xa0] sm:$0xff]  }
 0x5f8   : > { %v2905_v48 = vpop.f32.mrf.mxu0  ;;  %v2978_v11 = vpop.f32.mrf.mxu1 }
 0x5f9   : > { %v3178_v26 = vmax.f32 %v2905_v48, 0.0  ;;  %v3180_v35 = vmax.f32 %v2978_v11, 0.0  ;;  %v3217_v44 = vpack.c.bf16 %v3177_v37, %v3169_v24  ;;  %v3219_v14 = vpack.c.bf16 %v3179_v53, %v3171_v6 }
 0x5fa   : > { %v2909_v9 = vpop.f32.mrf.mxu0  ;;  %v2982_v15 = vpop.f32.mrf.mxu1 }
 0x5fb   : > { %v3185_v18 = vmax.f32 %v2909_v9, 0.0  ;;  %v3187_v16 = vmax.f32 %v2982_v15, 0.0  ;;  %v3218_v30 = vpack.c.bf16 %v3178_v26, %v3170_v40  ;;  %v3220_v57 = vpack.c.bf16 %v3180_v35, %v3172_v58  ;;  %v5419_v40 = vld [vmem:[#allocation5 + $0xb8] sm:$0xff]  }
 0x5fc   : > { %v2911_v7 = vpop.f32.mrf.mxu0  ;;  %v2984_v41 = vpop.f32.mrf.mxu1 }
 0x5fd   : > { %v3186_v38 = vmax.f32 %v2911_v7, 0.0  ;;  %v3188_v61 = vmax.f32 %v2984_v41, 0.0 }
 0x5fe   : > { %v2913_v23 = vpop.f32.mrf.mxu0  ;;  %v2986_v49 = vpop.f32.mrf.mxu1 }
 0x5ff   : > { %v3193_v62 = vmax.f32 %v2913_v23, 0.0  ;;  %v3195_v1 = vmax.f32 %v2986_v49, 0.0 }
 0x600   : > { %v2915_v50 = vpop.f32.mrf.mxu0  ;;  %v2988_v29 = vpop.f32.mrf.mxu1 }
 0x601   : > { %v3194_v46 = vmax.f32 %v2915_v50, 0.0  ;;  %v3225_v28 = vpack.c.bf16 %v3193_v62, %v3185_v18  ;;  %v3196_v31 = vmax.f32 %v2988_v29, 0.0  ;;  %v3227_v19 = vpack.c.bf16 %v3195_v1, %v3187_v16 }
 0x603   : > { %v3226_v60 = vpack.c.bf16 %v3194_v46, %v3186_v38  ;;  %v3228_v21 = vpack.c.bf16 %v3196_v31, %v3188_v61 }
 0x605   : > { %3282 = vmatprep.subr.bf16.mxu0 %v3226_v60  ;;  %3341 = vmatprep.subr.bf16.mxu1 %v3228_v21 }
 0x606   : > { %3283 = vmatpush1.bf16.msra.mxu0 %v3225_v28  ;;  %3342 = vmatpush1.bf16.msra.mxu1 %v3227_v19 }
 0x607   : > { %3284 = vmatprep.subr.bf16.mxu0 %v3218_v30  ;;  %3343 = vmatprep.subr.bf16.mxu1 %v3220_v57 }
 0x60a   : > { %3285 = vmatpush1.bf16.msra.mxu0 %v3217_v44  ;;  %3344 = vmatpush1.bf16.msra.mxu1 %v3219_v14 }
 0x60b   : > { %3286 = vmatprep.subr.bf16.mxu0 %v3210_v45  ;;  %3345 = vmatprep.subr.bf16.mxu1 %v3212_v32 }
 0x60e   : > { %3287 = vmatpush1.bf16.msra.mxu0 %v3209_v47  ;;  %3346 = vmatpush1.bf16.msra.mxu1 %v3211_v33 }
 0x60f   : > { %3288 = vmatprep.subr.bf16.mxu0 %v3202_v42  ;;  %3347 = vmatprep.subr.bf16.mxu1 %v3204_v63 }
 0x612   : > { %3289 = vmatpush1.bf16.msra.mxu0 %v3201_v39  ;;  %3348 = vmatpush1.bf16.msra.mxu1 %v3203_v10 }
 0x615   : > { %3874 = vmatmul.mubr.msk.bf16.vlgmr.msra.gmra.mxu0 %vm1121_vm2, %v5379_v17  ;;  %3878 = vmatmul.mubr.msk.bf16.vlgmr.msra.gmra.mxu1 %vm1121_vm2, %v5379_v17 }
 0x616   : > { %3314 = vmatprep.mubr.bf16.mxu0 %v5566_v27  ;;  %3373 = vmatprep.mubr.bf16.mxu1 %v5566_v27 }
 0x61d   : > { %3875 = vmatmul.mubr.msk.bf16.gmra.mxu0 %vm1121_vm2, %v5387_v13  ;;  %3879 = vmatmul.mubr.msk.bf16.gmra.mxu1 %vm1121_vm2, %v5387_v13 }
 0x61e   : > { %3320 = vmatprep.mubr.bf16.mxu0 %v5566_v27  ;;  %3379 = vmatprep.mubr.bf16.mxu1 %v5566_v27 }
 0x622   : > { %v5397_v55 = vpop.f32.mrf.mxu0  ;;  %v5399_v52 = vpop.f32.mrf.mxu1 }
 0x624   : > { %v5401_v48 = vpop.f32.mrf.mxu0  ;;  %v5403_v11 = vpop.f32.mrf.mxu1 }
 0x625   : > { %3876 = vmatmul.mubr.msk.bf16.gmra.mxu0 %vm1121_vm2, %v5395_v54  ;;  %3880 = vmatmul.mubr.msk.bf16.gmra.mxu1 %vm1121_vm2, %v5395_v54 }
 0x626   : > { %v5407_v9 = vpop.f32.mrf.mxu0  ;;  %3326 = vmatprep.mubr.bf16.mxu0 %v5566_v27  ;;  %v5412_v15 = vpop.f32.mrf.mxu1  ;;  %3385 = vmatprep.mubr.bf16.mxu1 %v5566_v27 }
 0x628   : > { %v5415_v7 = vpop.f32.mrf.mxu0  ;;  %v5417_v41 = vpop.f32.mrf.mxu1 }
 0x62a   : > { %v5421_v18 = vpop.f32.mrf.mxu0  ;;  %v5423_v23 = vpop.f32.mrf.mxu1 }
 0x62c   : > { %v5425_v26 = vpop.f32.mrf.mxu0  ;;  %v5427_v16 = vpop.f32.mrf.mxu1 }
 0x62d   : > { %3877 = vmatmul.mubr.msk.bf16.gmra.mxu0 %vm1121_vm2, %v5419_v40  ;;  %3881 = vmatmul.mubr.msk.bf16.gmra.mxu1 %vm1121_vm2, %v5419_v40  ;;  %v3158_v42 = vmax.f32 %v5425_v26, 0.0  ;;  %v3160_v39 = vmax.f32 %v5427_v16, 0.0  ;;  %v3159_v16 = vmax.f32 %v5423_v23, 0.0 }
 0x62e   : > { %v5431_v38 = vpop.f32.mrf.mxu0  ;;  %3424 = vmatprep.mubr.bf16.mxu0 %v5566_v27  ;;  %v5436_v62 = vpop.f32.mrf.mxu1  ;;  %3483 = vmatprep.mubr.bf16.mxu1 %v5566_v27 }
 0x62f   : > { %v3165_v10 = vmax.f32 %v5431_v38, 0.0  ;;  %v3144_v38 = vmax.f32 %v5403_v11, 0.0 }
 0x630   : > { %v3041_v49 = vpop.f32.mrf.mxu0  ;;  %v3114_v58 = vpop.f32.mrf.mxu1 }
 0x631   : > { %v3166_v59 = vmax.f32 %v3041_v49, 0.0  ;;  %v3168_v43 = vmax.f32 %v3114_v58, 0.0  ;;  %v3150_v49 = vmax.f32 %v5415_v7, 0.0  ;;  %v3149_v7 = vmax.f32 %v5407_v9, 0.0 }
 0x632   : > { %v3045_v35 = vpop.f32.mrf.mxu0  ;;  %v3118_v61 = vpop.f32.mrf.mxu1 }
 0x633   : > { %v3173_v4 = vmax.f32 %v3045_v35, 0.0  ;;  %v3175_v63 = vmax.f32 %v3118_v61, 0.0  ;;  %v3214_v58 = vpack.c.bf16 %v3166_v59, %v3158_v42  ;;  %v3216_v26 = vpack.c.bf16 %v3168_v43, %v3160_v39 }
 0x634   : > { %v3047_v1 = vpop.f32.mrf.mxu0  ;;  %v3120_v50 = vpop.f32.mrf.mxu1  ;;  %v3142_v61 = vmax.f32 %v5401_v48, 0.0  ;;  %v3143_v48 = vmax.f32 %v5399_v52, 0.0 }
 0x635   : > { %v3174_v51 = vmax.f32 %v3047_v1, 0.0  ;;  %v3176_v32 = vmax.f32 %v3120_v50, 0.0  ;;  %v3167_v50 = vmax.f32 %v5436_v62, 0.0  ;;  %v3151_v62 = vmax.f32 %v5412_v15, 0.0 }
 0x636   : > { %v3049_v25 = vpop.f32.mrf.mxu0  ;;  %v3122_v8 = vpop.f32.mrf.mxu1 }
 0x637   : > { %v3181_v36 = vmax.f32 %v3049_v25, 0.0  ;;  %v3183_v47 = vmax.f32 %v3122_v8, 0.0  ;;  %v3152_v25 = vmax.f32 %v5417_v41, 0.0  ;;  %v3157_v8 = vmax.f32 %v5421_v18, 0.0 }
 0x638   : > { %v3051_v24 = vpop.f32.mrf.mxu0  ;;  %v3124_v46 = vpop.f32.mrf.mxu1  ;;  %v3215_v41 = vpack.c.bf16 %v3167_v50, %v3159_v16  ;;  %v3141_v18 = vmax.f32 %v5397_v55, 0.0 }
 0x639   : > { %v3182_v60 = vmax.f32 %v3051_v24, 0.0  ;;  %v3184_v20 = vmax.f32 %v3124_v46, 0.0  ;;  %v3221_v1 = vpack.c.bf16 %v3181_v36, %v3173_v4  ;;  %v3223_v35 = vpack.c.bf16 %v3183_v47, %v3175_v63 }
 0x63a   : > { %v3055_v29 = vpop.f32.mrf.mxu0  ;;  %v3128_v6 = vpop.f32.mrf.mxu1  ;;  %v3213_v24 = vpack.c.bf16 %v3165_v10, %v3157_v8  ;;  %v3206_v46 = vpack.c.bf16 %v3150_v49, %v3142_v61  ;;  %v3205_v23 = vpack.c.bf16 %v3149_v7, %v3141_v18 }
 0x63b   : > { %v3189_v5 = vmax.f32 %v3055_v29, 0.0  ;;  %v3191_v45 = vmax.f32 %v3128_v6, 0.0  ;;  %v3222_v33 = vpack.c.bf16 %v3182_v60, %v3174_v51  ;;  %v3224_v22 = vpack.c.bf16 %v3184_v20, %v3176_v32 }
 0x63c   : > { %v3057_v37 = vpop.f32.mrf.mxu0  ;;  %v3130_v28 = vpop.f32.mrf.mxu1  ;;  %v3208_v29 = vpack.c.bf16 %v3152_v25, %v3144_v38  ;;  %v3207_v6 = vpack.c.bf16 %v3151_v62, %v3143_v48 }
 0x63d   : > { %v3190_v12 = vmax.f32 %v3057_v37, 0.0  ;;  %v3192_v44 = vmax.f32 %v3130_v28, 0.0 }
 0x63e   : > { %v3059_v31 = vpop.f32.mrf.mxu0  ;;  %v3132_v53 = vpop.f32.mrf.mxu1 }
 0x63f   : > { %v3197_v30 = vmax.f32 %v3059_v31, 0.0  ;;  %v3199_v0 = vmax.f32 %v3132_v53, 0.0 }
 0x640   : > { %v3061_v19 = vpop.f32.mrf.mxu0  ;;  %v3134_v21 = vpop.f32.mrf.mxu1 }
 0x641   : > { %v3198_v57 = vmax.f32 %v3061_v19, 0.0  ;;  %v3200_v3 = vmax.f32 %v3134_v21, 0.0  ;;  %v3229_v56 = vpack.c.bf16 %v3197_v30, %v3189_v5  ;;  %v3231_v2 = vpack.c.bf16 %v3199_v0, %v3191_v45 }
 0x643   : > { %v3230_v14 = vpack.c.bf16 %v3198_v57, %v3190_v12  ;;  %v3232_v34 = vpack.c.bf16 %v3200_v3, %v3192_v44 }
 0x645   : > { %3400 = vmatprep.subr.bf16.mxu0 %v3230_v14  ;;  %3459 = vmatprep.subr.bf16.mxu1 %v3232_v34 }
 0x646   : > { %3401 = vmatpush1.bf16.msra.mxu0 %v3229_v56  ;;  %3460 = vmatpush1.bf16.msra.mxu1 %v3231_v2 }
 0x647   : > { %3402 = vmatprep.subr.bf16.mxu0 %v3222_v33  ;;  %3461 = vmatprep.subr.bf16.mxu1 %v3224_v22 }
 0x64a   : > { %3403 = vmatpush1.bf16.msra.mxu0 %v3221_v1  ;;  %3462 = vmatpush1.bf16.msra.mxu1 %v3223_v35 }
 0x64b   : > { %3404 = vmatprep.subr.bf16.mxu0 %v3214_v58  ;;  %3463 = vmatprep.subr.bf16.mxu1 %v3216_v26 }
 0x64e   : > { %3405 = vmatpush1.bf16.msra.mxu0 %v3213_v24  ;;  %3464 = vmatpush1.bf16.msra.mxu1 %v3215_v41 }
 0x64f   : > { %3406 = vmatprep.subr.bf16.mxu0 %v3206_v46  ;;  %3465 = vmatprep.subr.bf16.mxu1 %v3208_v29 }
 0x652   : > { %3407 = vmatpush1.bf16.msra.mxu0 %v3205_v23  ;;  %3466 = vmatpush1.bf16.msra.mxu1 %v3207_v6 }
 0x655   : > { %3882 = vmatmul.mubr.msk.bf16.vlgmr.msra.gmra.mxu0 %vm1121_vm2, %v5379_v17  ;;  %3886 = vmatmul.mubr.msk.bf16.vlgmr.msra.gmra.mxu1 %vm1121_vm2, %v5379_v17 }
 0x656   : > { %3432 = vmatprep.mubr.bf16.mxu0 %v5566_v27  ;;  %3491 = vmatprep.mubr.bf16.mxu1 %v5566_v27 }
 0x65d   : > { %3883 = vmatmul.mubr.msk.bf16.gmra.mxu0 %vm1121_vm2, %v5387_v13  ;;  %3887 = vmatmul.mubr.msk.bf16.gmra.mxu1 %vm1121_vm2, %v5387_v13 }
 0x65e   : > { %3438 = vmatprep.mubr.bf16.mxu0 %v5566_v27  ;;  %3497 = vmatprep.mubr.bf16.mxu1 %v5566_v27 }
 0x665   : > { %3884 = vmatmul.mubr.msk.bf16.gmra.mxu0 %vm1121_vm2, %v5395_v54  ;;  %3888 = vmatmul.mubr.msk.bf16.gmra.mxu1 %vm1121_vm2, %v5395_v54 }
 0x666   : > { %3444 = vmatprep.mubr.bf16.mxu0 %v5566_v27  ;;  %3503 = vmatprep.mubr.bf16.mxu1 %v5566_v27 }
 0x66d   : > { %3885 = vmatmul.mubr.msk.bf16.gmra.mxu0 %vm1121_vm2, %v5419_v40  ;;  %3889 = vmatmul.mubr.msk.bf16.gmra.mxu1 %vm1121_vm2, %v5419_v40 }
 0x6d5   : > { %v3308_v17 = vpop.f32.mrf.mxu0  ;;  %v3367_v55 = vpop.f32.mrf.mxu1 }
 0x6d6   : > { %v3890_v13 = vmul.f32 -1.442695, %v3308_v17  ;;  %v3892_v52 = vmul.f32 -1.442695, %v3367_v55 }
 0x6d7   : > { %v3310_v11 = vpop.f32.mrf.mxu0  ;;  %v3369_v15 = vpop.f32.mrf.mxu1 }
 0x6d8   : > { %4003 = vpow2.f32 %v3890_v13  ;;  %v3891_v9 = vmul.f32 -1.442695, %v3310_v11  ;;  %v3893_v54 = vmul.f32 -1.442695, %v3369_v15 }
 0x6d9   : > { %4005 = vpow2.f32 %v3892_v52  ;;  %v3312_v37 = vpop.f32.mrf.mxu0  ;;  %v3371_v28 = vpop.f32.mrf.mxu1 }
 0x6da   : > { %4007 = vpow2.f32 %v3891_v9 }
 0x6db   : > { %4009 = vpow2.f32 %v3893_v54  ;;  %v3313_v27 = vpop.f32.mrf.mxu0  ;;  %v3372_v31 = vpop.f32.mrf.mxu1 }
 0x6dd   : > { %v3316_v53 = vpop.f32.mrf.mxu0  ;;  %v3375_v30 = vpop.f32.mrf.mxu1 }
 0x6df   : > { %v3317_v19 = vpop.f32.mrf.mxu0  ;;  %v3376_v40 = vpop.f32.mrf.mxu1 }
 0x6e1   : > { %v3318_v60 = vpop.f32.mrf.mxu0  ;;  %v3377_v12 = vpop.f32.mrf.mxu1 }
 0x6e3   : > { %v3319_v0 = vpop.f32.mrf.mxu0  ;;  %v3378_v57 = vpop.f32.mrf.mxu1 }
 0x6e5   : > { %v4004_v21 = vpop.eup %4003  ;;  %v3322_v20 = vpop.f32.mrf.mxu0 }
 0x6e6   : > { %v4006_v5 = vpop.eup %4005  ;;  %v3534_v44 = vadd.f32 1.0, %v4004_v21  ;;  %v3381_v3 = vpop.f32.mrf.mxu1 }
 0x6e7   : > { %v4008_v51 = vpop.eup %4007  ;;  %v3536_v45 = vadd.f32 1.0, %v4006_v5  ;;  %v3323_v14 = vpop.f32.mrf.mxu0 }
 0x6e8   : > { %v4010_v32 = vpop.eup %4009  ;;  %4011 = vrcp.f32 %v3534_v44  ;;  %v3535_v36 = vadd.f32 1.0, %v4008_v51  ;;  %v3382_v56 = vpop.f32.mrf.mxu1 }
 0x6e9   : > { %4013 = vrcp.f32 %v3536_v45  ;;  %v3537_v34 = vadd.f32 1.0, %v4010_v32  ;;  %v3324_v59 = vpop.f32.mrf.mxu0 }
 0x6ea   : > { %4015 = vrcp.f32 %v3535_v36  ;;  %v3383_v47 = vpop.f32.mrf.mxu1 }
 0x6eb   : > { %4017 = vrcp.f32 %v3537_v34  ;;  %v3325_v33 = vpop.f32.mrf.mxu0 }
 0x6ec   : > { %v3384_v2 = vpop.f32.mrf.mxu1 }
 0x6ed   : > { %v3328_v43 = vpop.f32.mrf.mxu0 }
 0x6ee   : > { %v3387_v4 = vpop.f32.mrf.mxu1 }
 0x6ef   : > { %v3329_v22 = vpop.f32.mrf.mxu0 }
 0x6f0   : > { %v3388_v42 = vpop.f32.mrf.mxu1 }
 0x6f1   : > { %v3330_v63 = vpop.f32.mrf.mxu0 }
 0x6f2   : > { %v3389_v39 = vpop.f32.mrf.mxu1 }
 0x6f3   : > { %v3331_v10 = vpop.f32.mrf.mxu0 }
 0x6f4   : > { %v3390_v1 = vpop.f32.mrf.mxu1 }
 0x6f5   : > { %v4012_v49 = vpop.eup %4011 }
 0x6f6   : > { %v4014_v50 = vpop.eup %4013 }
 0x6f7   : > { %v4016_v58 = vpop.eup %4015 }
 0x6f8   : > { %v4018_v35 = vpop.eup %4017  ;;  %v3566_v25 = vcombine.low %v4012_v49, %v4016_v58 }
 0x6f9   : > { %v3567_v8 = vcombine.low %v4014_v50, %v4018_v35 }
 0x6fa   : > { %v3570_v26 = vrot.slane %v3566_v25, 7 }
 0x6fb   : > { %v3571_v61 = vrot.slane %v3567_v8, 7 }
 0x6fc   : > { %3578 = vst [vmem:[%s4958_s23] sm:$0xee] %v3570_v26 }
 0x6fd   : > { %3579 = vst [vmem:[%s4958_s23 + $0x8] sm:$0xee] %v3571_v61 }
 0x715   : > { %v3426_v16 = vpop.f32.mrf.mxu0  ;;  %v3485_v7 = vpop.f32.mrf.mxu1 }
 0x716   : > { %v3894_v38 = vmul.f32 -1.442695, %v3426_v16  ;;  %v3896_v24 = vmul.f32 -1.442695, %v3485_v7 }
 0x717   : > { %v3428_v62 = vpop.f32.mrf.mxu0  ;;  %v3487_v41 = vpop.f32.mrf.mxu1 }
 0x718   : > { %4019 = vpow2.f32 %v3894_v38  ;;  %v3895_v46 = vmul.f32 -1.442695, %v3428_v62  ;;  %v3897_v18 = vmul.f32 -1.442695, %v3487_v41 }
 0x719   : > { %4021 = vpow2.f32 %v3896_v24  ;;  %v3430_v29 = vpop.f32.mrf.mxu0  ;;  %v3489_v48 = vpop.f32.mrf.mxu1 }
 0x71a   : > { %4023 = vpow2.f32 %v3895_v46 }
 0x71b   : > { %4025 = vpow2.f32 %v3897_v18  ;;  %v3431_v23 = vpop.f32.mrf.mxu0  ;;  %v3490_v6 = vpop.f32.mrf.mxu1 }
 0x71d   : > { %v3434_v17 = vpop.f32.mrf.mxu0  ;;  %v3493_v13 = vpop.f32.mrf.mxu1 }
 0x71f   : > { %v3435_v55 = vpop.f32.mrf.mxu0  ;;  %v3494_v52 = vpop.f32.mrf.mxu1 }
 0x721   : > { %v3436_v11 = vpop.f32.mrf.mxu0  ;;  %v3495_v9 = vpop.f32.mrf.mxu1 }
 0x723   : > { %v3437_v15 = vpop.f32.mrf.mxu0  ;;  %v3496_v54 = vpop.f32.mrf.mxu1 }
 0x725   : > { %v4020_v37 = vpop.eup %4019  ;;  %v3440_v28 = vpop.f32.mrf.mxu0 }
 0x726   : > { %v4022_v27 = vpop.eup %4021  ;;  %v3538_v31 = vadd.f32 1.0, %v4020_v37  ;;  %v3499_v53 = vpop.f32.mrf.mxu1 }
 0x727   : > { %v4024_v30 = vpop.eup %4023  ;;  %v3540_v19 = vadd.f32 1.0, %v4022_v27  ;;  %v3441_v40 = vpop.f32.mrf.mxu0 }
 0x728   : > { %v4026_v60 = vpop.eup %4025  ;;  %4027 = vrcp.f32 %v3538_v31  ;;  %v3539_v12 = vadd.f32 1.0, %v4024_v30  ;;  %v3500_v0 = vpop.f32.mrf.mxu1 }
 0x729   : > { %4029 = vrcp.f32 %v3540_v19  ;;  %v3541_v57 = vadd.f32 1.0, %v4026_v60  ;;  %v3442_v21 = vpop.f32.mrf.mxu0 }
 0x72a   : > { %4031 = vrcp.f32 %v3539_v12  ;;  %v3501_v20 = vpop.f32.mrf.mxu1 }
 0x72b   : > { %4033 = vrcp.f32 %v3541_v57  ;;  %v3443_v5 = vpop.f32.mrf.mxu0 }
 0x72c   : > { %v3502_v44 = vpop.f32.mrf.mxu1 }
 0x72d   : > { %v3446_v3 = vpop.f32.mrf.mxu0 }
 0x72e   : > { %v3505_v51 = vpop.f32.mrf.mxu1 }
 0x72f   : > { %v3447_v45 = vpop.f32.mrf.mxu0 }
 0x730   : > { %v3506_v14 = vpop.f32.mrf.mxu1 }
 0x731   : > { %v3448_v32 = vpop.f32.mrf.mxu0 }
 0x732   : > { %v3507_v36 = vpop.f32.mrf.mxu1 }
 0x733   : > { %v3449_v56 = vpop.f32.mrf.mxu0 }
 0x734   : > { %v3508_v34 = vpop.f32.mrf.mxu1 }
 0x735   : > { %v4028_v59 = vpop.eup %4027 }
 0x736   : > { %v4030_v47 = vpop.eup %4029 }
 0x737   : > { %v4032_v33 = vpop.eup %4031 }
 0x738   : > { %v4034_v2 = vpop.eup %4033  ;;  %v3568_v43 = vcombine.low %v4028_v59, %v4032_v33 }
 0x739   : > { %v3569_v4 = vcombine.low %v4030_v47, %v4034_v2 }
 0x73a   : > { %v3572_v22 = vrot.slane %v3568_v43, 7 }
 0x73b   : > { %v3573_v42 = vrot.slane %v3569_v4, 7 }
 0x73c   : > { %3580 = vst [vmem:[%s4958_s23 + $0x10] sm:$0xee] %v3572_v22 }
 0x73d   : > { %3581 = vst [vmem:[%s4958_s23 + $0x18] sm:$0xee] %v3573_v42 }
 0x73e   : > { %4102 = shalt.err (!%p4099_p10)
}
 0x73f   : > { %s4103_s17 = scalar_lea.hbm %s5482_s22, 512  ;;  %s4107_s27 = scalar_lea.hbm %s5524_s3, 1024 }
 0x740   : > { %p4104_p5 = scmp.ne.s32.totalorder %s5482_s22, %s4103_s17  ;;  %p4108_p4 = scmp.lt.s32.totalorder %s5482_s22, %s5524_s3 }
 0x741   : > { %p4109_p0 = scmp.lt.s32.totalorder %s4107_s27, %s4103_s17 }
 0x742   : > { %p4105_p11 = pnand %p4104_p5, %p5655_p13 }
 0x743   : > { %p4110_p1 = por %p4109_p0, %p4108_p4 }
 0x744   : > { %p4106_p6 = pneg %p4105_p11 }
 0x746   : > { %p4111_p12 = pnand %p4110_p1, %p4106_p6 }
 0x748   : > { %4114 = shalt.err (!%p4111_p12)
}
 0x749   : > { %3913 = dma.vmem_to_hbm [thread:$0]  (%p5655_p13), %s3598_s9, 512, %s5482_s22, %s3583_s8  }
 0x74a PF: > { %s3609_s6 = sand.u32 1, %s4145_s12   ;;  %p5656_p2 = scmp.ne.s32.totalorder %s5534_s25, 0 }
 0x74b   : > { %p5657_p3 = scmp.ge.s32.totalorder %s4157_s15, 2  ;;  %s3610_s7 = scalar_lea.sflag [#allocation4], %s3609_s6 }
 0x74d   : > { %p3924_p7 = pnand %p5657_p3, %p5656_p2 }
 0x74f   : > { %p3925_p8 = pneg %p3924_p7 }
 0x751   : > { %4140 = dma.done.wait (%p3925_p8), %s3610_s7, 512  }
 0x752   : > { %4142 = vsyncadd (%p3925_p8), %s3610_s7, 4294966784  ;;  %p17_p9 = scmp.ge.s32.totalorder %s4214_s18, 4   ;;  %s5658_s12 = smov %s4149_s13 }
 0x753   : > { %s5659_s13 = smov %s4153_s14  ;;  %s5660_s14 = smov %s4226_s21 }
 0x754   : > { %s5661_s15 = smov %s4214_s18  ;;  %19 = sbr.rel (!%p17_p9) target bundleno = 6 (0x6), region = 86 }
 0x759   :  { %3615 = vsyncpa [#allocation3], 1 }
 0x75a   :  { %3617 = vsyncpa [#allocation3 + $0x1], 1 }
 0x75b   :  { %3618 = vsyncpa [#allocation6], 1 }
 0x75c   :  { %3619 = vsyncpa [#allocation4], 1 }
 0x75d   :  { %3621 = vsyncpa [#allocation4 + $0x1], 1 }

</bundles_post_ra>
